<compile_context>
chip_gen: v7x
topology: tpu7x:2x2x1
jax: 0.10.0
libtpu: 0.0.40
codegen_flags: <defaults>
</compile_context>

<pallas_src>
import functools

import jax
import jax.numpy as jnp
from jax.experimental import pallas as pl
from jax.experimental.pallas import tpu as pltpu

LRELU_SLOPE = 0.2
BN_EPS = 1e-5
# Fused conv+BN layers keep the whole [M, K] patch block and the f32 conv
# result resident for one grid step; keep a conservative budget so the same
# code stays safe on v7x (64 MiB physical / 32 MiB scoped VMEM).
FUSED_VMEM_BUDGET = 8 << 20


def _lrelu(x):
    return jnp.where(x >= 0, x, LRELU_SLOPE * x)


def _bn_lrelu(y, gb_ref, inv_m):
    """Exact two-pass BatchNorm (batch statistics) + LeakyReLU on the resident
    f32 conv result.  gb_ref row 0 = gamma, row 1 = beta."""
    mean = jnp.sum(y, axis=0, keepdims=True) * inv_m
    yc = y - mean
    var = jnp.sum(yc * yc, axis=0, keepdims=True) * inv_m
    scale = gb_ref[0:1, :] * jax.lax.rsqrt(var + BN_EPS)
    return _lrelu(yc * scale + gb_ref[1:2, :])


# ---------------------------------------------------------------------------
# Pallas kernels
# ---------------------------------------------------------------------------
def _conv_lrelu_kernel(x_ref, w_ref, o_ref):
    """Layer 0: patches @ w on the MXU, LeakyReLU fused, bf16 out."""
    y = jnp.dot(x_ref[...], w_ref[...], preferred_element_type=jnp.float32)
    o_ref[...] = _lrelu(y).astype(o_ref.dtype)


def _conv_bn_lrelu_kernel(x_ref, w_ref, gb_ref, o_ref, *, inv_m):
    """Layers 1..2: conv + BatchNorm(batch stats) + LeakyReLU in one pass."""
    y = jnp.dot(x_ref[...], w_ref[...], preferred_element_type=jnp.float32)
    o_ref[...] = _bn_lrelu(y, gb_ref, inv_m).astype(o_ref.dtype)


def _conv_bn_lrelu_head_kernel(x_ref, w_ref, gb_ref, w4_ref, sel_ref, o_ref,
                               *, inv_m):
    """Layer 3 (conv + BN + LeakyReLU) fused with layer 4 (4x4 conv on the
    4x4 map == per-row dot + per-image reduction) and the sigmoid."""
    y = jnp.dot(x_ref[...], w_ref[...], preferred_element_type=jnp.float32)
    a = _bn_lrelu(y, gb_ref, inv_m)                       # [M, C] f32, resident
    # layer 4: logits[n] = sum_{p, c} a[n*hw + p, c] * w4[p, c]
    g = jnp.dot(sel_ref[...], a * w4_ref[...],
                preferred_element_type=jnp.float32)       # [N, C]
    logits = jnp.sum(g, axis=1, keepdims=True)            # [N, 1]
    # exact sigmoid: approx reciprocal could exceed 1.0 for tiny exp(-x)
    o_ref[...] = 1.0 / (1.0 + jnp.exp(-logits))


# ---------------------------------------------------------------------------
# pallas_call wrappers
# ---------------------------------------------------------------------------
def _check_fused_fit(M, K, C):
    bytes_needed = (M * K) * 2 * 2 + (M * C) * (4 + 2) + (K * C) * 2
    assert bytes_needed < FUSED_VMEM_BUDGET, (
        "fused conv+BN layer too large for single-step VMEM residency; "
        "re-introduce M tiling with a stats/affine split for this size")


def conv_lrelu(patches, w, out_dtype=jnp.bfloat16):
    """Layer 0.  2-way 'parallel' M grid so both v7x TensorCores have work."""
    M, K = patches.shape
    C = w.shape[1]
    nm = 2 if M % 16 == 0 else 1
    tm = M // nm
    return pl.pallas_call(
        _conv_lrelu_kernel,
        out_shape=jax.ShapeDtypeStruct((M, C), out_dtype),
        grid=(nm,),
        in_specs=[pl.BlockSpec((tm, K), lambda i: (i, 0)),
                  pl.BlockSpec((K, C), lambda i: (0, 0))],
        out_specs=pl.BlockSpec((tm, C), lambda i: (i, 0)),
        compiler_params=pltpu.CompilerParams(
            dimension_semantics=("parallel",)),
    )(patches, w)


def conv_bn_lrelu(patches, w, gamma_beta, out_dtype=jnp.bfloat16):
    """Layers 1..2: the whole layer fits in VMEM for one grid step, so conv,
    exact batch statistics, affine and LeakyReLU all happen in one call and
    only the bf16 activation leaves the kernel."""
    M, K = patches.shape
    C = w.shape[1]
    _check_fused_fit(M, K, C)
    return pl.pallas_call(
        functools.partial(_conv_bn_lrelu_kernel, inv_m=1.0 / M),
        out_shape=jax.ShapeDtypeStruct((M, C), out_dtype),
    )(patches, w, gamma_beta)


def conv_bn_lrelu_sigmoid_head(patches, w, gamma_beta, w4_tiled, sel):
    """Layer 3 + layer 4 (1x1 output) + sigmoid -> [N, 1] float32."""
    M, K = patches.shape
    C = w.shape[1]
    _check_fused_fit(M, K, C)
    N = sel.shape[0]
    return pl.pallas_call(
        functools.partial(_conv_bn_lrelu_head_kernel, inv_m=1.0 / M),
        out_shape=jax.ShapeDtypeStruct((N, 1), jnp.float32),
    )(patches, w, gamma_beta, w4_tiled, sel)


# ---------------------------------------------------------------------------
# Glue: im2col patch extraction (plain JAX, bf16)
# ---------------------------------------------------------------------------
def im2col(x_nhwc, k, stride, pad):
    # TODO(synk): fold this patch gather into the conv kernels (it amplifies
    # input HBM traffic k^2/stride^2 = 4x); kept in XLA for lowering safety.
    N, H, W, C = x_nhwc.shape
    xp = jnp.pad(x_nhwc, ((0, 0), (pad, pad), (pad, pad), (0, 0)))
    Ho = (H + 2 * pad - k) // stride + 1
    Wo = (W + 2 * pad - k) // stride + 1
    cols = []
    for kh in range(k):
        for kw in range(k):
            cols.append(
                xp[:, kh:kh + (Ho - 1) * stride + 1:stride,
                      kw:kw + (Wo - 1) * stride + 1:stride, :])
    p = jnp.stack(cols, axis=3)                        # [N, Ho, Wo, k*k, C]
    return p.reshape(N * Ho * Wo, k * k * C), (N, Ho, Wo)


# ---------------------------------------------------------------------------
# Parameter init (deterministic, matches module shapes & init distributions)
# ---------------------------------------------------------------------------
def init_params(ndf, key):
    channels_in = [3, ndf, ndf * 2, ndf * 4, ndf * 8]
    channels_out = [ndf, ndf * 2, ndf * 4, ndf * 8, 1]
    params = {"conv": [], "gb": []}
    for i in range(5):
        key, k1, k2 = jax.random.split(key, 3)
        # conv weight ~ N(0, 0.02), stored as [kh, kw, cin, cout]
        w = 0.02 * jax.random.normal(
            k1, (4, 4, channels_in[i], channels_out[i]), jnp.float32)
        if i < 4:
            # -> [16*cin, cout], bf16 for the MXU kernels
            params["conv"].append(
                w.reshape(16 * channels_in[i],
                          channels_out[i]).astype(jnp.bfloat16))
        else:
            # final conv: 4x4 map -> 1x1 output; per-position row-dot weight
            params["conv"].append(w[:, :, :, 0].reshape(16, channels_in[i]))
        # BatchNorm gamma ~ N(1, 0.02), beta = 0 (used only for layers 1..3)
        gamma = 1.0 + 0.02 * jax.random.normal(k2, (channels_out[i],),
                                               jnp.float32)
        beta = jnp.zeros((channels_out[i],), jnp.float32)
        params["gb"].append(jnp.stack([gamma, beta], axis=0))     # [2, C]
    return params


# ---------------------------------------------------------------------------
# Forward pass
# ---------------------------------------------------------------------------
def discriminator_forward(x_nchw, params):
    N = x_nchw.shape[0]
    x = jnp.transpose(x_nchw, (0, 2, 3, 1)).astype(jnp.bfloat16)  # NCHW->NHWC

    # ---- layer 0: conv + LeakyReLU (no BN), 2-way parallel M grid ----------
    patches, (nb, ho, wo) = im2col(x, 4, 2, 1)
    x = conv_lrelu(patches, params["conv"][0]).reshape(nb, ho, wo, -1)

    # ---- layers 1..2: fused conv + BN(batch stats) + LeakyReLU -------------
    for li in (1, 2):
        patches, (nb, ho, wo) = im2col(x, 4, 2, 1)
        x = conv_bn_lrelu(patches, params["conv"][li],
                          params["gb"][li]).reshape(nb, ho, wo, -1)

    # ---- layer 3 (+BN+LeakyReLU) fused with layer 4 (4x4 conv on the 4x4
    # map -> 1x1) and the sigmoid; only the [N, 1] result is written to HBM.
    patches, (nb, ho, wo) = im2col(x, 4, 2, 1)
    hw = ho * wo                       # == 16 for the canonical 64x64 geometry
    w4 = params["conv"][4]             # [16, 8*ndf] f32
    assert hw == w4.shape[0], "final 4x4 conv expects a 4x4 feature map"
    w4_tiled = jnp.tile(w4, (nb, 1))                                 # [N*hw, C]
    sel = (jnp.arange(nb * hw, dtype=jnp.int32)[None, :] // hw
           == jnp.arange(nb, dtype=jnp.int32)[:, None]).astype(jnp.float32)
    out = conv_bn_lrelu_sigmoid_head(patches, params["conv"][3],
                                     params["gb"][3], w4_tiled, sel)
    return out                         # [N, 1] == out.view(N, -1)


if __name__ == "__main__":
    ndf = 8
    key = jax.random.PRNGKey(0)
    key, kx, kp = jax.random.split(key, 3)
    # DCGAN discriminator geometry requires 64x64 input (64->32->16->8->4->1x1)
    x = jax.random.normal(kx, (2, 3, 64, 64), jnp.float32)
    params = init_params(ndf, kp)

    fwd = jax.jit(discriminator_forward)
    out = jax.block_until_ready(fwd(x, params))

    assert out.shape == (2, 1), out.shape
    assert bool(jnp.all(jnp.isfinite(out)))
    assert bool(jnp.all((out >= 0.0) & (out <= 1.0)))   # sigmoid output range
    print("KERNEL_OK")
</pallas_src>

<mosaic_0001>
module attributes {stable_mosaic.version = 11 : i64} {
  func.func @_conv_lrelu_kernel(%arg0: i32, %arg1: memref<1024x48xbf16, #tpu.memory_space<vmem>>, %arg2: memref<48x8xbf16, #tpu.memory_space<vmem>>, %arg3: memref<1024x8xbf16, #tpu.memory_space<vmem>>) attributes {dimension_semantics = [#tpu.dimension_semantics<parallel>], iteration_bounds = array<i64: 2>, scalar_prefetch = 0 : i64, scratch_operands = 0 : i64, tpu.core_type = #tpu.core_type<tc>, window_params = [{transform_indices = @transform_0, window_bounds = array<i64: 1024, 48>}, {pipeline_mode = #tpu.pipeline_mode<synchronous>, transform_indices = @transform_1, window_bounds = array<i64: 48, 8>}, {transform_indices = @transform_2, window_bounds = array<i64: 1024, 8>}]} {
    %c0 = arith.constant 0 : index
    %c0_0 = arith.constant 0 : index
    %0 = vector.load %arg1[%c0, %c0_0] : memref<1024x48xbf16, #tpu.memory_space<vmem>>, vector<1024x48xbf16>
    %c0_1 = arith.constant 0 : index
    %c0_2 = arith.constant 0 : index
    %1 = vector.load %arg2[%c0_1, %c0_2] : memref<48x8xbf16, #tpu.memory_space<vmem>>, vector<48x8xbf16>
    %cst = arith.constant dense<0.000000e+00> : vector<1024x8xf32>
    %2 = tpu.matmul %0, %1, %cst {dimension_numbers = #tpu.dot_dimension_numbers<[1], [0], [0], [1], [0, 0, 1, 1], [], []>} : vector<1024x48xbf16>, vector<48x8xbf16>, vector<1024x8xf32> -> vector<1024x8xf32>
    %cst_3 = arith.constant 0.000000e+00 : f32
    %3 = vector.broadcast %cst_3 : f32 to vector<1024x8xf32>
    %4 = arith.cmpf oge, %2, %3 : vector<1024x8xf32>
    %cst_4 = arith.constant 2.000000e-01 : f32
    %5 = vector.broadcast %cst_4 : f32 to vector<1024x8xf32>
    %6 = arith.mulf %5, %2 : vector<1024x8xf32>
    %7 = arith.select %4, %2, %6 : vector<1024x8xi1>, vector<1024x8xf32>
    %8 = arith.truncf %7 : vector<1024x8xf32> to vector<1024x8xbf16>
    %c0_5 = arith.constant 0 : index
    %c0_6 = arith.constant 0 : index
    %9 = vector.load %arg3[%c0_5, %c0_6] : memref<1024x8xbf16, #tpu.memory_space<vmem>>, vector<1024x8xbf16>
    tpu.vector_store %arg3[%c0_5, %c0_6], %8 {strides = array<i32>} : memref<1024x8xbf16, #tpu.memory_space<vmem>>, vector<1024x8xbf16>,
    return
  }
  func.func @transform_0(%arg0: i32) -> (i32, i32) {
    %c0_i32 = arith.constant 0 : i32
    %c0_i32_0 = arith.constant 0 : i32
    return %arg0, %c0_i32 : i32, i32
  }
  func.func @transform_1(%arg0: i32) -> (i32, i32) {
    %c0_i32 = arith.constant 0 : i32
    %c0_i32_0 = arith.constant 0 : i32
    %c0_i32_1 = arith.constant 0 : i32
    return %c0_i32, %c0_i32_0 : i32, i32
  }
  func.func @transform_2(%arg0: i32) -> (i32, i32) {
    %c0_i32 = arith.constant 0 : i32
    %c0_i32_0 = arith.constant 0 : i32
    return %arg0, %c0_i32 : i32, i32
  }
}

module attributes {stable_mosaic.version = 11 : i64} {
  func.func @_conv_bn_lrelu_kernel(%arg0: memref<512x128xbf16, #tpu.memory_space<vmem>>, %arg1: memref<128x16xbf16, #tpu.memory_space<vmem>>, %arg2: memref<2x16xf32, #tpu.memory_space<vmem>>, %arg3: memref<512x16xbf16, #tpu.memory_space<vmem>>) attributes {dimension_semantics = [], scalar_prefetch = 0 : i64, scratch_operands = 0 : i64, tpu.core_type = #tpu.core_type<tc>} {
    %c0 = arith.constant 0 : index
    %c0_0 = arith.constant 0 : index
    %0 = vector.load %arg0[%c0, %c0_0] : memref<512x128xbf16, #tpu.memory_space<vmem>>, vector<512x128xbf16>
    %c0_1 = arith.constant 0 : index
    %c0_2 = arith.constant 0 : index
    %1 = vector.load %arg1[%c0_1, %c0_2] : memref<128x16xbf16, #tpu.memory_space<vmem>>, vector<128x16xbf16>
    %cst = arith.constant dense<0.000000e+00> : vector<512x16xf32>
    %2 = tpu.matmul %0, %1, %cst {dimension_numbers = #tpu.dot_dimension_numbers<[1], [0], [0], [1], [0, 0, 1, 1], [], []>} : vector<512x128xbf16>, vector<128x16xbf16>, vector<512x16xf32> -> vector<512x16xf32>
    %cst_3 = arith.constant dense<0.000000e+00> : vector<16xf32>
    %3 = vector.multi_reduction <add>, %2, %cst_3 [0] : vector<512x16xf32> to vector<16xf32>
    %4 = vector.shape_cast %3 : vector<16xf32> to vector<1x16xf32>
    %cst_4 = arith.constant 0.001953125 : f32
    %5 = vector.broadcast %cst_4 : f32 to vector<1x16xf32>
    %6 = arith.mulf %4, %5 : vector<1x16xf32>
    %7 = vector.broadcast %6 : vector<1x16xf32> to vector<512x16xf32>
    %8 = arith.subf %2, %7 : vector<512x16xf32>
    %9 = arith.mulf %8, %8 : vector<512x16xf32>
    %cst_5 = arith.constant dense<0.000000e+00> : vector<16xf32>
    %10 = vector.multi_reduction <add>, %9, %cst_5 [0] : vector<512x16xf32> to vector<16xf32>
    %11 = vector.shape_cast %10 : vector<16xf32> to vector<1x16xf32>
    %cst_6 = arith.constant 0.001953125 : f32
    %12 = vector.broadcast %cst_6 : f32 to vector<1x16xf32>
    %13 = arith.mulf %11, %12 : vector<1x16xf32>
    %c0_7 = arith.constant 0 : index
    %c0_8 = arith.constant 0 : index
    %14 = vector.load %arg2[%c0_7, %c0_8] : memref<2x16xf32, #tpu.memory_space<vmem>>, vector<1x16xf32>
    %cst_9 = arith.constant 9.99999974E-6 : f32
    %15 = vector.broadcast %cst_9 : f32 to vector<1x16xf32>
    %16 = arith.addf %13, %15 : vector<1x16xf32>
    %17 = math.rsqrt %16 : vector<1x16xf32>
    %18 = arith.mulf %14, %17 : vector<1x16xf32>
    %19 = vector.broadcast %18 : vector<1x16xf32> to vector<512x16xf32>
    %20 = arith.mulf %8, %19 : vector<512x16xf32>
    %c1 = arith.constant 1 : index
    %c0_10 = arith.constant 0 : index
    %21 = vector.load %arg2[%c1, %c0_10] : memref<2x16xf32, #tpu.memory_space<vmem>>, vector<1x16xf32>
    %22 = vector.broadcast %21 : vector<1x16xf32> to vector<512x16xf32>
    %23 = arith.addf %20, %22 : vector<512x16xf32>
    %cst_11 = arith.constant 0.000000e+00 : f32
    %24 = vector.broadcast %cst_11 : f32 to vector<512x16xf32>
    %25 = arith.cmpf oge, %23, %24 : vector<512x16xf32>
    %cst_12 = arith.constant 2.000000e-01 : f32
    %26 = vector.broadcast %cst_12 : f32 to vector<512x16xf32>
    %27 = arith.mulf %26, %23 : vector<512x16xf32>
    %28 = arith.select %25, %23, %27 : vector<512x16xi1>, vector<512x16xf32>
    %29 = arith.truncf %28 : vector<512x16xf32> to vector<512x16xbf16>
    %c0_13 = arith.constant 0 : index
    %c0_14 = arith.constant 0 : index
    %30 = vector.load %arg3[%c0_13, %c0_14] : memref<512x16xbf16, #tpu.memory_space<vmem>>, vector<512x16xbf16>
    tpu.vector_store %arg3[%c0_13, %c0_14], %29 {strides = array<i32>} : memref<512x16xbf16, #tpu.memory_space<vmem>>, vector<512x16xbf16>,
    return
  }
}

module attributes {stable_mosaic.version = 11 : i64} {
  func.func @_conv_bn_lrelu_kernel(%arg0: memref<128x256xbf16, #tpu.memory_space<vmem>>, %arg1: memref<256x32xbf16, #tpu.memory_space<vmem>>, %arg2: memref<2x32xf32, #tpu.memory_space<vmem>>, %arg3: memref<128x32xbf16, #tpu.memory_space<vmem>>) attributes {dimension_semantics = [], scalar_prefetch = 0 : i64, scratch_operands = 0 : i64, tpu.core_type = #tpu.core_type<tc>} {
    %c0 = arith.constant 0 : index
    %c0_0 = arith.constant 0 : index
    %0 = vector.load %arg0[%c0, %c0_0] : memref<128x256xbf16, #tpu.memory_space<vmem>>, vector<128x256xbf16>
    %c0_1 = arith.constant 0 : index
    %c0_2 = arith.constant 0 : index
    %1 = vector.load %arg1[%c0_1, %c0_2] : memref<256x32xbf16, #tpu.memory_space<vmem>>, vector<256x32xbf16>
    %cst = arith.constant dense<0.000000e+00> : vector<128x32xf32>
    %2 = tpu.matmul %0, %1, %cst {dimension_numbers = #tpu.dot_dimension_numbers<[1], [0], [0], [1], [0, 0, 1, 1], [], []>} : vector<128x256xbf16>, vector<256x32xbf16>, vector<128x32xf32> -> vector<128x32xf32>
    %cst_3 = arith.constant dense<0.000000e+00> : vector<32xf32>
    %3 = vector.multi_reduction <add>, %2, %cst_3 [0] : vector<128x32xf32> to vector<32xf32>
    %4 = vector.shape_cast %3 : vector<32xf32> to vector<1x32xf32>
    %cst_4 = arith.constant 7.812500e-03 : f32
    %5 = vector.broadcast %cst_4 : f32 to vector<1x32xf32>
    %6 = arith.mulf %4, %5 : vector<1x32xf32>
    %7 = vector.broadcast %6 : vector<1x32xf32> to vector<128x32xf32>
    %8 = arith.subf %2, %7 : vector<128x32xf32>
    %9 = arith.mulf %8, %8 : vector<128x32xf32>
    %cst_5 = arith.constant dense<0.000000e+00> : vector<32xf32>
    %10 = vector.multi_reduction <add>, %9, %cst_5 [0] : vector<128x32xf32> to vector<32xf32>
    %11 = vector.shape_cast %10 : vector<32xf32> to vector<1x32xf32>
    %cst_6 = arith.constant 7.812500e-03 : f32
    %12 = vector.broadcast %cst_6 : f32 to vector<1x32xf32>
    %13 = arith.mulf %11, %12 : vector<1x32xf32>
    %c0_7 = arith.constant 0 : index
    %c0_8 = arith.constant 0 : index
    %14 = vector.load %arg2[%c0_7, %c0_8] : memref<2x32xf32, #tpu.memory_space<vmem>>, vector<1x32xf32>
    %cst_9 = arith.constant 9.99999974E-6 : f32
    %15 = vector.broadcast %cst_9 : f32 to vector<1x32xf32>
    %16 = arith.addf %13, %15 : vector<1x32xf32>
    %17 = math.rsqrt %16 : vector<1x32xf32>
    %18 = arith.mulf %14, %17 : vector<1x32xf32>
    %19 = vector.broadcast %18 : vector<1x32xf32> to vector<128x32xf32>
    %20 = arith.mulf %8, %19 : vector<128x32xf32>
    %c1 = arith.constant 1 : index
    %c0_10 = arith.constant 0 : index
    %21 = vector.load %arg2[%c1, %c0_10] : memref<2x32xf32, #tpu.memory_space<vmem>>, vector<1x32xf32>
    %22 = vector.broadcast %21 : vector<1x32xf32> to vector<128x32xf32>
    %23 = arith.addf %20, %22 : vector<128x32xf32>
    %cst_11 = arith.constant 0.000000e+00 : f32
    %24 = vector.broadcast %cst_11 : f32 to vector<128x32xf32>
    %25 = arith.cmpf oge, %23, %24 : vector<128x32xf32>
    %cst_12 = arith.constant 2.000000e-01 : f32
    %26 = vector.broadcast %cst_12 : f32 to vector<128x32xf32>
    %27 = arith.mulf %26, %23 : vector<128x32xf32>
    %28 = arith.select %25, %23, %27 : vector<128x32xi1>, vector<128x32xf32>
    %29 = arith.truncf %28 : vector<128x32xf32> to vector<128x32xbf16>
    %c0_13 = arith.constant 0 : index
    %c0_14 = arith.constant 0 : index
    %30 = vector.load %arg3[%c0_13, %c0_14] : memref<128x32xbf16, #tpu.memory_space<vmem>>, vector<128x32xbf16>
    tpu.vector_store %arg3[%c0_13, %c0_14], %29 {strides = array<i32>} : memref<128x32xbf16, #tpu.memory_space<vmem>>, vector<128x32xbf16>,
    return
  }
}

module attributes {stable_mosaic.version = 11 : i64} {
  func.func @_conv_bn_lrelu_head_kernel(%arg0: memref<32x512xbf16, #tpu.memory_space<vmem>>, %arg1: memref<512x64xbf16, #tpu.memory_space<vmem>>, %arg2: memref<2x64xf32, #tpu.memory_space<vmem>>, %arg3: memref<32x64xf32, #tpu.memory_space<vmem>>, %arg4: memref<2x32xf32, #tpu.memory_space<vmem>>, %arg5: memref<2x1xf32, #tpu.memory_space<vmem>>) attributes {dimension_semantics = [], scalar_prefetch = 0 : i64, scratch_operands = 0 : i64, tpu.core_type = #tpu.core_type<tc>} {
    %c0 = arith.constant 0 : index
    %c0_0 = arith.constant 0 : index
    %0 = vector.load %arg0[%c0, %c0_0] : memref<32x512xbf16, #tpu.memory_space<vmem>>, vector<32x512xbf16>
    %c0_1 = arith.constant 0 : index
    %c0_2 = arith.constant 0 : index
    %1 = vector.load %arg1[%c0_1, %c0_2] : memref<512x64xbf16, #tpu.memory_space<vmem>>, vector<512x64xbf16>
    %cst = arith.constant dense<0.000000e+00> : vector<32x64xf32>
    %2 = tpu.matmul %0, %1, %cst {dimension_numbers = #tpu.dot_dimension_numbers<[1], [0], [0], [1], [0, 0, 1, 1], [], []>} : vector<32x512xbf16>, vector<512x64xbf16>, vector<32x64xf32> -> vector<32x64xf32>
    %cst_3 = arith.constant dense<0.000000e+00> : vector<64xf32>
    %3 = vector.multi_reduction <add>, %2, %cst_3 [0] : vector<32x64xf32> to vector<64xf32>
    %4 = vector.shape_cast %3 : vector<64xf32> to vector<1x64xf32>
    %cst_4 = arith.constant 3.125000e-02 : f32
    %5 = vector.broadcast %cst_4 : f32 to vector<1x64xf32>
    %6 = arith.mulf %4, %5 : vector<1x64xf32>
    %7 = vector.broadcast %6 : vector<1x64xf32> to vector<32x64xf32>
    %8 = arith.subf %2, %7 : vector<32x64xf32>
    %9 = arith.mulf %8, %8 : vector<32x64xf32>
    %cst_5 = arith.constant dense<0.000000e+00> : vector<64xf32>
    %10 = vector.multi_reduction <add>, %9, %cst_5 [0] : vector<32x64xf32> to vector<64xf32>
    %11 = vector.shape_cast %10 : vector<64xf32> to vector<1x64xf32>
    %cst_6 = arith.constant 3.125000e-02 : f32
    %12 = vector.broadcast %cst_6 : f32 to vector<1x64xf32>
    %13 = arith.mulf %11, %12 : vector<1x64xf32>
    %c0_7 = arith.constant 0 : index
    %c0_8 = arith.constant 0 : index
    %14 = vector.load %arg2[%c0_7, %c0_8] : memref<2x64xf32, #tpu.memory_space<vmem>>, vector<1x64xf32>
    %cst_9 = arith.constant 9.99999974E-6 : f32
    %15 = vector.broadcast %cst_9 : f32 to vector<1x64xf32>
    %16 = arith.addf %13, %15 : vector<1x64xf32>
    %17 = math.rsqrt %16 : vector<1x64xf32>
    %18 = arith.mulf %14, %17 : vector<1x64xf32>
    %19 = vector.broadcast %18 : vector<1x64xf32> to vector<32x64xf32>
    %20 = arith.mulf %8, %19 : vector<32x64xf32>
    %c1 = arith.constant 1 : index
    %c0_10 = arith.constant 0 : index
    %21 = vector.load %arg2[%c1, %c0_10] : memref<2x64xf32, #tpu.memory_space<vmem>>, vector<1x64xf32>
    %22 = vector.broadcast %21 : vector<1x64xf32> to vector<32x64xf32>
    %23 = arith.addf %20, %22 : vector<32x64xf32>
    %cst_11 = arith.constant 0.000000e+00 : f32
    %24 = vector.broadcast %cst_11 : f32 to vector<32x64xf32>
    %25 = arith.cmpf oge, %23, %24 : vector<32x64xf32>
    %cst_12 = arith.constant 2.000000e-01 : f32
    %26 = vector.broadcast %cst_12 : f32 to vector<32x64xf32>
    %27 = arith.mulf %26, %23 : vector<32x64xf32>
    %28 = arith.select %25, %23, %27 : vector<32x64xi1>, vector<32x64xf32>
    %c0_13 = arith.constant 0 : index
    %c0_14 = arith.constant 0 : index
    %29 = vector.load %arg4[%c0_13, %c0_14] : memref<2x32xf32, #tpu.memory_space<vmem>>, vector<2x32xf32>
    %c0_15 = arith.constant 0 : index
    %c0_16 = arith.constant 0 : index
    %30 = vector.load %arg3[%c0_15, %c0_16] : memref<32x64xf32, #tpu.memory_space<vmem>>, vector<32x64xf32>
    %31 = arith.mulf %28, %30 : vector<32x64xf32>
    %cst_17 = arith.constant dense<0.000000e+00> : vector<2x64xf32>
    %32 = tpu.matmul %29, %31, %cst_17 {dimension_numbers = #tpu.dot_dimension_numbers<[1], [0], [0], [1], [0, 0, 1, 1], [], []>} : vector<2x32xf32>, vector<32x64xf32>, vector<2x64xf32> -> vector<2x64xf32>
    %cst_18 = arith.constant dense<0.000000e+00> : vector<2xf32>
    %33 = vector.multi_reduction <add>, %32, %cst_18 [1] : vector<2x64xf32> to vector<2xf32>
    %34 = vector.shape_cast %33 : vector<2xf32> to vector<2x1xf32>
    %cst_19 = arith.constant 0.000000e+00 : f32
    %35 = vector.broadcast %cst_19 : f32 to vector<2x1xf32>
    %36 = arith.subf %35, %34 : vector<2x1xf32>
    %37 = math.exp %36 : vector<2x1xf32>
    %cst_20 = arith.constant 1.000000e+00 : f32
    %38 = vector.broadcast %cst_20 : f32 to vector<2x1xf32>
    %39 = arith.addf %38, %37 : vector<2x1xf32>
    %cst_21 = arith.constant 1.000000e+00 : f32
    %40 = vector.broadcast %cst_21 : f32 to vector<2x1xf32>
    %41 = arith.divf %40, %39 : vector<2x1xf32>
    %c0_22 = arith.constant 0 : index
    %c0_23 = arith.constant 0 : index
    %42 = vector.load %arg5[%c0_22, %c0_23] : memref<2x1xf32, #tpu.memory_space<vmem>>, vector<2x1xf32>
    tpu.vector_store %arg5[%c0_22, %c0_23], %41 {strides = array<i32>} : memref<2x1xf32, #tpu.memory_space<vmem>>, vector<2x1xf32>,
    return
  }
}

</mosaic_0001>

<bundles_post_ra>
// kernel: discriminator_forward.4
= control target key start
LH: loop header
LB: loop body
LE: loop exit
PB: predicated region body
PF: predicated region fallthrough
CT: control target
= control target key end

     0   :  { %s3142_s9 = smov 0   ;;  %s3564_s0 = inlined_call_operand.vmem [shape: bf16[2048,48], index: 0, kind: input, shape index: {}]   ;;  %s3565_s1 = inlined_call_operand.vmem [shape: bf16[48,8], index: 1, kind: input, shape index: {}]   ;;  %s3566_s2 = inlined_call_operand.vmem [shape: bf16[2048,8], index: 2, kind: output, shape index: {}]  }
   0x1 LB: > { %s2439_s10 = sadd.s32 4294967295, %s3125_s9   ;;  %p2443_p0 = scmp.ge.s32.totalorder %s3125_s9, 1  ;;  %s3125_s9 = sphi %s3142_s9, %s12_s9  }
   0x2   : > { %p113_p1 = scmp.lt.s32.totalorder %s3125_s9, 3 }
   0x4   : > { %p114_p2 = pnand %p2443_p0, %p113_p1 }
   0x5   : > { %v3052_v0 = vld [vmem:[%s3565_s1] sm:$0xff] (!%p114_p2)   ;;  %s2444_s13 = sshll.u32 (!%p114_p2), %s2439_s10, 7  ;;  %v3053_v1 = vld [vmem:[%s3565_s1 + $0x8] sm:$0xff] (!%p114_p2)   ;;  %v3054_v2 = vld [vmem:[%s3565_s1 + $0x10] sm:$0xff] (!%p114_p2)   ;;  %vm620_vm0 = vcmask (!%p114_p2), 392192   ;;  %vm2254_vm3 = vcmask (!%p114_p2), 60416  }
   0x6   : > { %117 = sbr.rel (%p114_p2) target bundleno = 366 (0x16e), region = 28  ;;  %p136_p3 = scmp.lt.s32.totalorder (!%p114_p2), %s2444_s13, 255  ;;  %2904 = vmatprep.subr.bf16.mxu0 (!%p114_p2), %v3052_v0  ;;  %3038 = vmatprep.subr.bf16.mxu1 (!%p114_p2), %v3052_v0 }
   0x7   : > { %2905 = vmatpush3.bf16.msra.mxu0 (!%p114_p2), %v3052_v0  ;;  %3041 = vmatpush3.bf16.msra.mxu1 (!%p114_p2), %v3052_v0 }
   0x8   : > { %2906 = vmatprep.subr.bf16.mxu0 (!%p114_p2), %v3053_v1  ;;  %3039 = vmatprep.subr.bf16.mxu1 (!%p114_p2), %v3053_v1 }
   0xb   : > { %2907 = vmatpush3.bf16.msra.mxu0 (!%p114_p2), %v3053_v1  ;;  %3042 = vmatpush3.bf16.msra.mxu1 (!%p114_p2), %v3053_v1 }
   0xc   : > { %2908 = vmatprep.subr.bf16.mxu0 (!%p114_p2), %v3054_v2  ;;  %3040 = vmatprep.subr.bf16.mxu1 (!%p114_p2), %v3054_v2 }
   0xd   : > { %s3568_s13 = smov (!%p136_p3, %s2444_s13), 255 }
   0xe   : > { %s2445_s18 = sshll.u32 %s3568_s13, 2 }
   0xf   : > { %s3167_s21 = scalar_lea.vmem %s3564_s0, %s2445_s18  ;;  %2909 = vmatpush3.bf16.msra.mxu0 %v3054_v2  ;;  %3043 = vmatpush3.bf16.msra.mxu1 %v3054_v2  ;;  %s3302_s24 = scalar_lea.vmem %s3566_s2, %s2445_s18 }
  0x10   : > { %v3055_v3 = vld [vmem:[%s3167_s21] sm:$0xff]   ;;  %v3057_v5 = vld [vmem:[%s3167_s21 + $0x8] sm:$0xff]   ;;  %v3059_v7 = vld [vmem:[%s3167_s21 + $0x10] sm:$0xff]  }
  0x11   : > { %v3056_v4 = vld [vmem:[%s3167_s21 + $0x100] sm:$0xff]   ;;  %2910 = vmatprep.mubr.msk.bf16.mxu0 %vm620_vm0, %v3055_v3  ;;  %v3058_v6 = vld [vmem:[%s3167_s21 + $0x108] sm:$0xff]   ;;  %v3060_v8 = vld [vmem:[%s3167_s21 + $0x110] sm:$0xff]  }
  0x12   : > { %2974 = vmatprep.mubr.msk.bf16.mxu1 %vm620_vm0, %v3056_v4  ;;  %2911 = vmatmul.mubr.msk.bf16.vlgmr.msra.gmra.mrb[0].mxu0 %vm620_vm0, %v3057_v5  ;;  %v3061_v9 = vld [vmem:[%s3167_s21 + $0x18] sm:$0xff]   ;;  %v3063_v11 = vld [vmem:[%s3167_s21 + $0x20] sm:$0xff]   ;;  %v3065_v13 = vld [vmem:[%s3167_s21 + $0x28] sm:$0xff]  }
  0x13   : > { %2975 = vmatmul.mubr.msk.bf16.vlgmr.msra.gmra.mrb[0].mxu1 %vm620_vm0, %v3058_v6  ;;  %2914 = vmatprep.mubr.msk.bf16.mxu0 %vm620_vm0, %v3059_v7  ;;  %v3062_v10 = vld [vmem:[%s3167_s21 + $0x118] sm:$0xff]   ;;  %v3064_v12 = vld [vmem:[%s3167_s21 + $0x120] sm:$0xff]   ;;  %v3066_v14 = vld [vmem:[%s3167_s21 + $0x128] sm:$0xff]  }
  0x14   : > { %2978 = vmatprep.mubr.msk.bf16.mxu1 %vm620_vm0, %v3060_v8  ;;  %v3067_v15 = vld [vmem:[%s3167_s21 + $0x30] sm:$0xff]   ;;  %v3069_v17 = vld [vmem:[%s3167_s21 + $0x38] sm:$0xff]   ;;  %v3071_v19 = vld [vmem:[%s3167_s21 + $0x40] sm:$0xff]  }
  0x15   : > { %v3068_v16 = vld [vmem:[%s3167_s21 + $0x130] sm:$0xff]   ;;  %v3070_v18 = vld [vmem:[%s3167_s21 + $0x138] sm:$0xff]   ;;  %v3072_v20 = vld [vmem:[%s3167_s21 + $0x140] sm:$0xff]  }
  0x16   : > { %v3073_v21 = vld [vmem:[%s3167_s21 + $0x48] sm:$0xff]   ;;  %v3075_v23 = vld [vmem:[%s3167_s21 + $0x50] sm:$0xff]   ;;  %v3077_v25 = vld [vmem:[%s3167_s21 + $0x58] sm:$0xff]  }
  0x17   : > { %v3074_v22 = vld [vmem:[%s3167_s21 + $0x148] sm:$0xff]   ;;  %v3076_v24 = vld [vmem:[%s3167_s21 + $0x150] sm:$0xff]   ;;  %v3078_v26 = vld [vmem:[%s3167_s21 + $0x158] sm:$0xff]  }
  0x18   : > { %v3079_v27 = vld [vmem:[%s3167_s21 + $0x60] sm:$0xff]   ;;  %v3081_v29 = vld [vmem:[%s3167_s21 + $0x68] sm:$0xff]   ;;  %v3083_v31 = vld [vmem:[%s3167_s21 + $0x70] sm:$0xff]  }
  0x19   : > { %v3080_v28 = vld [vmem:[%s3167_s21 + $0x160] sm:$0xff]   ;;  %v3082_v30 = vld [vmem:[%s3167_s21 + $0x168] sm:$0xff]   ;;  %v3084_v32 = vld [vmem:[%s3167_s21 + $0x170] sm:$0xff]  }
  0x1a   : > { %2915 = vmatmul.mubr.msk.bf16.gmra.mrb[4].mxu0 %vm620_vm0, %v3061_v9  ;;  %v3085_v33 = vld [vmem:[%s3167_s21 + $0x78] sm:$0xff]   ;;  %v3087_v35 = vld [vmem:[%s3167_s21 + $0x80] sm:$0xff]   ;;  %v3089_v37 = vld [vmem:[%s3167_s21 + $0x88] sm:$0xff]  }
  0x1b   : > { %2979 = vmatmul.mubr.msk.bf16.gmra.mrb[4].mxu1 %vm620_vm0, %v3062_v10  ;;  %2918 = vmatprep.mubr.msk.bf16.mxu0 %vm620_vm0, %v3063_v11  ;;  %v3086_v34 = vld [vmem:[%s3167_s21 + $0x178] sm:$0xff]   ;;  %v3088_v36 = vld [vmem:[%s3167_s21 + $0x180] sm:$0xff]   ;;  %v3090_v38 = vld [vmem:[%s3167_s21 + $0x188] sm:$0xff]  }
  0x1c   : > { %2982 = vmatprep.mubr.msk.bf16.mxu1 %vm620_vm0, %v3064_v12  ;;  %v3091_v39 = vld [vmem:[%s3167_s21 + $0x90] sm:$0xff]   ;;  %v3093_v41 = vld [vmem:[%s3167_s21 + $0x98] sm:$0xff]   ;;  %v3095_v43 = vld [vmem:[%s3167_s21 + $0xa0] sm:$0xff]  }
  0x1d   : > { %v3092_v40 = vld [vmem:[%s3167_s21 + $0x190] sm:$0xff]   ;;  %v3094_v42 = vld [vmem:[%s3167_s21 + $0x198] sm:$0xff]   ;;  %v3096_v44 = vld [vmem:[%s3167_s21 + $0x1a0] sm:$0xff]  }
  0x1e   : > { %v3097_v45 = vld [vmem:[%s3167_s21 + $0xa8] sm:$0xff]   ;;  %v3099_v47 = vld [vmem:[%s3167_s21 + $0xb0] sm:$0xff]   ;;  %v3101_v49 = vld [vmem:[%s3167_s21 + $0xb8] sm:$0xff]  }
  0x1f   : > { %v3098_v46 = vld [vmem:[%s3167_s21 + $0x1a8] sm:$0xff]   ;;  %v3100_v48 = vld [vmem:[%s3167_s21 + $0x1b0] sm:$0xff]   ;;  %v3102_v50 = vld [vmem:[%s3167_s21 + $0x1b8] sm:$0xff]  }
  0x20   : > { %v3103_v51 = vld [vmem:[%s3167_s21 + $0xc0] sm:$0xff]   ;;  %v3105_v53 = vld [vmem:[%s3167_s21 + $0xc8] sm:$0xff]   ;;  %v3107_v55 = vld [vmem:[%s3167_s21 + $0xd0] sm:$0xff]  }
  0x21   : > { %v3104_v52 = vld [vmem:[%s3167_s21 + $0x1c0] sm:$0xff]   ;;  %v3106_v54 = vld [vmem:[%s3167_s21 + $0x1c8] sm:$0xff]   ;;  %v3108_v56 = vld [vmem:[%s3167_s21 + $0x1d0] sm:$0xff]  }
  0x22   : > { %2919 = vmatmul.mubr.msk.bf16.gmra.mrb[8].mxu0 %vm620_vm0, %v3065_v13  ;;  %v3109_v57 = vld [vmem:[%s3167_s21 + $0xd8] sm:$0xff]   ;;  %v3111_v59 = vld [vmem:[%s3167_s21 + $0xe0] sm:$0xff]   ;;  %v3113_v61 = vld [vmem:[%s3167_s21 + $0xe8] sm:$0xff]  }
  0x23   : > { %2983 = vmatmul.mubr.msk.bf16.gmra.mrb[8].mxu1 %vm620_vm0, %v3066_v14  ;;  %2922 = vmatprep.mubr.msk.bf16.mxu0 %vm620_vm0, %v3067_v15  ;;  %v3110_v58 = vld [vmem:[%s3167_s21 + $0x1d8] sm:$0xff]   ;;  %v3112_v60 = vld [vmem:[%s3167_s21 + $0x1e0] sm:$0xff]   ;;  %v3114_v62 = vld [vmem:[%s3167_s21 + $0x1e8] sm:$0xff]  }
  0x24   : > { %2986 = vmatprep.mubr.msk.bf16.mxu1 %vm620_vm0, %v3068_v16  ;;  %v3115_v63 = vld [vmem:[%s3167_s21 + $0xf0] sm:$0xff]   ;;  %v3117_v1 = vld [vmem:[%s3167_s21 + $0xf8] sm:$0xff]  }
  0x25   : > { %v3116_v0 = vld [vmem:[%s3167_s21 + $0x1f0] sm:$0xff]   ;;  %v3118_v2 = vld [vmem:[%s3167_s21 + $0x1f8] sm:$0xff]  }
  0x2a   : > { %2923 = vmatmul.mubr.msk.bf16.gmra.mrb[12].mxu0 %vm620_vm0, %v3069_v17 }
  0x2b   : > { %2987 = vmatmul.mubr.msk.bf16.gmra.mrb[12].mxu1 %vm620_vm0, %v3070_v18  ;;  %2926 = vmatprep.mubr.msk.bf16.mxu0 %vm620_vm0, %v3071_v19 }
  0x2c   : > { %2990 = vmatprep.mubr.msk.bf16.mxu1 %vm620_vm0, %v3072_v20 }
  0x32   : > { %2927 = vmatmul.mubr.msk.bf16.gmra.mrb[16].mxu0 %vm620_vm0, %v3073_v21 }
  0x33   : > { %2991 = vmatmul.mubr.msk.bf16.gmra.mrb[16].mxu1 %vm620_vm0, %v3074_v22  ;;  %2930 = vmatprep.mubr.msk.bf16.mxu0 %vm620_vm0, %v3075_v23 }
  0x34   : > { %2994 = vmatprep.mubr.msk.bf16.mxu1 %vm620_vm0, %v3076_v24 }
  0x3a   : > { %2931 = vmatmul.mubr.msk.bf16.gmra.mrb[20].mxu0 %vm620_vm0, %v3077_v25 }
  0x3b   : > { %2995 = vmatmul.mubr.msk.bf16.gmra.mrb[20].mxu1 %vm620_vm0, %v3078_v26  ;;  %2934 = vmatprep.mubr.msk.bf16.mxu0 %vm620_vm0, %v3079_v27 }
  0x3c   : > { %2998 = vmatprep.mubr.msk.bf16.mxu1 %vm620_vm0, %v3080_v28 }
  0x42   : > { %2935 = vmatmul.mubr.msk.bf16.gmra.mrb[24].mxu0 %vm620_vm0, %v3081_v29 }
  0x43   : > { %2999 = vmatmul.mubr.msk.bf16.gmra.mrb[24].mxu1 %vm620_vm0, %v3082_v30  ;;  %2938 = vmatprep.mubr.msk.bf16.mxu0 %vm620_vm0, %v3083_v31 }
  0x44   : > { %3002 = vmatprep.mubr.msk.bf16.mxu1 %vm620_vm0, %v3084_v32 }
  0x4a   : > { %2939 = vmatmul.mubr.msk.bf16.gmra.mrb[28].mxu0 %vm620_vm0, %v3085_v33 }
  0x4b   : > { %3003 = vmatmul.mubr.msk.bf16.gmra.mrb[28].mxu1 %vm620_vm0, %v3086_v34  ;;  %2942 = vmatprep.mubr.msk.bf16.mxu0 %vm620_vm0, %v3087_v35 }
  0x4c   : > { %3006 = vmatprep.mubr.msk.bf16.mxu1 %vm620_vm0, %v3088_v36 }
  0x52   : > { %2943 = vmatmul.mubr.msk.bf16.gmra.mrb[32].mxu0 %vm620_vm0, %v3089_v37 }
  0x53   : > { %3007 = vmatmul.mubr.msk.bf16.gmra.mrb[32].mxu1 %vm620_vm0, %v3090_v38  ;;  %2946 = vmatprep.mubr.msk.bf16.mxu0 %vm620_vm0, %v3091_v39 }
  0x54   : > { %3010 = vmatprep.mubr.msk.bf16.mxu1 %vm620_vm0, %v3092_v40 }
  0x5a   : > { %2947 = vmatmul.mubr.msk.bf16.gmra.mrb[36].mxu0 %vm620_vm0, %v3093_v41 }
  0x5b   : > { %3011 = vmatmul.mubr.msk.bf16.gmra.mrb[36].mxu1 %vm620_vm0, %v3094_v42  ;;  %2950 = vmatprep.mubr.msk.bf16.mxu0 %vm620_vm0, %v3095_v43 }
  0x5c   : > { %3014 = vmatprep.mubr.msk.bf16.mxu1 %vm620_vm0, %v3096_v44 }
  0x62   : > { %2951 = vmatmul.mubr.msk.bf16.gmra.mrb[40].mxu0 %vm620_vm0, %v3097_v45 }
  0x63   : > { %3015 = vmatmul.mubr.msk.bf16.gmra.mrb[40].mxu1 %vm620_vm0, %v3098_v46  ;;  %2954 = vmatprep.mubr.msk.bf16.mxu0 %vm620_vm0, %v3099_v47 }
  0x64   : > { %3018 = vmatprep.mubr.msk.bf16.mxu1 %vm620_vm0, %v3100_v48 }
  0x6a   : > { %2955 = vmatmul.mubr.msk.bf16.gmra.mrb[44].mxu0 %vm620_vm0, %v3101_v49 }
  0x6b   : > { %3019 = vmatmul.mubr.msk.bf16.gmra.mrb[44].mxu1 %vm620_vm0, %v3102_v50  ;;  %2958 = vmatprep.mubr.msk.bf16.mxu0 %vm620_vm0, %v3103_v51 }
  0x6c   : > { %3022 = vmatprep.mubr.msk.bf16.mxu1 %vm620_vm0, %v3104_v52 }
  0x72   : > { %2959 = vmatmul.mubr.msk.bf16.gmra.mrb[48].mxu0 %vm620_vm0, %v3105_v53 }
  0x73   : > { %3023 = vmatmul.mubr.msk.bf16.gmra.mrb[48].mxu1 %vm620_vm0, %v3106_v54  ;;  %2962 = vmatprep.mubr.msk.bf16.mxu0 %vm620_vm0, %v3107_v55 }
  0x74   : > { %3026 = vmatprep.mubr.msk.bf16.mxu1 %vm620_vm0, %v3108_v56 }
  0x7a   : > { %2963 = vmatmul.mubr.msk.bf16.gmra.mrb[52].mxu0 %vm620_vm0, %v3109_v57 }
  0x7b   : > { %3027 = vmatmul.mubr.msk.bf16.gmra.mrb[52].mxu1 %vm620_vm0, %v3110_v58  ;;  %2966 = vmatprep.mubr.msk.bf16.mxu0 %vm620_vm0, %v3111_v59 }
  0x7c   : > { %3030 = vmatprep.mubr.msk.bf16.mxu1 %vm620_vm0, %v3112_v60 }
  0x82   : > { %2967 = vmatmul.mubr.msk.bf16.gmra.mrb[56].mxu0 %vm620_vm0, %v3113_v61 }
  0x83   : > { %3031 = vmatmul.mubr.msk.bf16.gmra.mrb[56].mxu1 %vm620_vm0, %v3114_v62  ;;  %2970 = vmatprep.mubr.msk.bf16.mxu0 %vm620_vm0, %v3115_v63 }
  0x84   : > { %3034 = vmatprep.mubr.msk.bf16.mxu1 %vm620_vm0, %v3116_v0 }
  0x8a   : > { %2971 = vmatmul.mubr.msk.bf16.gmra.mrb[60].mxu0 %vm620_vm0, %v3117_v1 }
  0x8b   : > { %3035 = vmatmul.mubr.msk.bf16.gmra.mrb[60].mxu1 %vm620_vm0, %v3118_v2 }
  0xe5   : > { %v2912_v3 = vpop.f32.mrb[0].mxu0 }
  0xe6   : > { %v2976_v4 = vpop.f32.mrb[0].mxu1  ;;  %vm1360_vm1 = vcmp.ge.f32.partialorder %v2912_v3, 0.0  ;;  %v1488_v5 = vmul.f32 0.2, %v2912_v3  ;;  %v847_v7 = vpop.f32.mrb[1].mxu0 }
  0xe7   : > { %vm1424_vm2 = vcmp.ge.f32.partialorder %v2976_v4, 0.0  ;;  %v1552_v6 = vmul.f32 0.2, %v2976_v4  ;;  %v1103_v8 = vpop.f32.mrb[1].mxu1  ;;  %vm1358_vm4 = vcmp.ge.f32.partialorder %v847_v7, 0.0  ;;  %v2913_v12 = vpop.f32.mrb[2].mxu0 }
  0xe8   : > { %v1616_v9 = vsel %vm1360_vm1, %v2912_v3, %v1488_v5  ;;  %v1486_v11 = vmul.f32 0.2, %v847_v7  ;;  %v2977_v13 = vpop.f32.mrb[2].mxu1  ;;  %vm1422_vm5 = vcmp.ge.f32.partialorder %v1103_v8, 0.0  ;;  %v1550_v16 = vmul.f32 0.2, %v1103_v8 }
  0xe9   : > { %v1680_v10 = vsel %vm1424_vm2, %v2976_v4, %v1552_v6  ;;  %v2711_v14 = vpack.c.bf16 %v1616_v9, %v1616_v9  ;;  %v850_v17 = vpop.f32.mrb[3].mxu0  ;;  %v1106_v18 = vpop.f32.mrb[3].mxu1  ;;  %vm1361_vm6 = vcmp.ge.f32.partialorder %v2913_v12, 0.0  ;;  %v1489_v20 = vmul.f32 0.2, %v2913_v12 }
  0xea   : > { %v2775_v15 = vpack.c.bf16 %v1680_v10, %v1680_v10  ;;  %v1614_v19 = vsel %vm1358_vm4, %v847_v7, %v1486_v11  ;;  %vm1425_vm7 = vcmp.ge.f32.partialorder %v2977_v13, 0.0  ;;  %v1678_v22 = vsel %vm1422_vm5, %v1103_v8, %v1550_v16 }
  0xeb   : > { %2257 = vst.msk [vmem:[%s3302_s24 + $0x8] sm:$0xf] %vm2254_vm3, %v2711_v14  ;;  %v2709_v21 = vpack.c.bf16 %v1614_v19, %v1614_v19  ;;  %v1553_v23 = vmul.f32 0.2, %v2977_v13  ;;  %vm1359_vm8 = vcmp.ge.f32.partialorder %v850_v17, 0.0  ;;  %v2773_v24 = vpack.c.bf16 %v1678_v22, %v1678_v22 }
  0xec   : > { %2321 = vst.msk [vmem:[%s3302_s24 + $0x108] sm:$0xf] %vm2254_vm3, %v2775_v15  ;;  %v1617_v25 = vsel %vm1361_vm6, %v2913_v12, %v1489_v20  ;;  %v1487_v26 = vmul.f32 0.2, %v850_v17  ;;  %vm1423_vm9 = vcmp.ge.f32.partialorder %v1106_v18, 0.0 }
  0xed   : > { %2255 = vst.msk [vmem:[%s3302_s24] sm:$0xf] %vm2254_vm3, %v2709_v21  ;;  %v2712_v27 = vpack.c.bf16 %v1617_v25, %v1617_v25  ;;  %v1681_v28 = vsel %vm1425_vm7, %v2977_v13, %v1553_v23  ;;  %v1551_v29 = vmul.f32 0.2, %v1106_v18  ;;  %v2916_v30 = vpop.f32.mrb[4].mxu0 }
  0xee   : > { %v2980_v31 = vpop.f32.mrb[4].mxu1  ;;  %2319 = vst.msk [vmem:[%s3302_s24 + $0x100] sm:$0xf] %vm2254_vm3, %v2773_v24  ;;  %v2776_v32 = vpack.c.bf16 %v1681_v28, %v1681_v28  ;;  %v1615_v33 = vsel %vm1359_vm8, %v850_v17, %v1487_v26  ;;  %vm1364_vm10 = vcmp.ge.f32.partialorder %v2916_v30, 0.0  ;;  %v1492_v34 = vmul.f32 0.2, %v2916_v30 }
  0xef   : > { %v863_v35 = vpop.f32.mrb[5].mxu0  ;;  %v1119_v36 = vpop.f32.mrb[5].mxu1  ;;  %2258 = vst.msk [vmem:[%s3302_s24 + $0xc] sm:$0xf] %vm2254_vm3, %v2712_v27  ;;  %v2710_v37 = vpack.c.bf16 %v1615_v33, %v1615_v33  ;;  %v1679_v38 = vsel %vm1423_vm9, %v1106_v18, %v1551_v29  ;;  %vm1428_vm11 = vcmp.ge.f32.partialorder %v2980_v31, 0.0 }
  0xf0   : > { %v1556_v39 = vmul.f32 0.2, %v2980_v31  ;;  %v2917_v40 = vpop.f32.mrb[6].mxu0  ;;  %v2981_v41 = vpop.f32.mrb[6].mxu1  ;;  %2322 = vst.msk [vmem:[%s3302_s24 + $0x10c] sm:$0xf] %vm2254_vm3, %v2776_v32  ;;  %v2774_v42 = vpack.c.bf16 %v1679_v38, %v1679_v38  ;;  %v1620_v43 = vsel %vm1364_vm10, %v2916_v30, %v1492_v34 }
  0xf1   : > { %vm1362_vm12 = vcmp.ge.f32.partialorder %v863_v35, 0.0  ;;  %v1490_v44 = vmul.f32 0.2, %v863_v35  ;;  %v866_v45 = vpop.f32.mrb[7].mxu0  ;;  %v1122_v46 = vpop.f32.mrb[7].mxu1  ;;  %v2715_v47 = vpack.c.bf16 %v1620_v43, %v1620_v43  ;;  %vm1426_vm13 = vcmp.ge.f32.partialorder %v1119_v36, 0.0 }
  0xf2   : > { %2256 = vst.msk [vmem:[%s3302_s24 + $0x4] sm:$0xf] %vm2254_vm3, %v2710_v37  ;;  %v1684_v48 = vsel %vm1428_vm11, %v2980_v31, %v1556_v39  ;;  %v1554_v49 = vmul.f32 0.2, %v1119_v36  ;;  %2320 = vst.msk [vmem:[%s3302_s24 + $0x104] sm:$0xf] %vm2254_vm3, %v2774_v42 }
  0xf3   : > { %v2779_v50 = vpack.c.bf16 %v1684_v48, %v1684_v48  ;;  %v1618_v51 = vsel %vm1362_vm12, %v863_v35, %v1490_v44  ;;  %vm1365_vm14 = vcmp.ge.f32.partialorder %v2917_v40, 0.0  ;;  %v1493_v52 = vmul.f32 0.2, %v2917_v40  ;;  %2261 = vst.msk [vmem:[%s3302_s24 + $0x18] sm:$0xf] %vm2254_vm3, %v2715_v47 }
  0xf4   : > { %v2713_v53 = vpack.c.bf16 %v1618_v51, %v1618_v51  ;;  %v1682_v54 = vsel %vm1426_vm13, %v1119_v36, %v1554_v49  ;;  %vm1429_vm15 = vcmp.ge.f32.partialorder %v2981_v41, 0.0  ;;  %v1557_v55 = vmul.f32 0.2, %v2981_v41 }
  0xf5   : > { %2325 = vst.msk [vmem:[%s3302_s24 + $0x118] sm:$0xf] %vm2254_vm3, %v2779_v50  ;;  %v2777_v56 = vpack.c.bf16 %v1682_v54, %v1682_v54  ;;  %v1621_v57 = vsel %vm1365_vm14, %v2917_v40, %v1493_v52  ;;  %vm1363_vm0 = vcmp.ge.f32.partialorder %v866_v45, 0.0  ;;  %v1491_v58 = vmul.f32 0.2, %v866_v45  ;;  %v2920_v62 = vpop.f32.mrb[8].mxu0 }
  0xf6   : > { %2259 = vst.msk [vmem:[%s3302_s24 + $0x10] sm:$0xf] %vm2254_vm3, %v2713_v53  ;;  %v2716_v59 = vpack.c.bf16 %v1621_v57, %v1621_v57  ;;  %v1685_v60 = vsel %vm1429_vm15, %v2981_v41, %v1557_v55  ;;  %vm1427_vm1 = vcmp.ge.f32.partialorder %v1122_v46, 0.0  ;;  %v1555_v61 = vmul.f32 0.2, %v1122_v46  ;;  %v2984_v63 = vpop.f32.mrb[8].mxu1 }
  0xf7   : > { %2323 = vst.msk [vmem:[%s3302_s24 + $0x110] sm:$0xf] %vm2254_vm3, %v2777_v56  ;;  %v2780_v0 = vpack.c.bf16 %v1685_v60, %v1685_v60  ;;  %v1619_v1 = vsel %vm1363_vm0, %v866_v45, %v1491_v58  ;;  %vm1368_vm2 = vcmp.ge.f32.partialorder %v2920_v62, 0.0  ;;  %v1496_v2 = vmul.f32 0.2, %v2920_v62  ;;  %v879_v3 = vpop.f32.mrb[9].mxu0 }
  0xf8   : > { %v1135_v4 = vpop.f32.mrb[9].mxu1  ;;  %2262 = vst.msk [vmem:[%s3302_s24 + $0x1c] sm:$0xf] %vm2254_vm3, %v2716_v59  ;;  %v2714_v5 = vpack.c.bf16 %v1619_v1, %v1619_v1  ;;  %v1683_v6 = vsel %vm1427_vm1, %v1122_v46, %v1555_v61  ;;  %vm1432_vm4 = vcmp.ge.f32.partialorder %v2984_v63, 0.0  ;;  %v1560_v7 = vmul.f32 0.2, %v2984_v63 }
  0xf9   : > { %v2921_v8 = vpop.f32.mrb[10].mxu0  ;;  %v2985_v9 = vpop.f32.mrb[10].mxu1  ;;  %2326 = vst.msk [vmem:[%s3302_s24 + $0x11c] sm:$0xf] %vm2254_vm3, %v2780_v0  ;;  %v2778_v10 = vpack.c.bf16 %v1683_v6, %v1683_v6  ;;  %v1624_v11 = vsel %vm1368_vm2, %v2920_v62, %v1496_v2  ;;  %vm1366_vm5 = vcmp.ge.f32.partialorder %v879_v3, 0.0  ;;  %vm1430_vm6 = vcmp.ge.f32.partialorder %v1135_v4, 0.0 }
  0xfa   : > { %v1494_v12 = vmul.f32 0.2, %v879_v3  ;;  %v882_v13 = vpop.f32.mrb[11].mxu0  ;;  %v1138_v14 = vpop.f32.mrb[11].mxu1  ;;  %2260 = vst.msk [vmem:[%s3302_s24 + $0x14] sm:$0xf] %vm2254_vm3, %v2714_v5  ;;  %v2719_v15 = vpack.c.bf16 %v1624_v11, %v1624_v11  ;;  %v1688_v16 = vsel %vm1432_vm4, %v2984_v63, %v1560_v7 }
  0xfb   : > { %v1558_v17 = vmul.f32 0.2, %v1135_v4  ;;  %2324 = vst.msk [vmem:[%s3302_s24 + $0x114] sm:$0xf] %vm2254_vm3, %v2778_v10  ;;  %v2783_v18 = vpack.c.bf16 %v1688_v16, %v1688_v16  ;;  %vm1369_vm7 = vcmp.ge.f32.partialorder %v2921_v8, 0.0  ;;  %vm1433_vm8 = vcmp.ge.f32.partialorder %v2985_v9, 0.0 }
  0xfc   : > { %v1622_v19 = vsel %vm1366_vm5, %v879_v3, %v1494_v12  ;;  %v1497_v20 = vmul.f32 0.2, %v2921_v8  ;;  %2265 = vst.msk [vmem:[%s3302_s24 + $0x28] sm:$0xf] %vm2254_vm3, %v2719_v15  ;;  %v1561_v23 = vmul.f32 0.2, %v2985_v9 }
  0xfd   : > { %v2717_v21 = vpack.c.bf16 %v1622_v19, %v1622_v19  ;;  %v1686_v22 = vsel %vm1430_vm6, %v1135_v4, %v1558_v17  ;;  %2329 = vst.msk [vmem:[%s3302_s24 + $0x128] sm:$0xf] %vm2254_vm3, %v2783_v18  ;;  %vm1367_vm9 = vcmp.ge.f32.partialorder %v882_v13, 0.0  ;;  %v1495_v26 = vmul.f32 0.2, %v882_v13  ;;  %v2924_v30 = vpop.f32.mrb[12].mxu0 }
  0xfe   : > { %v2781_v24 = vpack.c.bf16 %v1686_v22, %v1686_v22  ;;  %v1625_v25 = vsel %vm1369_vm7, %v2921_v8, %v1497_v20  ;;  %v1689_v28 = vsel %vm1433_vm8, %v2985_v9, %v1561_v23  ;;  %vm1431_vm10 = vcmp.ge.f32.partialorder %v1138_v14, 0.0  ;;  %v2988_v31 = vpop.f32.mrb[12].mxu1  ;;  %v895_v35 = vpop.f32.mrb[13].mxu0 }
  0xff   : > { %2263 = vst.msk [vmem:[%s3302_s24 + $0x20] sm:$0xf] %vm2254_vm3, %v2717_v21  ;;  %v2720_v27 = vpack.c.bf16 %v1625_v25, %v1625_v25  ;;  %v1559_v29 = vmul.f32 0.2, %v1138_v14  ;;  %v2784_v32 = vpack.c.bf16 %v1689_v28, %v1689_v28  ;;  %v1623_v33 = vsel %vm1367_vm9, %v882_v13, %v1495_v26  ;;  %v1151_v36 = vpop.f32.mrb[13].mxu1  ;;  %v2925_v40 = vpop.f32.mrb[14].mxu0 }
 0x100   : > { %2327 = vst.msk [vmem:[%s3302_s24 + $0x120] sm:$0xf] %vm2254_vm3, %v2781_v24  ;;  %vm1372_vm11 = vcmp.ge.f32.partialorder %v2924_v30, 0.0  ;;  %v1500_v34 = vmul.f32 0.2, %v2924_v30  ;;  %v2718_v37 = vpack.c.bf16 %v1623_v33, %v1623_v33  ;;  %vm1436_vm12 = vcmp.ge.f32.partialorder %v2988_v31, 0.0 }
 0x101   : > { %2266 = vst.msk [vmem:[%s3302_s24 + $0x2c] sm:$0xf] %vm2254_vm3, %v2720_v27  ;;  %v1687_v38 = vsel %vm1431_vm10, %v1138_v14, %v1559_v29  ;;  %v1564_v39 = vmul.f32 0.2, %v2988_v31  ;;  %v2989_v41 = vpop.f32.mrb[14].mxu1  ;;  %vm1370_vm13 = vcmp.ge.f32.partialorder %v895_v35, 0.0 }
 0x102   : > { %2330 = vst.msk [vmem:[%s3302_s24 + $0x12c] sm:$0xf] %vm2254_vm3, %v2784_v32  ;;  %v2782_v42 = vpack.c.bf16 %v1687_v38, %v1687_v38  ;;  %v1628_v43 = vsel %vm1372_vm11, %v2924_v30, %v1500_v34  ;;  %v1498_v44 = vmul.f32 0.2, %v895_v35  ;;  %v898_v45 = vpop.f32.mrb[15].mxu0  ;;  %v1154_v46 = vpop.f32.mrb[15].mxu1 }
 0x103   : > { %2264 = vst.msk [vmem:[%s3302_s24 + $0x24] sm:$0xf] %vm2254_vm3, %v2718_v37  ;;  %v2723_v47 = vpack.c.bf16 %v1628_v43, %v1628_v43  ;;  %v1692_v48 = vsel %vm1436_vm12, %v2988_v31, %v1564_v39  ;;  %vm1434_vm14 = vcmp.ge.f32.partialorder %v1151_v36, 0.0  ;;  %v1562_v49 = vmul.f32 0.2, %v1151_v36 }
 0x104   : > { %2328 = vst.msk [vmem:[%s3302_s24 + $0x124] sm:$0xf] %vm2254_vm3, %v2782_v42  ;;  %v2787_v50 = vpack.c.bf16 %v1692_v48, %v1692_v48  ;;  %v1626_v51 = vsel %vm1370_vm13, %v895_v35, %v1498_v44  ;;  %vm1373_vm15 = vcmp.ge.f32.partialorder %v2925_v40, 0.0  ;;  %v1501_v52 = vmul.f32 0.2, %v2925_v40 }
 0x105   : > { %2269 = vst.msk [vmem:[%s3302_s24 + $0x38] sm:$0xf] %vm2254_vm3, %v2723_v47  ;;  %v2721_v53 = vpack.c.bf16 %v1626_v51, %v1626_v51  ;;  %v1690_v54 = vsel %vm1434_vm14, %v1151_v36, %v1562_v49  ;;  %vm1437_vm0 = vcmp.ge.f32.partialorder %v2989_v41, 0.0  ;;  %v1565_v55 = vmul.f32 0.2, %v2989_v41  ;;  %v2928_v62 = vpop.f32.mrb[16].mxu0 }
 0x106   : > { %2333 = vst.msk [vmem:[%s3302_s24 + $0x138] sm:$0xf] %vm2254_vm3, %v2787_v50  ;;  %v2785_v56 = vpack.c.bf16 %v1690_v54, %v1690_v54  ;;  %v1629_v57 = vsel %vm1373_vm15, %v2925_v40, %v1501_v52  ;;  %vm1371_vm1 = vcmp.ge.f32.partialorder %v898_v45, 0.0  ;;  %v1499_v58 = vmul.f32 0.2, %v898_v45  ;;  %v2992_v63 = vpop.f32.mrb[16].mxu1 }
 0x107   : > { %2267 = vst.msk [vmem:[%s3302_s24 + $0x30] sm:$0xf] %vm2254_vm3, %v2721_v53  ;;  %v2724_v59 = vpack.c.bf16 %v1629_v57, %v1629_v57  ;;  %v1693_v60 = vsel %vm1437_vm0, %v2989_v41, %v1565_v55  ;;  %vm1435_vm2 = vcmp.ge.f32.partialorder %v1154_v46, 0.0  ;;  %v1563_v61 = vmul.f32 0.2, %v1154_v46  ;;  %v911_v3 = vpop.f32.mrb[17].mxu0 }
 0x108   : > { %2331 = vst.msk [vmem:[%s3302_s24 + $0x130] sm:$0xf] %vm2254_vm3, %v2785_v56  ;;  %v2788_v0 = vpack.c.bf16 %v1693_v60, %v1693_v60  ;;  %v1627_v1 = vsel %vm1371_vm1, %v898_v45, %v1499_v58  ;;  %vm1376_vm4 = vcmp.ge.f32.partialorder %v2928_v62, 0.0  ;;  %v1504_v2 = vmul.f32 0.2, %v2928_v62  ;;  %v1167_v4 = vpop.f32.mrb[17].mxu1 }
 0x109   : > { %2270 = vst.msk [vmem:[%s3302_s24 + $0x3c] sm:$0xf] %vm2254_vm3, %v2724_v59  ;;  %v2722_v5 = vpack.c.bf16 %v1627_v1, %v1627_v1  ;;  %v1691_v6 = vsel %vm1435_vm2, %v1154_v46, %v1563_v61  ;;  %vm1440_vm5 = vcmp.ge.f32.partialorder %v2992_v63, 0.0  ;;  %v1568_v7 = vmul.f32 0.2, %v2992_v63  ;;  %v2929_v8 = vpop.f32.mrb[18].mxu0 }
 0x10a   : > { %v2993_v9 = vpop.f32.mrb[18].mxu1  ;;  %2334 = vst.msk [vmem:[%s3302_s24 + $0x13c] sm:$0xf] %vm2254_vm3, %v2788_v0  ;;  %v2786_v10 = vpack.c.bf16 %v1691_v6, %v1691_v6  ;;  %v1632_v11 = vsel %vm1376_vm4, %v2928_v62, %v1504_v2  ;;  %vm1374_vm6 = vcmp.ge.f32.partialorder %v911_v3, 0.0  ;;  %v1502_v12 = vmul.f32 0.2, %v911_v3 }
 0x10b   : > { %v914_v13 = vpop.f32.mrb[19].mxu0  ;;  %v1170_v14 = vpop.f32.mrb[19].mxu1  ;;  %2268 = vst.msk [vmem:[%s3302_s24 + $0x34] sm:$0xf] %vm2254_vm3, %v2722_v5  ;;  %v2727_v15 = vpack.c.bf16 %v1632_v11, %v1632_v11  ;;  %v1696_v16 = vsel %vm1440_vm5, %v2992_v63, %v1568_v7  ;;  %vm1438_vm7 = vcmp.ge.f32.partialorder %v1167_v4, 0.0  ;;  %vm1377_vm8 = vcmp.ge.f32.partialorder %v2929_v8, 0.0 }
 0x10c   : > { %v1566_v17 = vmul.f32 0.2, %v1167_v4  ;;  %2332 = vst.msk [vmem:[%s3302_s24 + $0x134] sm:$0xf] %vm2254_vm3, %v2786_v10  ;;  %v2791_v18 = vpack.c.bf16 %v1696_v16, %v1696_v16  ;;  %v1630_v19 = vsel %vm1374_vm6, %v911_v3, %v1502_v12  ;;  %v1505_v20 = vmul.f32 0.2, %v2929_v8 }
 0x10d   : > { %2273 = vst.msk [vmem:[%s3302_s24 + $0x48] sm:$0xf] %vm2254_vm3, %v2727_v15  ;;  %v2725_v21 = vpack.c.bf16 %v1630_v19, %v1630_v19  ;;  %vm1441_vm9 = vcmp.ge.f32.partialorder %v2993_v9, 0.0  ;;  %v1569_v23 = vmul.f32 0.2, %v2993_v9  ;;  %vm1375_vm10 = vcmp.ge.f32.partialorder %v914_v13, 0.0 }
 0x10e   : > { %v1694_v22 = vsel %vm1438_vm7, %v1167_v4, %v1566_v17  ;;  %2337 = vst.msk [vmem:[%s3302_s24 + $0x148] sm:$0xf] %vm2254_vm3, %v2791_v18  ;;  %v1633_v25 = vsel %vm1377_vm8, %v2929_v8, %v1505_v20  ;;  %v1503_v26 = vmul.f32 0.2, %v914_v13  ;;  %vm1439_vm11 = vcmp.ge.f32.partialorder %v1170_v14, 0.0  ;;  %v2932_v30 = vpop.f32.mrb[20].mxu0 }
 0x10f   : > { %v2789_v24 = vpack.c.bf16 %v1694_v22, %v1694_v22  ;;  %2271 = vst.msk [vmem:[%s3302_s24 + $0x40] sm:$0xf] %vm2254_vm3, %v2725_v21  ;;  %v2728_v27 = vpack.c.bf16 %v1633_v25, %v1633_v25  ;;  %v1697_v28 = vsel %vm1441_vm9, %v2993_v9, %v1569_v23  ;;  %v1567_v29 = vmul.f32 0.2, %v1170_v14  ;;  %v2996_v31 = vpop.f32.mrb[20].mxu1  ;;  %v927_v35 = vpop.f32.mrb[21].mxu0 }
 0x110   : > { %v2792_v32 = vpack.c.bf16 %v1697_v28, %v1697_v28  ;;  %v1631_v33 = vsel %vm1375_vm10, %v914_v13, %v1503_v26  ;;  %vm1380_vm12 = vcmp.ge.f32.partialorder %v2932_v30, 0.0  ;;  %v1508_v34 = vmul.f32 0.2, %v2932_v30  ;;  %v1183_v36 = vpop.f32.mrb[21].mxu1  ;;  %v2933_v40 = vpop.f32.mrb[22].mxu0 }
 0x111   : > { %2335 = vst.msk [vmem:[%s3302_s24 + $0x140] sm:$0xf] %vm2254_vm3, %v2789_v24  ;;  %2274 = vst.msk [vmem:[%s3302_s24 + $0x4c] sm:$0xf] %vm2254_vm3, %v2728_v27  ;;  %v2726_v37 = vpack.c.bf16 %v1631_v33, %v1631_v33  ;;  %v1695_v38 = vsel %vm1439_vm11, %v1170_v14, %v1567_v29  ;;  %vm1444_vm13 = vcmp.ge.f32.partialorder %v2996_v31, 0.0  ;;  %v2997_v41 = vpop.f32.mrb[22].mxu1 }
 0x112   : > { %v1572_v39 = vmul.f32 0.2, %v2996_v31  ;;  %2338 = vst.msk [vmem:[%s3302_s24 + $0x14c] sm:$0xf] %vm2254_vm3, %v2792_v32  ;;  %v2790_v42 = vpack.c.bf16 %v1695_v38, %v1695_v38  ;;  %v1636_v43 = vsel %vm1380_vm12, %v2932_v30, %v1508_v34  ;;  %vm1378_vm14 = vcmp.ge.f32.partialorder %v927_v35, 0.0  ;;  %v930_v45 = vpop.f32.mrb[23].mxu0 }
 0x113   : > { %v1506_v44 = vmul.f32 0.2, %v927_v35  ;;  %v1186_v46 = vpop.f32.mrb[23].mxu1  ;;  %2272 = vst.msk [vmem:[%s3302_s24 + $0x44] sm:$0xf] %vm2254_vm3, %v2726_v37  ;;  %v2731_v47 = vpack.c.bf16 %v1636_v43, %v1636_v43  ;;  %vm1442_vm15 = vcmp.ge.f32.partialorder %v1183_v36, 0.0 }
 0x114   : > { %v1700_v48 = vsel %vm1444_vm13, %v2996_v31, %v1572_v39  ;;  %v1570_v49 = vmul.f32 0.2, %v1183_v36  ;;  %2336 = vst.msk [vmem:[%s3302_s24 + $0x144] sm:$0xf] %vm2254_vm3, %v2790_v42  ;;  %vm1381_vm0 = vcmp.ge.f32.partialorder %v2933_v40, 0.0  ;;  %vm1445_vm1 = vcmp.ge.f32.partialorder %v2997_v41, 0.0 }
 0x115   : > { %v2795_v50 = vpack.c.bf16 %v1700_v48, %v1700_v48  ;;  %v1634_v51 = vsel %vm1378_vm14, %v927_v35, %v1506_v44  ;;  %v1509_v52 = vmul.f32 0.2, %v2933_v40  ;;  %2277 = vst.msk [vmem:[%s3302_s24 + $0x58] sm:$0xf] %vm2254_vm3, %v2731_v47  ;;  %v1573_v55 = vmul.f32 0.2, %v2997_v41 }
 0x116   : > { %v2729_v53 = vpack.c.bf16 %v1634_v51, %v1634_v51  ;;  %v1698_v54 = vsel %vm1442_vm15, %v1183_v36, %v1570_v49  ;;  %vm1379_vm2 = vcmp.ge.f32.partialorder %v930_v45, 0.0  ;;  %v1507_v58 = vmul.f32 0.2, %v930_v45  ;;  %v2936_v62 = vpop.f32.mrb[24].mxu0  ;;  %v3000_v63 = vpop.f32.mrb[24].mxu1 }
 0x117   : > { %2341 = vst.msk [vmem:[%s3302_s24 + $0x158] sm:$0xf] %vm2254_vm3, %v2795_v50  ;;  %v2793_v56 = vpack.c.bf16 %v1698_v54, %v1698_v54  ;;  %v1637_v57 = vsel %vm1381_vm0, %v2933_v40, %v1509_v52  ;;  %v1701_v60 = vsel %vm1445_vm1, %v2997_v41, %v1573_v55  ;;  %vm1443_vm4 = vcmp.ge.f32.partialorder %v1186_v46, 0.0  ;;  %v943_v3 = vpop.f32.mrb[25].mxu0  ;;  %v1199_v4 = vpop.f32.mrb[25].mxu1 }
 0x118   : > { %2275 = vst.msk [vmem:[%s3302_s24 + $0x50] sm:$0xf] %vm2254_vm3, %v2729_v53  ;;  %v2732_v59 = vpack.c.bf16 %v1637_v57, %v1637_v57  ;;  %v1571_v61 = vmul.f32 0.2, %v1186_v46  ;;  %v2796_v0 = vpack.c.bf16 %v1701_v60, %v1701_v60  ;;  %v1635_v1 = vsel %vm1379_vm2, %v930_v45, %v1507_v58  ;;  %v2937_v8 = vpop.f32.mrb[26].mxu0  ;;  %v3001_v9 = vpop.f32.mrb[26].mxu1 }
 0x119   : > { %2339 = vst.msk [vmem:[%s3302_s24 + $0x150] sm:$0xf] %vm2254_vm3, %v2793_v56  ;;  %vm1384_vm5 = vcmp.ge.f32.partialorder %v2936_v62, 0.0  ;;  %v1512_v2 = vmul.f32 0.2, %v2936_v62  ;;  %v2730_v5 = vpack.c.bf16 %v1635_v1, %v1635_v1  ;;  %vm1448_vm6 = vcmp.ge.f32.partialorder %v3000_v63, 0.0 }
 0x11a   : > { %2278 = vst.msk [vmem:[%s3302_s24 + $0x5c] sm:$0xf] %vm2254_vm3, %v2732_v59  ;;  %v1699_v6 = vsel %vm1443_vm4, %v1186_v46, %v1571_v61  ;;  %v1576_v7 = vmul.f32 0.2, %v3000_v63  ;;  %2342 = vst.msk [vmem:[%s3302_s24 + $0x15c] sm:$0xf] %vm2254_vm3, %v2796_v0 }
 0x11b   : > { %v2794_v10 = vpack.c.bf16 %v1699_v6, %v1699_v6  ;;  %v1640_v11 = vsel %vm1384_vm5, %v2936_v62, %v1512_v2  ;;  %vm1382_vm7 = vcmp.ge.f32.partialorder %v943_v3, 0.0  ;;  %v1510_v12 = vmul.f32 0.2, %v943_v3  ;;  %v946_v13 = vpop.f32.mrb[27].mxu0  ;;  %v1202_v14 = vpop.f32.mrb[27].mxu1 }
 0x11c   : > { %2276 = vst.msk [vmem:[%s3302_s24 + $0x54] sm:$0xf] %vm2254_vm3, %v2730_v5  ;;  %v2735_v15 = vpack.c.bf16 %v1640_v11, %v1640_v11  ;;  %v1704_v16 = vsel %vm1448_vm6, %v3000_v63, %v1576_v7  ;;  %vm1446_vm8 = vcmp.ge.f32.partialorder %v1199_v4, 0.0  ;;  %v1574_v17 = vmul.f32 0.2, %v1199_v4 }
 0x11d   : > { %2340 = vst.msk [vmem:[%s3302_s24 + $0x154] sm:$0xf] %vm2254_vm3, %v2794_v10  ;;  %v2799_v18 = vpack.c.bf16 %v1704_v16, %v1704_v16  ;;  %v1638_v19 = vsel %vm1382_vm7, %v943_v3, %v1510_v12  ;;  %vm1385_vm9 = vcmp.ge.f32.partialorder %v2937_v8, 0.0  ;;  %v1513_v20 = vmul.f32 0.2, %v2937_v8  ;;  %v2940_v30 = vpop.f32.mrb[28].mxu0 }
 0x11e   : > { %2281 = vst.msk [vmem:[%s3302_s24 + $0x68] sm:$0xf] %vm2254_vm3, %v2735_v15  ;;  %v2733_v21 = vpack.c.bf16 %v1638_v19, %v1638_v19  ;;  %v1702_v22 = vsel %vm1446_vm8, %v1199_v4, %v1574_v17  ;;  %vm1449_vm10 = vcmp.ge.f32.partialorder %v3001_v9, 0.0  ;;  %v1577_v23 = vmul.f32 0.2, %v3001_v9  ;;  %v3004_v31 = vpop.f32.mrb[28].mxu1 }
 0x11f   : > { %2345 = vst.msk [vmem:[%s3302_s24 + $0x168] sm:$0xf] %vm2254_vm3, %v2799_v18  ;;  %v2797_v24 = vpack.c.bf16 %v1702_v22, %v1702_v22  ;;  %v1641_v25 = vsel %vm1385_vm9, %v2937_v8, %v1513_v20  ;;  %vm1383_vm11 = vcmp.ge.f32.partialorder %v946_v13, 0.0  ;;  %v1511_v26 = vmul.f32 0.2, %v946_v13  ;;  %v959_v35 = vpop.f32.mrb[29].mxu0 }
 0x120   : > { %2279 = vst.msk [vmem:[%s3302_s24 + $0x60] sm:$0xf] %vm2254_vm3, %v2733_v21  ;;  %v2736_v27 = vpack.c.bf16 %v1641_v25, %v1641_v25  ;;  %v1705_v28 = vsel %vm1449_vm10, %v3001_v9, %v1577_v23  ;;  %vm1447_vm12 = vcmp.ge.f32.partialorder %v1202_v14, 0.0  ;;  %v1575_v29 = vmul.f32 0.2, %v1202_v14  ;;  %v1215_v36 = vpop.f32.mrb[29].mxu1 }
 0x121   : > { %2343 = vst.msk [vmem:[%s3302_s24 + $0x160] sm:$0xf] %vm2254_vm3, %v2797_v24  ;;  %v2800_v32 = vpack.c.bf16 %v1705_v28, %v1705_v28  ;;  %v1639_v33 = vsel %vm1383_vm11, %v946_v13, %v1511_v26  ;;  %vm1388_vm13 = vcmp.ge.f32.partialorder %v2940_v30, 0.0  ;;  %v1516_v34 = vmul.f32 0.2, %v2940_v30  ;;  %v2941_v40 = vpop.f32.mrb[30].mxu0 }
 0x122   : > { %2282 = vst.msk [vmem:[%s3302_s24 + $0x6c] sm:$0xf] %vm2254_vm3, %v2736_v27  ;;  %v2734_v37 = vpack.c.bf16 %v1639_v33, %v1639_v33  ;;  %v1703_v38 = vsel %vm1447_vm12, %v1202_v14, %v1575_v29  ;;  %vm1452_vm14 = vcmp.ge.f32.partialorder %v3004_v31, 0.0  ;;  %v1580_v39 = vmul.f32 0.2, %v3004_v31  ;;  %v3005_v41 = vpop.f32.mrb[30].mxu1 }
 0x123   : > { %2346 = vst.msk [vmem:[%s3302_s24 + $0x16c] sm:$0xf] %vm2254_vm3, %v2800_v32  ;;  %v2798_v42 = vpack.c.bf16 %v1703_v38, %v1703_v38  ;;  %v1644_v43 = vsel %vm1388_vm13, %v2940_v30, %v1516_v34  ;;  %vm1386_vm15 = vcmp.ge.f32.partialorder %v959_v35, 0.0  ;;  %v1514_v44 = vmul.f32 0.2, %v959_v35  ;;  %v962_v45 = vpop.f32.mrb[31].mxu0 }
 0x124   : > { %v1218_v46 = vpop.f32.mrb[31].mxu1  ;;  %2280 = vst.msk [vmem:[%s3302_s24 + $0x64] sm:$0xf] %vm2254_vm3, %v2734_v37  ;;  %v2739_v47 = vpack.c.bf16 %v1644_v43, %v1644_v43  ;;  %v1708_v48 = vsel %vm1452_vm14, %v3004_v31, %v1580_v39  ;;  %vm1450_vm0 = vcmp.ge.f32.partialorder %v1215_v36, 0.0  ;;  %v1578_v49 = vmul.f32 0.2, %v1215_v36 }
 0x125   : > { %2344 = vst.msk [vmem:[%s3302_s24 + $0x164] sm:$0xf] %vm2254_vm3, %v2798_v42  ;;  %v2803_v50 = vpack.c.bf16 %v1708_v48, %v1708_v48  ;;  %v1642_v51 = vsel %vm1386_vm15, %v959_v35, %v1514_v44  ;;  %vm1389_vm1 = vcmp.ge.f32.partialorder %v2941_v40, 0.0  ;;  %v1517_v52 = vmul.f32 0.2, %v2941_v40  ;;  %v2944_v62 = vpop.f32.mrb[32].mxu0 }
 0x126   : > { %2285 = vst.msk [vmem:[%s3302_s24 + $0x78] sm:$0xf] %vm2254_vm3, %v2739_v47  ;;  %v2737_v53 = vpack.c.bf16 %v1642_v51, %v1642_v51  ;;  %v1706_v54 = vsel %vm1450_vm0, %v1215_v36, %v1578_v49  ;;  %vm1453_vm2 = vcmp.ge.f32.partialorder %v3005_v41, 0.0  ;;  %v1581_v55 = vmul.f32 0.2, %v3005_v41  ;;  %v3008_v63 = vpop.f32.mrb[32].mxu1 }
 0x127   : > { %2349 = vst.msk [vmem:[%s3302_s24 + $0x178] sm:$0xf] %vm2254_vm3, %v2803_v50  ;;  %v2801_v56 = vpack.c.bf16 %v1706_v54, %v1706_v54  ;;  %v1645_v57 = vsel %vm1389_vm1, %v2941_v40, %v1517_v52  ;;  %vm1387_vm4 = vcmp.ge.f32.partialorder %v962_v45, 0.0  ;;  %v1515_v58 = vmul.f32 0.2, %v962_v45  ;;  %v975_v3 = vpop.f32.mrb[33].mxu0 }
 0x128   : > { %2283 = vst.msk [vmem:[%s3302_s24 + $0x70] sm:$0xf] %vm2254_vm3, %v2737_v53  ;;  %v2740_v59 = vpack.c.bf16 %v1645_v57, %v1645_v57  ;;  %v1709_v60 = vsel %vm1453_vm2, %v3005_v41, %v1581_v55  ;;  %vm1451_vm5 = vcmp.ge.f32.partialorder %v1218_v46, 0.0  ;;  %v1579_v61 = vmul.f32 0.2, %v1218_v46  ;;  %v1231_v4 = vpop.f32.mrb[33].mxu1 }
 0x129   : > { %2347 = vst.msk [vmem:[%s3302_s24 + $0x170] sm:$0xf] %vm2254_vm3, %v2801_v56  ;;  %v2804_v0 = vpack.c.bf16 %v1709_v60, %v1709_v60  ;;  %v1643_v1 = vsel %vm1387_vm4, %v962_v45, %v1515_v58  ;;  %vm1392_vm6 = vcmp.ge.f32.partialorder %v2944_v62, 0.0  ;;  %v1520_v2 = vmul.f32 0.2, %v2944_v62  ;;  %v2945_v8 = vpop.f32.mrb[34].mxu0 }
 0x12a   : > { %2286 = vst.msk [vmem:[%s3302_s24 + $0x7c] sm:$0xf] %vm2254_vm3, %v2740_v59  ;;  %v2738_v5 = vpack.c.bf16 %v1643_v1, %v1643_v1  ;;  %v1707_v6 = vsel %vm1451_vm5, %v1218_v46, %v1579_v61  ;;  %vm1456_vm7 = vcmp.ge.f32.partialorder %v3008_v63, 0.0  ;;  %v1584_v7 = vmul.f32 0.2, %v3008_v63  ;;  %v3009_v9 = vpop.f32.mrb[34].mxu1 }
 0x12b   : > { %2350 = vst.msk [vmem:[%s3302_s24 + $0x17c] sm:$0xf] %vm2254_vm3, %v2804_v0  ;;  %v2802_v10 = vpack.c.bf16 %v1707_v6, %v1707_v6  ;;  %v1648_v11 = vsel %vm1392_vm6, %v2944_v62, %v1520_v2  ;;  %vm1390_vm8 = vcmp.ge.f32.partialorder %v975_v3, 0.0  ;;  %v1518_v12 = vmul.f32 0.2, %v975_v3  ;;  %v978_v13 = vpop.f32.mrb[35].mxu0 }
 0x12c   : > { %v1234_v14 = vpop.f32.mrb[35].mxu1  ;;  %2284 = vst.msk [vmem:[%s3302_s24 + $0x74] sm:$0xf] %vm2254_vm3, %v2738_v5  ;;  %v2743_v15 = vpack.c.bf16 %v1648_v11, %v1648_v11  ;;  %v1712_v16 = vsel %vm1456_vm7, %v3008_v63, %v1584_v7  ;;  %vm1454_vm9 = vcmp.ge.f32.partialorder %v1231_v4, 0.0  ;;  %v1582_v17 = vmul.f32 0.2, %v1231_v4 }
 0x12d   : > { %2348 = vst.msk [vmem:[%s3302_s24 + $0x174] sm:$0xf] %vm2254_vm3, %v2802_v10  ;;  %v2807_v18 = vpack.c.bf16 %v1712_v16, %v1712_v16  ;;  %v1646_v19 = vsel %vm1390_vm8, %v975_v3, %v1518_v12  ;;  %vm1393_vm10 = vcmp.ge.f32.partialorder %v2945_v8, 0.0  ;;  %v1521_v20 = vmul.f32 0.2, %v2945_v8  ;;  %v2948_v30 = vpop.f32.mrb[36].mxu0 }
 0x12e   : > { %2289 = vst.msk [vmem:[%s3302_s24 + $0x88] sm:$0xf] %vm2254_vm3, %v2743_v15  ;;  %v2741_v21 = vpack.c.bf16 %v1646_v19, %v1646_v19  ;;  %v1710_v22 = vsel %vm1454_vm9, %v1231_v4, %v1582_v17  ;;  %vm1457_vm11 = vcmp.ge.f32.partialorder %v3009_v9, 0.0  ;;  %v1585_v23 = vmul.f32 0.2, %v3009_v9  ;;  %v3012_v31 = vpop.f32.mrb[36].mxu1 }
 0x12f   : > { %2353 = vst.msk [vmem:[%s3302_s24 + $0x188] sm:$0xf] %vm2254_vm3, %v2807_v18  ;;  %v2805_v24 = vpack.c.bf16 %v1710_v22, %v1710_v22  ;;  %v1649_v25 = vsel %vm1393_vm10, %v2945_v8, %v1521_v20  ;;  %vm1391_vm12 = vcmp.ge.f32.partialorder %v978_v13, 0.0  ;;  %v1519_v26 = vmul.f32 0.2, %v978_v13  ;;  %v991_v35 = vpop.f32.mrb[37].mxu0 }
 0x130   : > { %2287 = vst.msk [vmem:[%s3302_s24 + $0x80] sm:$0xf] %vm2254_vm3, %v2741_v21  ;;  %v2744_v27 = vpack.c.bf16 %v1649_v25, %v1649_v25  ;;  %v1713_v28 = vsel %vm1457_vm11, %v3009_v9, %v1585_v23  ;;  %vm1455_vm13 = vcmp.ge.f32.partialorder %v1234_v14, 0.0  ;;  %v1583_v29 = vmul.f32 0.2, %v1234_v14  ;;  %v1247_v36 = vpop.f32.mrb[37].mxu1 }
 0x131   : > { %2351 = vst.msk [vmem:[%s3302_s24 + $0x180] sm:$0xf] %vm2254_vm3, %v2805_v24  ;;  %v2808_v32 = vpack.c.bf16 %v1713_v28, %v1713_v28  ;;  %v1647_v33 = vsel %vm1391_vm12, %v978_v13, %v1519_v26  ;;  %vm1396_vm14 = vcmp.ge.f32.partialorder %v2948_v30, 0.0  ;;  %v1524_v34 = vmul.f32 0.2, %v2948_v30  ;;  %v2949_v40 = vpop.f32.mrb[38].mxu0 }
 0x132   : > { %2290 = vst.msk [vmem:[%s3302_s24 + $0x8c] sm:$0xf] %vm2254_vm3, %v2744_v27  ;;  %v2742_v37 = vpack.c.bf16 %v1647_v33, %v1647_v33  ;;  %v1711_v38 = vsel %vm1455_vm13, %v1234_v14, %v1583_v29  ;;  %vm1460_vm15 = vcmp.ge.f32.partialorder %v3012_v31, 0.0  ;;  %v1588_v39 = vmul.f32 0.2, %v3012_v31  ;;  %v3013_v41 = vpop.f32.mrb[38].mxu1 }
 0x133   : > { %2354 = vst.msk [vmem:[%s3302_s24 + $0x18c] sm:$0xf] %vm2254_vm3, %v2808_v32  ;;  %v2806_v42 = vpack.c.bf16 %v1711_v38, %v1711_v38  ;;  %v1652_v43 = vsel %vm1396_vm14, %v2948_v30, %v1524_v34  ;;  %vm1394_vm0 = vcmp.ge.f32.partialorder %v991_v35, 0.0  ;;  %v1522_v44 = vmul.f32 0.2, %v991_v35  ;;  %v994_v45 = vpop.f32.mrb[39].mxu0 }
 0x134   : > { %v1250_v46 = vpop.f32.mrb[39].mxu1  ;;  %2288 = vst.msk [vmem:[%s3302_s24 + $0x84] sm:$0xf] %vm2254_vm3, %v2742_v37  ;;  %v2747_v47 = vpack.c.bf16 %v1652_v43, %v1652_v43  ;;  %v1716_v48 = vsel %vm1460_vm15, %v3012_v31, %v1588_v39  ;;  %vm1458_vm1 = vcmp.ge.f32.partialorder %v1247_v36, 0.0  ;;  %v1586_v49 = vmul.f32 0.2, %v1247_v36 }
 0x135   : > { %2352 = vst.msk [vmem:[%s3302_s24 + $0x184] sm:$0xf] %vm2254_vm3, %v2806_v42  ;;  %v2811_v50 = vpack.c.bf16 %v1716_v48, %v1716_v48  ;;  %v1650_v51 = vsel %vm1394_vm0, %v991_v35, %v1522_v44  ;;  %vm1397_vm2 = vcmp.ge.f32.partialorder %v2949_v40, 0.0  ;;  %v1525_v52 = vmul.f32 0.2, %v2949_v40  ;;  %v2952_v62 = vpop.f32.mrb[40].mxu0 }
 0x136   : > { %2293 = vst.msk [vmem:[%s3302_s24 + $0x98] sm:$0xf] %vm2254_vm3, %v2747_v47  ;;  %v2745_v53 = vpack.c.bf16 %v1650_v51, %v1650_v51  ;;  %v1714_v54 = vsel %vm1458_vm1, %v1247_v36, %v1586_v49  ;;  %vm1461_vm4 = vcmp.ge.f32.partialorder %v3013_v41, 0.0  ;;  %v1589_v55 = vmul.f32 0.2, %v3013_v41  ;;  %v3016_v63 = vpop.f32.mrb[40].mxu1 }
 0x137   : > { %2357 = vst.msk [vmem:[%s3302_s24 + $0x198] sm:$0xf] %vm2254_vm3, %v2811_v50  ;;  %v2809_v56 = vpack.c.bf16 %v1714_v54, %v1714_v54  ;;  %v1653_v57 = vsel %vm1397_vm2, %v2949_v40, %v1525_v52  ;;  %vm1395_vm5 = vcmp.ge.f32.partialorder %v994_v45, 0.0  ;;  %v1523_v58 = vmul.f32 0.2, %v994_v45  ;;  %v1007_v3 = vpop.f32.mrb[41].mxu0 }
 0x138   : > { %2291 = vst.msk [vmem:[%s3302_s24 + $0x90] sm:$0xf] %vm2254_vm3, %v2745_v53  ;;  %v2748_v59 = vpack.c.bf16 %v1653_v57, %v1653_v57  ;;  %v1717_v60 = vsel %vm1461_vm4, %v3013_v41, %v1589_v55  ;;  %vm1459_vm6 = vcmp.ge.f32.partialorder %v1250_v46, 0.0  ;;  %v1587_v61 = vmul.f32 0.2, %v1250_v46  ;;  %v1263_v4 = vpop.f32.mrb[41].mxu1 }
 0x139   : > { %2355 = vst.msk [vmem:[%s3302_s24 + $0x190] sm:$0xf] %vm2254_vm3, %v2809_v56  ;;  %v2812_v0 = vpack.c.bf16 %v1717_v60, %v1717_v60  ;;  %v1651_v1 = vsel %vm1395_vm5, %v994_v45, %v1523_v58  ;;  %vm1400_vm7 = vcmp.ge.f32.partialorder %v2952_v62, 0.0  ;;  %v1528_v2 = vmul.f32 0.2, %v2952_v62  ;;  %v2953_v8 = vpop.f32.mrb[42].mxu0 }
 0x13a   : > { %2294 = vst.msk [vmem:[%s3302_s24 + $0x9c] sm:$0xf] %vm2254_vm3, %v2748_v59  ;;  %v2746_v5 = vpack.c.bf16 %v1651_v1, %v1651_v1  ;;  %v1715_v6 = vsel %vm1459_vm6, %v1250_v46, %v1587_v61  ;;  %vm1464_vm8 = vcmp.ge.f32.partialorder %v3016_v63, 0.0  ;;  %v1592_v7 = vmul.f32 0.2, %v3016_v63  ;;  %v3017_v9 = vpop.f32.mrb[42].mxu1 }
 0x13b   : > { %2358 = vst.msk [vmem:[%s3302_s24 + $0x19c] sm:$0xf] %vm2254_vm3, %v2812_v0  ;;  %v2810_v10 = vpack.c.bf16 %v1715_v6, %v1715_v6  ;;  %v1656_v11 = vsel %vm1400_vm7, %v2952_v62, %v1528_v2  ;;  %vm1398_vm9 = vcmp.ge.f32.partialorder %v1007_v3, 0.0  ;;  %v1526_v12 = vmul.f32 0.2, %v1007_v3  ;;  %v1010_v13 = vpop.f32.mrb[43].mxu0 }
 0x13c   : > { %v1266_v14 = vpop.f32.mrb[43].mxu1  ;;  %2292 = vst.msk [vmem:[%s3302_s24 + $0x94] sm:$0xf] %vm2254_vm3, %v2746_v5  ;;  %v2751_v15 = vpack.c.bf16 %v1656_v11, %v1656_v11  ;;  %v1720_v16 = vsel %vm1464_vm8, %v3016_v63, %v1592_v7  ;;  %vm1462_vm10 = vcmp.ge.f32.partialorder %v1263_v4, 0.0  ;;  %v1590_v17 = vmul.f32 0.2, %v1263_v4 }
 0x13d   : > { %2356 = vst.msk [vmem:[%s3302_s24 + $0x194] sm:$0xf] %vm2254_vm3, %v2810_v10  ;;  %v2815_v18 = vpack.c.bf16 %v1720_v16, %v1720_v16  ;;  %v1654_v19 = vsel %vm1398_vm9, %v1007_v3, %v1526_v12  ;;  %vm1401_vm11 = vcmp.ge.f32.partialorder %v2953_v8, 0.0  ;;  %v1529_v20 = vmul.f32 0.2, %v2953_v8  ;;  %v2956_v30 = vpop.f32.mrb[44].mxu0 }
 0x13e   : > { %2297 = vst.msk [vmem:[%s3302_s24 + $0xa8] sm:$0xf] %vm2254_vm3, %v2751_v15  ;;  %v2749_v21 = vpack.c.bf16 %v1654_v19, %v1654_v19  ;;  %v1718_v22 = vsel %vm1462_vm10, %v1263_v4, %v1590_v17  ;;  %vm1465_vm12 = vcmp.ge.f32.partialorder %v3017_v9, 0.0  ;;  %v1593_v23 = vmul.f32 0.2, %v3017_v9  ;;  %v3020_v31 = vpop.f32.mrb[44].mxu1 }
 0x13f   : > { %2361 = vst.msk [vmem:[%s3302_s24 + $0x1a8] sm:$0xf] %vm2254_vm3, %v2815_v18  ;;  %v2813_v24 = vpack.c.bf16 %v1718_v22, %v1718_v22  ;;  %v1657_v25 = vsel %vm1401_vm11, %v2953_v8, %v1529_v20  ;;  %vm1399_vm13 = vcmp.ge.f32.partialorder %v1010_v13, 0.0  ;;  %v1527_v26 = vmul.f32 0.2, %v1010_v13  ;;  %v1023_v35 = vpop.f32.mrb[45].mxu0 }
 0x140   : > { %2295 = vst.msk [vmem:[%s3302_s24 + $0xa0] sm:$0xf] %vm2254_vm3, %v2749_v21  ;;  %v2752_v27 = vpack.c.bf16 %v1657_v25, %v1657_v25  ;;  %v1721_v28 = vsel %vm1465_vm12, %v3017_v9, %v1593_v23  ;;  %vm1463_vm14 = vcmp.ge.f32.partialorder %v1266_v14, 0.0  ;;  %v1591_v29 = vmul.f32 0.2, %v1266_v14  ;;  %v1279_v36 = vpop.f32.mrb[45].mxu1 }
 0x141   : > { %2359 = vst.msk [vmem:[%s3302_s24 + $0x1a0] sm:$0xf] %vm2254_vm3, %v2813_v24  ;;  %v2816_v32 = vpack.c.bf16 %v1721_v28, %v1721_v28  ;;  %v1655_v33 = vsel %vm1399_vm13, %v1010_v13, %v1527_v26  ;;  %vm1404_vm15 = vcmp.ge.f32.partialorder %v2956_v30, 0.0  ;;  %v1532_v34 = vmul.f32 0.2, %v2956_v30  ;;  %v2957_v40 = vpop.f32.mrb[46].mxu0 }
 0x142   : > { %2298 = vst.msk [vmem:[%s3302_s24 + $0xac] sm:$0xf] %vm2254_vm3, %v2752_v27  ;;  %v2750_v37 = vpack.c.bf16 %v1655_v33, %v1655_v33  ;;  %v1719_v38 = vsel %vm1463_vm14, %v1266_v14, %v1591_v29  ;;  %vm1468_vm0 = vcmp.ge.f32.partialorder %v3020_v31, 0.0  ;;  %v1596_v39 = vmul.f32 0.2, %v3020_v31  ;;  %v3021_v41 = vpop.f32.mrb[46].mxu1 }
 0x143   : > { %2362 = vst.msk [vmem:[%s3302_s24 + $0x1ac] sm:$0xf] %vm2254_vm3, %v2816_v32  ;;  %v2814_v42 = vpack.c.bf16 %v1719_v38, %v1719_v38  ;;  %v1660_v43 = vsel %vm1404_vm15, %v2956_v30, %v1532_v34  ;;  %vm1402_vm1 = vcmp.ge.f32.partialorder %v1023_v35, 0.0  ;;  %v1530_v44 = vmul.f32 0.2, %v1023_v35  ;;  %v1026_v45 = vpop.f32.mrb[47].mxu0 }
 0x144   : > { %v1282_v46 = vpop.f32.mrb[47].mxu1  ;;  %2296 = vst.msk [vmem:[%s3302_s24 + $0xa4] sm:$0xf] %vm2254_vm3, %v2750_v37  ;;  %v2755_v47 = vpack.c.bf16 %v1660_v43, %v1660_v43  ;;  %v1724_v48 = vsel %vm1468_vm0, %v3020_v31, %v1596_v39  ;;  %vm1466_vm2 = vcmp.ge.f32.partialorder %v1279_v36, 0.0  ;;  %v1594_v49 = vmul.f32 0.2, %v1279_v36 }
 0x145   : > { %2360 = vst.msk [vmem:[%s3302_s24 + $0x1a4] sm:$0xf] %vm2254_vm3, %v2814_v42  ;;  %v2819_v50 = vpack.c.bf16 %v1724_v48, %v1724_v48  ;;  %v1658_v51 = vsel %vm1402_vm1, %v1023_v35, %v1530_v44  ;;  %vm1405_vm4 = vcmp.ge.f32.partialorder %v2957_v40, 0.0  ;;  %v1533_v52 = vmul.f32 0.2, %v2957_v40  ;;  %v2960_v62 = vpop.f32.mrb[48].mxu0 }
 0x146   : > { %2301 = vst.msk [vmem:[%s3302_s24 + $0xb8] sm:$0xf] %vm2254_vm3, %v2755_v47  ;;  %v2753_v53 = vpack.c.bf16 %v1658_v51, %v1658_v51  ;;  %v1722_v54 = vsel %vm1466_vm2, %v1279_v36, %v1594_v49  ;;  %vm1469_vm5 = vcmp.ge.f32.partialorder %v3021_v41, 0.0  ;;  %v1597_v55 = vmul.f32 0.2, %v3021_v41  ;;  %v3024_v63 = vpop.f32.mrb[48].mxu1 }
 0x147   : > { %2365 = vst.msk [vmem:[%s3302_s24 + $0x1b8] sm:$0xf] %vm2254_vm3, %v2819_v50  ;;  %v2817_v56 = vpack.c.bf16 %v1722_v54, %v1722_v54  ;;  %v1661_v57 = vsel %vm1405_vm4, %v2957_v40, %v1533_v52  ;;  %vm1403_vm6 = vcmp.ge.f32.partialorder %v1026_v45, 0.0  ;;  %v1531_v58 = vmul.f32 0.2, %v1026_v45  ;;  %v1039_v3 = vpop.f32.mrb[49].mxu0 }
 0x148   : > { %2299 = vst.msk [vmem:[%s3302_s24 + $0xb0] sm:$0xf] %vm2254_vm3, %v2753_v53  ;;  %v2756_v59 = vpack.c.bf16 %v1661_v57, %v1661_v57  ;;  %v1725_v60 = vsel %vm1469_vm5, %v3021_v41, %v1597_v55  ;;  %vm1467_vm7 = vcmp.ge.f32.partialorder %v1282_v46, 0.0  ;;  %v1595_v61 = vmul.f32 0.2, %v1282_v46  ;;  %v1295_v4 = vpop.f32.mrb[49].mxu1 }
 0x149   : > { %2363 = vst.msk [vmem:[%s3302_s24 + $0x1b0] sm:$0xf] %vm2254_vm3, %v2817_v56  ;;  %v2820_v0 = vpack.c.bf16 %v1725_v60, %v1725_v60  ;;  %v1659_v1 = vsel %vm1403_vm6, %v1026_v45, %v1531_v58  ;;  %vm1408_vm8 = vcmp.ge.f32.partialorder %v2960_v62, 0.0  ;;  %v1536_v2 = vmul.f32 0.2, %v2960_v62  ;;  %v2961_v8 = vpop.f32.mrb[50].mxu0 }
 0x14a   : > { %2302 = vst.msk [vmem:[%s3302_s24 + $0xbc] sm:$0xf] %vm2254_vm3, %v2756_v59  ;;  %v2754_v5 = vpack.c.bf16 %v1659_v1, %v1659_v1  ;;  %v1723_v6 = vsel %vm1467_vm7, %v1282_v46, %v1595_v61  ;;  %vm1472_vm9 = vcmp.ge.f32.partialorder %v3024_v63, 0.0  ;;  %v1600_v7 = vmul.f32 0.2, %v3024_v63  ;;  %v3025_v9 = vpop.f32.mrb[50].mxu1 }
 0x14b   : > { %2366 = vst.msk [vmem:[%s3302_s24 + $0x1bc] sm:$0xf] %vm2254_vm3, %v2820_v0  ;;  %v2818_v10 = vpack.c.bf16 %v1723_v6, %v1723_v6  ;;  %v1664_v11 = vsel %vm1408_vm8, %v2960_v62, %v1536_v2  ;;  %vm1406_vm10 = vcmp.ge.f32.partialorder %v1039_v3, 0.0  ;;  %v1534_v12 = vmul.f32 0.2, %v1039_v3  ;;  %v1042_v13 = vpop.f32.mrb[51].mxu0 }
 0x14c   : > { %v1298_v14 = vpop.f32.mrb[51].mxu1  ;;  %2300 = vst.msk [vmem:[%s3302_s24 + $0xb4] sm:$0xf] %vm2254_vm3, %v2754_v5  ;;  %v2759_v15 = vpack.c.bf16 %v1664_v11, %v1664_v11  ;;  %v1728_v16 = vsel %vm1472_vm9, %v3024_v63, %v1600_v7  ;;  %vm1470_vm11 = vcmp.ge.f32.partialorder %v1295_v4, 0.0  ;;  %v1598_v17 = vmul.f32 0.2, %v1295_v4 }
 0x14d   : > { %2364 = vst.msk [vmem:[%s3302_s24 + $0x1b4] sm:$0xf] %vm2254_vm3, %v2818_v10  ;;  %v2823_v18 = vpack.c.bf16 %v1728_v16, %v1728_v16  ;;  %v1662_v19 = vsel %vm1406_vm10, %v1039_v3, %v1534_v12  ;;  %vm1409_vm12 = vcmp.ge.f32.partialorder %v2961_v8, 0.0  ;;  %v1537_v20 = vmul.f32 0.2, %v2961_v8  ;;  %v2964_v30 = vpop.f32.mrb[52].mxu0 }
 0x14e   : > { %2305 = vst.msk [vmem:[%s3302_s24 + $0xc8] sm:$0xf] %vm2254_vm3, %v2759_v15  ;;  %v2757_v21 = vpack.c.bf16 %v1662_v19, %v1662_v19  ;;  %v1726_v22 = vsel %vm1470_vm11, %v1295_v4, %v1598_v17  ;;  %vm1473_vm13 = vcmp.ge.f32.partialorder %v3025_v9, 0.0  ;;  %v1601_v23 = vmul.f32 0.2, %v3025_v9  ;;  %v3028_v31 = vpop.f32.mrb[52].mxu1 }
 0x14f   : > { %2369 = vst.msk [vmem:[%s3302_s24 + $0x1c8] sm:$0xf] %vm2254_vm3, %v2823_v18  ;;  %v2821_v24 = vpack.c.bf16 %v1726_v22, %v1726_v22  ;;  %v1665_v25 = vsel %vm1409_vm12, %v2961_v8, %v1537_v20  ;;  %vm1407_vm14 = vcmp.ge.f32.partialorder %v1042_v13, 0.0  ;;  %v1535_v26 = vmul.f32 0.2, %v1042_v13  ;;  %v1055_v35 = vpop.f32.mrb[53].mxu0 }
 0x150   : > { %2303 = vst.msk [vmem:[%s3302_s24 + $0xc0] sm:$0xf] %vm2254_vm3, %v2757_v21  ;;  %v2760_v27 = vpack.c.bf16 %v1665_v25, %v1665_v25  ;;  %v1729_v28 = vsel %vm1473_vm13, %v3025_v9, %v1601_v23  ;;  %vm1471_vm15 = vcmp.ge.f32.partialorder %v1298_v14, 0.0  ;;  %v1599_v29 = vmul.f32 0.2, %v1298_v14  ;;  %v1311_v36 = vpop.f32.mrb[53].mxu1 }
 0x151   : > { %2367 = vst.msk [vmem:[%s3302_s24 + $0x1c0] sm:$0xf] %vm2254_vm3, %v2821_v24  ;;  %v2824_v32 = vpack.c.bf16 %v1729_v28, %v1729_v28  ;;  %v1663_v33 = vsel %vm1407_vm14, %v1042_v13, %v1535_v26  ;;  %vm1412_vm0 = vcmp.ge.f32.partialorder %v2964_v30, 0.0  ;;  %v1540_v34 = vmul.f32 0.2, %v2964_v30  ;;  %v2965_v40 = vpop.f32.mrb[54].mxu0 }
 0x152   : > { %2306 = vst.msk [vmem:[%s3302_s24 + $0xcc] sm:$0xf] %vm2254_vm3, %v2760_v27  ;;  %v2758_v37 = vpack.c.bf16 %v1663_v33, %v1663_v33  ;;  %v1727_v38 = vsel %vm1471_vm15, %v1298_v14, %v1599_v29  ;;  %vm1476_vm1 = vcmp.ge.f32.partialorder %v3028_v31, 0.0  ;;  %v1604_v39 = vmul.f32 0.2, %v3028_v31  ;;  %v3029_v41 = vpop.f32.mrb[54].mxu1 }
 0x153   : > { %2370 = vst.msk [vmem:[%s3302_s24 + $0x1cc] sm:$0xf] %vm2254_vm3, %v2824_v32  ;;  %v2822_v42 = vpack.c.bf16 %v1727_v38, %v1727_v38  ;;  %v1668_v43 = vsel %vm1412_vm0, %v2964_v30, %v1540_v34  ;;  %vm1410_vm2 = vcmp.ge.f32.partialorder %v1055_v35, 0.0  ;;  %v1538_v44 = vmul.f32 0.2, %v1055_v35  ;;  %v1058_v45 = vpop.f32.mrb[55].mxu0 }
 0x154   : > { %v1314_v46 = vpop.f32.mrb[55].mxu1  ;;  %2304 = vst.msk [vmem:[%s3302_s24 + $0xc4] sm:$0xf] %vm2254_vm3, %v2758_v37  ;;  %v2763_v47 = vpack.c.bf16 %v1668_v43, %v1668_v43  ;;  %v1732_v48 = vsel %vm1476_vm1, %v3028_v31, %v1604_v39  ;;  %vm1474_vm4 = vcmp.ge.f32.partialorder %v1311_v36, 0.0  ;;  %v1602_v49 = vmul.f32 0.2, %v1311_v36 }
 0x155   : > { %2368 = vst.msk [vmem:[%s3302_s24 + $0x1c4] sm:$0xf] %vm2254_vm3, %v2822_v42  ;;  %v2827_v50 = vpack.c.bf16 %v1732_v48, %v1732_v48  ;;  %v1666_v51 = vsel %vm1410_vm2, %v1055_v35, %v1538_v44  ;;  %vm1413_vm5 = vcmp.ge.f32.partialorder %v2965_v40, 0.0  ;;  %v1541_v52 = vmul.f32 0.2, %v2965_v40  ;;  %v2968_v62 = vpop.f32.mrb[56].mxu0 }
 0x156   : > { %2309 = vst.msk [vmem:[%s3302_s24 + $0xd8] sm:$0xf] %vm2254_vm3, %v2763_v47  ;;  %v2761_v53 = vpack.c.bf16 %v1666_v51, %v1666_v51  ;;  %v1730_v54 = vsel %vm1474_vm4, %v1311_v36, %v1602_v49  ;;  %vm1477_vm6 = vcmp.ge.f32.partialorder %v3029_v41, 0.0  ;;  %v1605_v55 = vmul.f32 0.2, %v3029_v41  ;;  %v3032_v63 = vpop.f32.mrb[56].mxu1 }
 0x157   : > { %2373 = vst.msk [vmem:[%s3302_s24 + $0x1d8] sm:$0xf] %vm2254_vm3, %v2827_v50  ;;  %v2825_v56 = vpack.c.bf16 %v1730_v54, %v1730_v54  ;;  %v1669_v57 = vsel %vm1413_vm5, %v2965_v40, %v1541_v52  ;;  %vm1411_vm7 = vcmp.ge.f32.partialorder %v1058_v45, 0.0  ;;  %v1539_v58 = vmul.f32 0.2, %v1058_v45  ;;  %v1071_v3 = vpop.f32.mrb[57].mxu0 }
 0x158   : > { %2307 = vst.msk [vmem:[%s3302_s24 + $0xd0] sm:$0xf] %vm2254_vm3, %v2761_v53  ;;  %v2764_v59 = vpack.c.bf16 %v1669_v57, %v1669_v57  ;;  %v1733_v60 = vsel %vm1477_vm6, %v3029_v41, %v1605_v55  ;;  %vm1475_vm8 = vcmp.ge.f32.partialorder %v1314_v46, 0.0  ;;  %v1603_v61 = vmul.f32 0.2, %v1314_v46  ;;  %v1327_v4 = vpop.f32.mrb[57].mxu1 }
 0x159   : > { %2371 = vst.msk [vmem:[%s3302_s24 + $0x1d0] sm:$0xf] %vm2254_vm3, %v2825_v56  ;;  %v2828_v0 = vpack.c.bf16 %v1733_v60, %v1733_v60  ;;  %v1667_v1 = vsel %vm1411_vm7, %v1058_v45, %v1539_v58  ;;  %vm1416_vm9 = vcmp.ge.f32.partialorder %v2968_v62, 0.0  ;;  %v1544_v2 = vmul.f32 0.2, %v2968_v62  ;;  %v2969_v8 = vpop.f32.mrb[58].mxu0 }
 0x15a   : > { %2310 = vst.msk [vmem:[%s3302_s24 + $0xdc] sm:$0xf] %vm2254_vm3, %v2764_v59  ;;  %v2762_v5 = vpack.c.bf16 %v1667_v1, %v1667_v1  ;;  %v1731_v6 = vsel %vm1475_vm8, %v1314_v46, %v1603_v61  ;;  %vm1480_vm10 = vcmp.ge.f32.partialorder %v3032_v63, 0.0  ;;  %v1608_v7 = vmul.f32 0.2, %v3032_v63  ;;  %v3033_v9 = vpop.f32.mrb[58].mxu1 }
 0x15b   : > { %2374 = vst.msk [vmem:[%s3302_s24 + $0x1dc] sm:$0xf] %vm2254_vm3, %v2828_v0  ;;  %v2826_v10 = vpack.c.bf16 %v1731_v6, %v1731_v6  ;;  %v1672_v11 = vsel %vm1416_vm9, %v2968_v62, %v1544_v2  ;;  %vm1414_vm11 = vcmp.ge.f32.partialorder %v1071_v3, 0.0  ;;  %v1542_v12 = vmul.f32 0.2, %v1071_v3  ;;  %v1074_v13 = vpop.f32.mrb[59].mxu0 }
 0x15c   : > { %v1330_v14 = vpop.f32.mrb[59].mxu1  ;;  %2308 = vst.msk [vmem:[%s3302_s24 + $0xd4] sm:$0xf] %vm2254_vm3, %v2762_v5  ;;  %v2767_v15 = vpack.c.bf16 %v1672_v11, %v1672_v11  ;;  %v1736_v16 = vsel %vm1480_vm10, %v3032_v63, %v1608_v7  ;;  %vm1478_vm12 = vcmp.ge.f32.partialorder %v1327_v4, 0.0  ;;  %v1606_v17 = vmul.f32 0.2, %v1327_v4 }
 0x15d   : > { %2372 = vst.msk [vmem:[%s3302_s24 + $0x1d4] sm:$0xf] %vm2254_vm3, %v2826_v10  ;;  %v2831_v18 = vpack.c.bf16 %v1736_v16, %v1736_v16  ;;  %v1670_v19 = vsel %vm1414_vm11, %v1071_v3, %v1542_v12  ;;  %vm1417_vm13 = vcmp.ge.f32.partialorder %v2969_v8, 0.0  ;;  %v1545_v20 = vmul.f32 0.2, %v2969_v8  ;;  %v2972_v30 = vpop.f32.mrb[60].mxu0 }
 0x15e   : > { %2313 = vst.msk [vmem:[%s3302_s24 + $0xe8] sm:$0xf] %vm2254_vm3, %v2767_v15  ;;  %v2765_v21 = vpack.c.bf16 %v1670_v19, %v1670_v19  ;;  %v1734_v22 = vsel %vm1478_vm12, %v1327_v4, %v1606_v17  ;;  %vm1481_vm14 = vcmp.ge.f32.partialorder %v3033_v9, 0.0  ;;  %v1609_v23 = vmul.f32 0.2, %v3033_v9  ;;  %v3036_v31 = vpop.f32.mrb[60].mxu1 }
 0x15f   : > { %2377 = vst.msk [vmem:[%s3302_s24 + $0x1e8] sm:$0xf] %vm2254_vm3, %v2831_v18  ;;  %v2829_v24 = vpack.c.bf16 %v1734_v22, %v1734_v22  ;;  %v1673_v25 = vsel %vm1417_vm13, %v2969_v8, %v1545_v20  ;;  %vm1415_vm15 = vcmp.ge.f32.partialorder %v1074_v13, 0.0  ;;  %v1543_v26 = vmul.f32 0.2, %v1074_v13  ;;  %v1087_v35 = vpop.f32.mrb[61].mxu0 }
 0x160   : > { %2311 = vst.msk [vmem:[%s3302_s24 + $0xe0] sm:$0xf] %vm2254_vm3, %v2765_v21  ;;  %v2768_v27 = vpack.c.bf16 %v1673_v25, %v1673_v25  ;;  %v1737_v28 = vsel %vm1481_vm14, %v3033_v9, %v1609_v23  ;;  %vm1479_vm0 = vcmp.ge.f32.partialorder %v1330_v14, 0.0  ;;  %v1607_v29 = vmul.f32 0.2, %v1330_v14  ;;  %v1343_v36 = vpop.f32.mrb[61].mxu1 }
 0x161   : > { %2375 = vst.msk [vmem:[%s3302_s24 + $0x1e0] sm:$0xf] %vm2254_vm3, %v2829_v24  ;;  %v2832_v32 = vpack.c.bf16 %v1737_v28, %v1737_v28  ;;  %v1671_v33 = vsel %vm1415_vm15, %v1074_v13, %v1543_v26  ;;  %vm1420_vm1 = vcmp.ge.f32.partialorder %v2972_v30, 0.0  ;;  %v1548_v34 = vmul.f32 0.2, %v2972_v30  ;;  %v2973_v40 = vpop.f32.mrb[62].mxu0 }
 0x162   : > { %2314 = vst.msk [vmem:[%s3302_s24 + $0xec] sm:$0xf] %vm2254_vm3, %v2768_v27  ;;  %v2766_v37 = vpack.c.bf16 %v1671_v33, %v1671_v33  ;;  %v1735_v38 = vsel %vm1479_vm0, %v1330_v14, %v1607_v29  ;;  %vm1484_vm2 = vcmp.ge.f32.partialorder %v3036_v31, 0.0  ;;  %v1612_v39 = vmul.f32 0.2, %v3036_v31  ;;  %v3037_v41 = vpop.f32.mrb[62].mxu1 }
 0x163   : > { %2378 = vst.msk [vmem:[%s3302_s24 + $0x1ec] sm:$0xf] %vm2254_vm3, %v2832_v32  ;;  %v2830_v42 = vpack.c.bf16 %v1735_v38, %v1735_v38  ;;  %v1676_v43 = vsel %vm1420_vm1, %v2972_v30, %v1548_v34  ;;  %vm1418_vm4 = vcmp.ge.f32.partialorder %v1087_v35, 0.0  ;;  %v1546_v44 = vmul.f32 0.2, %v1087_v35  ;;  %v1090_v45 = vpop.f32.mrb[63].mxu0 }
 0x164   : > { %v1346_v46 = vpop.f32.mrb[63].mxu1  ;;  %2312 = vst.msk [vmem:[%s3302_s24 + $0xe4] sm:$0xf] %vm2254_vm3, %v2766_v37  ;;  %v2771_v47 = vpack.c.bf16 %v1676_v43, %v1676_v43  ;;  %v1740_v48 = vsel %vm1484_vm2, %v3036_v31, %v1612_v39  ;;  %vm1482_vm5 = vcmp.ge.f32.partialorder %v1343_v36, 0.0  ;;  %v1610_v49 = vmul.f32 0.2, %v1343_v36 }
 0x165   : > { %2376 = vst.msk [vmem:[%s3302_s24 + $0x1e4] sm:$0xf] %vm2254_vm3, %v2830_v42  ;;  %v2835_v50 = vpack.c.bf16 %v1740_v48, %v1740_v48  ;;  %v1674_v51 = vsel %vm1418_vm4, %v1087_v35, %v1546_v44  ;;  %vm1421_vm6 = vcmp.ge.f32.partialorder %v2973_v40, 0.0  ;;  %v1549_v52 = vmul.f32 0.2, %v2973_v40 }
 0x166   : > { %2317 = vst.msk [vmem:[%s3302_s24 + $0xf8] sm:$0xf] %vm2254_vm3, %v2771_v47  ;;  %v2769_v53 = vpack.c.bf16 %v1674_v51, %v1674_v51  ;;  %v1738_v54 = vsel %vm1482_vm5, %v1343_v36, %v1610_v49  ;;  %vm1485_vm7 = vcmp.ge.f32.partialorder %v3037_v41, 0.0  ;;  %v1613_v55 = vmul.f32 0.2, %v3037_v41 }
 0x167   : > { %2381 = vst.msk [vmem:[%s3302_s24 + $0x1f8] sm:$0xf] %vm2254_vm3, %v2835_v50  ;;  %v2833_v56 = vpack.c.bf16 %v1738_v54, %v1738_v54  ;;  %v1677_v57 = vsel %vm1421_vm6, %v2973_v40, %v1549_v52  ;;  %vm1419_vm8 = vcmp.ge.f32.partialorder %v1090_v45, 0.0  ;;  %v1547_v58 = vmul.f32 0.2, %v1090_v45 }
 0x168   : > { %2315 = vst.msk [vmem:[%s3302_s24 + $0xf0] sm:$0xf] %vm2254_vm3, %v2769_v53  ;;  %v2772_v59 = vpack.c.bf16 %v1677_v57, %v1677_v57  ;;  %v1741_v60 = vsel %vm1485_vm7, %v3037_v41, %v1613_v55  ;;  %vm1483_vm9 = vcmp.ge.f32.partialorder %v1346_v46, 0.0  ;;  %v1611_v61 = vmul.f32 0.2, %v1346_v46 }
 0x169   : > { %2379 = vst.msk [vmem:[%s3302_s24 + $0x1f0] sm:$0xf] %vm2254_vm3, %v2833_v56  ;;  %v2836_v62 = vpack.c.bf16 %v1741_v60, %v1741_v60  ;;  %v1675_v63 = vsel %vm1419_vm8, %v1090_v45, %v1547_v58 }
 0x16a   : > { %2318 = vst.msk [vmem:[%s3302_s24 + $0xfc] sm:$0xf] %vm2254_vm3, %v2772_v59  ;;  %v2770_v0 = vpack.c.bf16 %v1675_v63, %v1675_v63  ;;  %v1739_v1 = vsel %vm1483_vm9, %v1346_v46, %v1611_v61 }
 0x16b   : > { %2382 = vst.msk [vmem:[%s3302_s24 + $0x1fc] sm:$0xf] %vm2254_vm3, %v2836_v62  ;;  %v2834_v2 = vpack.c.bf16 %v1739_v1, %v1739_v1 }
 0x16c   : > { %2316 = vst.msk [vmem:[%s3302_s24 + $0xf4] sm:$0xf] %vm2254_vm3, %v2770_v0 }
 0x16d   : > { %2380 = vst.msk [vmem:[%s3302_s24 + $0x1f4] sm:$0xf] %vm2254_vm3, %v2834_v2 }
 0x16e PF: > { %s12_s9 = sadd.s32 1, %s3125_s9  }
 0x16f   : > { %p9_p4 = scmp.ge.s32.totalorder %s12_s9, 4  }
 0x171   :  { %11 = sbr.rel (!%p9_p4) target bundleno = 1 (0x1), region = 58 }

// kernel: discriminator_forward.5
= control target key start
LH: loop header
LB: loop body
LE: loop exit
PB: predicated region body
PF: predicated region fallthrough
CT: control target
= control target key end

     0   :  { %vm624_vm0 = vcmask 130048   ;;  %s4187_s1 = inlined_call_operand.vmem [shape: bf16[128,16], index: 1, kind: input, shape index: {}]   ;;  %s4188_s0 = inlined_call_operand.vmem [shape: bf16[512,128], index: 0, kind: input, shape index: {}]   ;;  %s4189_s2 = inlined_call_operand.vmem [shape: f32[2,16], index: 2, kind: input, shape index: {}]   ;;  %s4190_s3 = inlined_call_operand.vmem [shape: bf16[512,16], index: 3, kind: output, shape index: {}]  }
   0x1   :  { %v1984_v0 = vld [vmem:[%s4187_s1] sm:$0xff]   ;;  %v1985_v1 = vld [vmem:[%s4187_s1 + $0x8] sm:$0xff]   ;;  %v1986_v2 = vld [vmem:[%s4187_s1 + $0x10] sm:$0xff]  }
   0x2   :  { %1888 = vmatprep.subr.bf16.mxu0 %v1984_v0  ;;  %1968 = vmatprep.subr.bf16.mxu1 %v1984_v0  ;;  %v1987_v3 = vld [vmem:[%s4187_s1 + $0x18] sm:$0xff]   ;;  %v1992_v4 = vld [vmem:[%s4188_s0] sm:$0xff]   ;;  %v1989_v6 = vld [vmem:[%s4187_s1 + $0x28] sm:$0xff]  }
   0x3   :  { %1889 = vmatpush3.bf16.msra.mxu0 %v1984_v0  ;;  %1976 = vmatpush3.bf16.msra.mxu1 %v1984_v0  ;;  %v1988_v5 = vld [vmem:[%s4187_s1 + $0x20] sm:$0xff]   ;;  %v1990_v7 = vld [vmem:[%s4187_s1 + $0x30] sm:$0xff]   ;;  %v1991_v8 = vld [vmem:[%s4187_s1 + $0x38] sm:$0xff]  }
   0x4   :  { %1890 = vmatprep.subr.bf16.mxu0 %v1985_v1  ;;  %1969 = vmatprep.subr.bf16.mxu1 %v1985_v1  ;;  %v2008_v9 = vld [vmem:[%s4188_s0 + $0x80] sm:$0xff]   ;;  %v1993_v10 = vld [vmem:[%s4188_s0 + $0x8] sm:$0xff]   ;;  %v1994_v11 = vld [vmem:[%s4188_s0 + $0x10] sm:$0xff]  }
   0x5   :  { %1904 = vmatprep.mubr.bf16.mxu0 %v1992_v4  ;;  %1936 = vmatprep.mubr.bf16.mxu1 %v2008_v9  ;;  %v2009_v12 = vld [vmem:[%s4188_s0 + $0x88] sm:$0xff]   ;;  %v2010_v13 = vld [vmem:[%s4188_s0 + $0x90] sm:$0xff]   ;;  %v1995_v14 = vld [vmem:[%s4188_s0 + $0x18] sm:$0xff]  }
   0x6   :  { %v1996_v15 = vld [vmem:[%s4188_s0 + $0x20] sm:$0xff]   ;;  %v2011_v16 = vld [vmem:[%s4188_s0 + $0x98] sm:$0xff]   ;;  %v1997_v18 = vld [vmem:[%s4188_s0 + $0x28] sm:$0xff]  }
   0x7   :  { %1891 = vmatpush3.bf16.msra.mxu0 %v1985_v1  ;;  %1977 = vmatpush3.bf16.msra.mxu1 %v1985_v1  ;;  %v2012_v17 = vld [vmem:[%s4188_s0 + $0xa0] sm:$0xff]   ;;  %v2013_v19 = vld [vmem:[%s4188_s0 + $0xa8] sm:$0xff]   ;;  %v1998_v20 = vld [vmem:[%s4188_s0 + $0x30] sm:$0xff]  }
   0x8   :  { %1892 = vmatprep.subr.bf16.mxu0 %v1986_v2  ;;  %1970 = vmatprep.subr.bf16.mxu1 %v1986_v2  ;;  %v2014_v21 = vld [vmem:[%s4188_s0 + $0xb0] sm:$0xff]   ;;  %v1999_v22 = vld [vmem:[%s4188_s0 + $0x38] sm:$0xff]   ;;  %v2000_v24 = vld [vmem:[%s4188_s0 + $0x40] sm:$0xff]  }
   0x9   :  { %v2015_v23 = vld [vmem:[%s4188_s0 + $0xb8] sm:$0xff]   ;;  %v2016_v25 = vld [vmem:[%s4188_s0 + $0xc0] sm:$0xff]   ;;  %v2001_v26 = vld [vmem:[%s4188_s0 + $0x48] sm:$0xff]  }
   0xa   :  { %v2017_v27 = vld [vmem:[%s4188_s0 + $0xc8] sm:$0xff]   ;;  %v2002_v28 = vld [vmem:[%s4188_s0 + $0x50] sm:$0xff]   ;;  %v2003_v30 = vld [vmem:[%s4188_s0 + $0x58] sm:$0xff]  }
   0xb   :  { %1893 = vmatpush3.bf16.msra.mxu0 %v1986_v2  ;;  %1978 = vmatpush3.bf16.msra.mxu1 %v1986_v2  ;;  %v2018_v29 = vld [vmem:[%s4188_s0 + $0xd0] sm:$0xff]   ;;  %v2019_v31 = vld [vmem:[%s4188_s0 + $0xd8] sm:$0xff]   ;;  %v2004_v32 = vld [vmem:[%s4188_s0 + $0x60] sm:$0xff]  }
   0xc   :  { %1894 = vmatprep.subr.bf16.mxu0 %v1987_v3  ;;  %1971 = vmatprep.subr.bf16.mxu1 %v1987_v3  ;;  %v2020_v33 = vld [vmem:[%s4188_s0 + $0xe0] sm:$0xff]   ;;  %v2005_v34 = vld [vmem:[%s4188_s0 + $0x68] sm:$0xff]   ;;  %v2006_v36 = vld [vmem:[%s4188_s0 + $0x70] sm:$0xff]  }
   0xd   :  { %v2021_v35 = vld [vmem:[%s4188_s0 + $0xe8] sm:$0xff]   ;;  %v2022_v37 = vld [vmem:[%s4188_s0 + $0xf0] sm:$0xff]   ;;  %v2007_v38 = vld [vmem:[%s4188_s0 + $0x78] sm:$0xff]  }
   0xe   :  { %v2023_v39 = vld [vmem:[%s4188_s0 + $0xf8] sm:$0xff]  }
   0xf   :  { %1895 = vmatpush3.bf16.msra.mxu0 %v1987_v3  ;;  %1979 = vmatpush3.bf16.msra.mxu1 %v1987_v3 }
  0x10   :  { %1896 = vmatprep.subr.bf16.mxu0 %v1988_v5  ;;  %1972 = vmatprep.subr.bf16.mxu1 %v1988_v5 }
  0x13   :  { %1897 = vmatpush3.bf16.msra.mxu0 %v1988_v5  ;;  %1980 = vmatpush3.bf16.msra.mxu1 %v1988_v5 }
  0x14   :  { %1898 = vmatprep.subr.bf16.mxu0 %v1989_v6  ;;  %1973 = vmatprep.subr.bf16.mxu1 %v1989_v6 }
  0x17   :  { %1899 = vmatpush3.bf16.msra.mxu0 %v1989_v6  ;;  %1981 = vmatpush3.bf16.msra.mxu1 %v1989_v6 }
  0x18   :  { %1900 = vmatprep.subr.bf16.mxu0 %v1990_v7  ;;  %1974 = vmatprep.subr.bf16.mxu1 %v1990_v7 }
  0x1b   :  { %1901 = vmatpush3.bf16.msra.mxu0 %v1990_v7  ;;  %1982 = vmatpush3.bf16.msra.mxu1 %v1990_v7 }
  0x1c   :  { %1902 = vmatprep.subr.bf16.mxu0 %v1991_v8  ;;  %1975 = vmatprep.subr.bf16.mxu1 %v1991_v8 }
  0x1f   :  { %1903 = vmatpush3.bf16.msra.mxu0 %v1991_v8  ;;  %1983 = vmatpush3.bf16.msra.mxu1 %v1991_v8 }
  0x22   :  { %1905 = vmatmul.mubr.bf16.vlgmr.msra.gmra.mrb[0].mxu0 %v1993_v10  ;;  %1937 = vmatmul.mubr.bf16.vlgmr.msra.gmra.mrb[0].mxu1 %v2009_v12 }
  0x23   :  { %1908 = vmatprep.mubr.bf16.mxu0 %v1994_v11  ;;  %1940 = vmatprep.mubr.bf16.mxu1 %v2010_v13 }
  0x2a   :  { %1909 = vmatmul.mubr.bf16.gmra.mrb[4].mxu0 %v1995_v14  ;;  %1941 = vmatmul.mubr.bf16.gmra.mrb[4].mxu1 %v2011_v16 }
  0x2b   :  { %1912 = vmatprep.mubr.bf16.mxu0 %v1996_v15  ;;  %1944 = vmatprep.mubr.bf16.mxu1 %v2012_v17 }
  0x32   :  { %1913 = vmatmul.mubr.bf16.gmra.mrb[8].mxu0 %v1997_v18  ;;  %1945 = vmatmul.mubr.bf16.gmra.mrb[8].mxu1 %v2013_v19 }
  0x33   :  { %1916 = vmatprep.mubr.bf16.mxu0 %v1998_v20  ;;  %1948 = vmatprep.mubr.bf16.mxu1 %v2014_v21 }
  0x3a   :  { %1917 = vmatmul.mubr.bf16.gmra.mrb[12].mxu0 %v1999_v22  ;;  %1949 = vmatmul.mubr.bf16.gmra.mrb[12].mxu1 %v2015_v23 }
  0x3b   :  { %1920 = vmatprep.mubr.bf16.mxu0 %v2000_v24  ;;  %1952 = vmatprep.mubr.bf16.mxu1 %v2016_v25 }
  0x42   :  { %1921 = vmatmul.mubr.bf16.gmra.mrb[16].mxu0 %v2001_v26  ;;  %1953 = vmatmul.mubr.bf16.gmra.mrb[16].mxu1 %v2017_v27 }
  0x43   :  { %1924 = vmatprep.mubr.bf16.mxu0 %v2002_v28  ;;  %1956 = vmatprep.mubr.bf16.mxu1 %v2018_v29 }
  0x4a   :  { %1925 = vmatmul.mubr.bf16.gmra.mrb[20].mxu0 %v2003_v30  ;;  %1957 = vmatmul.mubr.bf16.gmra.mrb[20].mxu1 %v2019_v31 }
  0x4b   :  { %1928 = vmatprep.mubr.bf16.mxu0 %v2004_v32  ;;  %1960 = vmatprep.mubr.bf16.mxu1 %v2020_v33 }
  0x52   :  { %1929 = vmatmul.mubr.bf16.gmra.mrb[24].mxu0 %v2005_v34  ;;  %1961 = vmatmul.mubr.bf16.gmra.mrb[24].mxu1 %v2021_v35 }
  0x53   :  { %1932 = vmatprep.mubr.bf16.mxu0 %v2006_v36  ;;  %1964 = vmatprep.mubr.bf16.mxu1 %v2022_v37 }
  0x5a   :  { %1933 = vmatmul.mubr.bf16.gmra.mrb[28].mxu0 %v2007_v38  ;;  %1965 = vmatmul.mubr.bf16.gmra.mrb[28].mxu1 %v2023_v39 }
  0xf5   :  { %v2166_v40 = vpop.f32.mrb[0].mxu0  ;;  %v2168_v41 = vpop.f32.mrb[0].mxu1 }
  0xf6   :  { %v2170_v42 = vpop.f32.mrb[1].mxu0  ;;  %v2172_v43 = vpop.f32.mrb[1].mxu1  ;;  %v628_v51 = vsel %vm624_vm0, %v2166_v40, 0.0 }
  0xf7   :  { %v2174_v44 = vpop.f32.mrb[2].mxu0  ;;  %v2176_v45 = vpop.f32.mrb[2].mxu1  ;;  %v625_v48 = vsel %vm624_vm0, %v2170_v42, 0.0 }
  0xf8   :  { %v2178_v46 = vpop.f32.mrb[3].mxu0  ;;  %v2180_v47 = vpop.f32.mrb[3].mxu1  ;;  %v630_v53 = vsel %vm624_vm0, %v2174_v44, 0.0 }
  0xf9   :  { %v626_v49 = vsel %vm624_vm0, %v2178_v46, 0.0 }
  0xfa   :  { %v627_v50 = vadd.f32 %v626_v49, %v625_v48 }
  0xfc   :  { %v629_v52 = vadd.f32 %v628_v51, %v627_v50 }
  0xfd   :  { %v2190_v54 = vpop.f32.mrb[4].mxu0  ;;  %v2192_v55 = vpop.f32.mrb[4].mxu1 }
  0xfe   :  { %v2194_v56 = vpop.f32.mrb[5].mxu0  ;;  %v631_v57 = vadd.f32 %v630_v53, %v629_v52  ;;  %v2196_v58 = vpop.f32.mrb[5].mxu1  ;;  %v636_v3 = vsel %vm624_vm0, %v2190_v54, 0.0 }
  0xff   :  { %v632_v59 = vsel %vm624_vm0, %v2194_v56, 0.0  ;;  %v2200_v60 = vpop.f32.mrb[6].mxu0  ;;  %v2202_v61 = vpop.f32.mrb[6].mxu1 }
 0x100   :  { %v633_v62 = vadd.f32 %v632_v59, %v631_v57  ;;  %v2204_v63 = vpop.f32.mrb[7].mxu0  ;;  %v2206_v0 = vpop.f32.mrb[7].mxu1  ;;  %v638_v5 = vsel %vm624_vm0, %v2200_v60, 0.0 }
 0x101   :  { %v634_v1 = vsel %vm624_vm0, %v2204_v63, 0.0 }
 0x102   :  { %v635_v2 = vadd.f32 %v634_v1, %v633_v62 }
 0x104   :  { %v637_v4 = vadd.f32 %v636_v3, %v635_v2 }
 0x105   :  { %v2214_v6 = vpop.f32.mrb[8].mxu0  ;;  %v2216_v7 = vpop.f32.mrb[8].mxu1 }
 0x106   :  { %v2218_v8 = vpop.f32.mrb[9].mxu0  ;;  %v639_v9 = vadd.f32 %v638_v5, %v637_v4  ;;  %v2220_v10 = vpop.f32.mrb[9].mxu1  ;;  %v644_v19 = vsel %vm624_vm0, %v2214_v6, 0.0 }
 0x107   :  { %v640_v11 = vsel %vm624_vm0, %v2218_v8, 0.0  ;;  %v2224_v12 = vpop.f32.mrb[10].mxu0  ;;  %v2226_v13 = vpop.f32.mrb[10].mxu1 }
 0x108   :  { %v641_v14 = vadd.f32 %v640_v11, %v639_v9  ;;  %v2228_v15 = vpop.f32.mrb[11].mxu0  ;;  %v2230_v16 = vpop.f32.mrb[11].mxu1  ;;  %v646_v21 = vsel %vm624_vm0, %v2224_v12, 0.0 }
 0x109   :  { %v642_v17 = vsel %vm624_vm0, %v2228_v15, 0.0 }
 0x10a   :  { %v643_v18 = vadd.f32 %v642_v17, %v641_v14 }
 0x10c   :  { %v645_v20 = vadd.f32 %v644_v19, %v643_v18 }
 0x10d   :  { %v2238_v22 = vpop.f32.mrb[12].mxu0  ;;  %v2240_v23 = vpop.f32.mrb[12].mxu1 }
 0x10e   :  { %v2242_v24 = vpop.f32.mrb[13].mxu0  ;;  %v647_v25 = vadd.f32 %v646_v21, %v645_v20  ;;  %v2244_v26 = vpop.f32.mrb[13].mxu1  ;;  %v652_v35 = vsel %vm624_vm0, %v2238_v22, 0.0 }
 0x10f   :  { %v648_v27 = vsel %vm624_vm0, %v2242_v24, 0.0  ;;  %v2248_v28 = vpop.f32.mrb[14].mxu0  ;;  %v2250_v29 = vpop.f32.mrb[14].mxu1 }
 0x110   :  { %v649_v30 = vadd.f32 %v648_v27, %v647_v25  ;;  %v2252_v31 = vpop.f32.mrb[15].mxu0  ;;  %v2254_v32 = vpop.f32.mrb[15].mxu1  ;;  %v654_v37 = vsel %vm624_vm0, %v2248_v28, 0.0 }
 0x111   :  { %v650_v33 = vsel %vm624_vm0, %v2252_v31, 0.0 }
 0x112   :  { %v651_v34 = vadd.f32 %v650_v33, %v649_v30 }
 0x114   :  { %v653_v36 = vadd.f32 %v652_v35, %v651_v34 }
 0x115   :  { %v2262_v38 = vpop.f32.mrb[16].mxu0  ;;  %v2264_v39 = vpop.f32.mrb[16].mxu1 }
 0x116   :  { %4268 = vst [vmem:[#allocation2_spill] sm:$0xff] %v2262_v38  ;;  %v2266_v48 = vpop.f32.mrb[17].mxu0  ;;  %v655_v49 = vadd.f32 %v654_v37, %v653_v36  ;;  %v2268_v50 = vpop.f32.mrb[17].mxu1  ;;  %v660_v3 = vsel %vm624_vm0, %v2262_v38, 0.0 }
 0x117   :  { %v656_v51 = vsel %vm624_vm0, %v2266_v48, 0.0  ;;  %v2272_v52 = vpop.f32.mrb[18].mxu0  ;;  %v2274_v53 = vpop.f32.mrb[18].mxu1 }
 0x118   :  { %4269 = vst [vmem:[#allocation3_spill] sm:$0xff] %v2272_v52  ;;  %v657_v57 = vadd.f32 %v656_v51, %v655_v49  ;;  %v2276_v59 = vpop.f32.mrb[19].mxu0  ;;  %v2278_v62 = vpop.f32.mrb[19].mxu1  ;;  %v662_v5 = vsel %vm624_vm0, %v2272_v52, 0.0 }
 0x119   :  { %v658_v1 = vsel %vm624_vm0, %v2276_v59, 0.0 }
 0x11a   :  { %v659_v2 = vadd.f32 %v658_v1, %v657_v57 }
 0x11c   :  { %v661_v4 = vadd.f32 %v660_v3, %v659_v2 }
 0x11d   :  { %v2286_v9 = vpop.f32.mrb[20].mxu0  ;;  %v2288_v11 = vpop.f32.mrb[20].mxu1 }
 0x11e   :  { %4270 = vst [vmem:[#allocation4_spill] sm:$0xff] %v2286_v9  ;;  %v2290_v14 = vpop.f32.mrb[21].mxu0  ;;  %v663_v17 = vadd.f32 %v662_v5, %v661_v4  ;;  %v2292_v18 = vpop.f32.mrb[21].mxu1  ;;  %v668_v35 = vsel %vm624_vm0, %v2286_v9, 0.0 }
 0x11f   :  { %4271 = vst [vmem:[#allocation5_spill] sm:$0xff] %v2290_v14  ;;  %v664_v19 = vsel %vm624_vm0, %v2290_v14, 0.0  ;;  %v2296_v20 = vpop.f32.mrb[22].mxu0  ;;  %v2298_v21 = vpop.f32.mrb[22].mxu1  ;;  %v688_v14 = vsel %vm624_vm0, %v2172_v43, 0.0 }
 0x120   :  { %4272 = vst [vmem:[#allocation6_spill] sm:$0xff] %v2296_v20  ;;  %v665_v25 = vadd.f32 %v664_v19, %v663_v17  ;;  %v2300_v27 = vpop.f32.mrb[23].mxu0  ;;  %v2302_v30 = vpop.f32.mrb[23].mxu1  ;;  %v670_v37 = vsel %vm624_vm0, %v2296_v20, 0.0 }
 0x121   :  { %4273 = vst [vmem:[#allocation7_spill] sm:$0xff] %v2300_v27  ;;  %v666_v33 = vsel %vm624_vm0, %v2300_v27, 0.0 }
 0x122   :  { %v667_v34 = vadd.f32 %v666_v33, %v665_v25 }
 0x124   :  { %v669_v36 = vadd.f32 %v668_v35, %v667_v34 }
 0x125   :  { %v2310_v49 = vpop.f32.mrb[24].mxu0  ;;  %v2312_v51 = vpop.f32.mrb[24].mxu1 }
 0x126   :  { %4274 = vst [vmem:[#allocation8_spill] sm:$0xff] %v2310_v49  ;;  %4275 = vst [vmem:[#allocation9_spill] sm:$0xff] %v2312_v51  ;;  %v2314_v57 = vpop.f32.mrb[25].mxu0  ;;  %v671_v1 = vadd.f32 %v670_v37, %v669_v36  ;;  %v2316_v2 = vpop.f32.mrb[25].mxu1  ;;  %v676_v35 = vsel %vm624_vm0, %v2310_v49, 0.0 }
 0x127   :  { %4276 = vst [vmem:[#allocation10_spill] sm:$0xff] %v2314_v57  ;;  %v672_v3 = vsel %vm624_vm0, %v2314_v57, 0.0  ;;  %v2320_v4 = vpop.f32.mrb[26].mxu0  ;;  %v2322_v5 = vpop.f32.mrb[26].mxu1 }
 0x128   :  { %4277 = vst [vmem:[#allocation11_spill] sm:$0xff] %v2320_v4  ;;  %4278 = vst [vmem:[#allocation12_spill] sm:$0xff] %v2322_v5  ;;  %v673_v17 = vadd.f32 %v672_v3, %v671_v1  ;;  %v2324_v19 = vpop.f32.mrb[27].mxu0  ;;  %v2326_v25 = vpop.f32.mrb[27].mxu1  ;;  %v678_v37 = vsel %vm624_vm0, %v2320_v4, 0.0 }
 0x129   :  { %4279 = vst [vmem:[#allocation13_spill] sm:$0xff] %v2324_v19  ;;  %4280 = vst [vmem:[#allocation14_spill] sm:$0xff] %v2326_v25  ;;  %v674_v33 = vsel %vm624_vm0, %v2324_v19, 0.0 }
 0x12a   :  { %v675_v34 = vadd.f32 %v674_v33, %v673_v17 }
 0x12c   :  { %v677_v36 = vadd.f32 %v676_v35, %v675_v34 }
 0x12d   :  { %v2334_v57 = vpop.f32.mrb[28].mxu0  ;;  %v2336_v20 = vpop.f32.mrb[28].mxu1 }
 0x12e   :  { %v2338_v1 = vpop.f32.mrb[29].mxu0  ;;  %v679_v3 = vadd.f32 %v678_v37, %v677_v36  ;;  %v2340_v9 = vpop.f32.mrb[29].mxu1  ;;  %v684_v36 = vsel %vm624_vm0, %v2334_v57, 0.0 }
 0x12f   :  { %4281 = vst [vmem:[#allocation15_spill] sm:$0xff] %v2338_v1  ;;  %4282 = vst [vmem:[#allocation16_spill] sm:$0xff] %v2340_v9  ;;  %v680_v19 = vsel %vm624_vm0, %v2338_v1, 0.0  ;;  %v2344_v17 = vpop.f32.mrb[30].mxu0  ;;  %v2346_v33 = vpop.f32.mrb[30].mxu1 }
 0x130   :  { %4283 = vst [vmem:[#allocation17_spill] sm:$0xff] %v2344_v17  ;;  %v681_v34 = vadd.f32 %v680_v19, %v679_v3  ;;  %v2348_v35 = vpop.f32.mrb[31].mxu0  ;;  %v2350_v4 = vpop.f32.mrb[31].mxu1  ;;  %v686_v1 = vsel %vm624_vm0, %v2344_v17, 0.0  ;;  %v690_v3 = vsel %vm624_vm0, %v2180_v47, 0.0 }
 0x131   :  { %4284 = vst [vmem:[#allocation18_spill] sm:$0xff] %v2348_v35  ;;  %v682_v49 = vsel %vm624_vm0, %v2348_v35, 0.0  ;;  %v692_v35 = vsel %vm624_vm0, %v2168_v41, 0.0 }
 0x132   :  { %v683_v27 = vadd.f32 %v682_v49, %v681_v34  ;;  %v694_v34 = vsel %vm624_vm0, %v2176_v45, 0.0 }
 0x134   :  { %v685_v37 = vadd.f32 %v684_v36, %v683_v27  ;;  %v696_v27 = vsel %vm624_vm0, %v2196_v58, 0.0 }
 0x136   :  { %v687_v52 = vadd.f32 %v686_v1, %v685_v37  ;;  %v698_v1 = vsel %vm624_vm0, %v2206_v0, 0.0 }
 0x138   :  { %v689_v19 = vadd.f32 %v688_v14, %v687_v52  ;;  %v700_v14 = vsel %vm624_vm0, %v2192_v55, 0.0 }
 0x13a   :  { %v691_v38 = vadd.f32 %v690_v3, %v689_v19  ;;  %v702_v19 = vsel %vm624_vm0, %v2202_v61, 0.0 }
 0x13c   :  { %v693_v49 = vadd.f32 %v692_v35, %v691_v38  ;;  %v704_v38 = vsel %vm624_vm0, %v2220_v10, 0.0 }
 0x13e   :  { %v695_v36 = vadd.f32 %v694_v34, %v693_v49  ;;  %v706_v49 = vsel %vm624_vm0, %v2230_v16, 0.0 }
 0x140   :  { %v697_v17 = vadd.f32 %v696_v27, %v695_v36  ;;  %v708_v27 = vsel %vm624_vm0, %v2216_v7, 0.0  ;;  %v710_v36 = vsel %vm624_vm0, %v2226_v13, 0.0 }
 0x142   :  { %v699_v52 = vadd.f32 %v698_v1, %v697_v17  ;;  %v712_v1 = vsel %vm624_vm0, %v2244_v26, 0.0 }
 0x144   :  { %v701_v37 = vadd.f32 %v700_v14, %v699_v52 }
 0x146   :  { %v703_v35 = vadd.f32 %v702_v19, %v701_v37  ;;  %v714_v37 = vsel %vm624_vm0, %v2254_v32, 0.0 }
 0x148   :  { %v705_v3 = vadd.f32 %v704_v38, %v703_v35  ;;  %v716_v38 = vsel %vm624_vm0, %v2240_v23, 0.0 }
 0x14a   :  { %v707_v34 = vadd.f32 %v706_v49, %v705_v3  ;;  %v718_v3 = vsel %vm624_vm0, %v2250_v29, 0.0  ;;  %v720_v49 = vsel %vm624_vm0, %v2268_v50, 0.0 }
 0x14c   :  { %v709_v17 = vadd.f32 %v708_v27, %v707_v34 }
 0x14e   :  { %v711_v52 = vadd.f32 %v710_v36, %v709_v17  ;;  %v722_v17 = vsel %vm624_vm0, %v2278_v62, 0.0 }
 0x150   :  { %v713_v14 = vadd.f32 %v712_v1, %v711_v52  ;;  %v724_v1 = vsel %vm624_vm0, %v2264_v39, 0.0 }
 0x152   :  { %v715_v19 = vadd.f32 %v714_v37, %v713_v14  ;;  %v726_v14 = vsel %vm624_vm0, %v2274_v53, 0.0  ;;  %v728_v37 = vsel %vm624_vm0, %v2292_v18, 0.0 }
 0x154   :  { %v717_v35 = vadd.f32 %v716_v38, %v715_v19 }
 0x156   :  { %v719_v34 = vadd.f32 %v718_v3, %v717_v35  ;;  %v730_v35 = vsel %vm624_vm0, %v2302_v30, 0.0 }
 0x158   :  { %v721_v27 = vadd.f32 %v720_v49, %v719_v34  ;;  %v732_v49 = vsel %vm624_vm0, %v2288_v11, 0.0 }
 0x15a   :  { %v723_v36 = vadd.f32 %v722_v17, %v721_v27  ;;  %v734_v27 = vsel %vm624_vm0, %v2298_v21, 0.0  ;;  %v736_v17 = vsel %vm624_vm0, %v2316_v2, 0.0 }
 0x15c   :  { %v725_v52 = vadd.f32 %v724_v1, %v723_v36 }
 0x15e   :  { %v727_v19 = vadd.f32 %v726_v14, %v725_v52  ;;  %v738_v52 = vsel %vm624_vm0, %v2326_v25, 0.0 }
 0x160   :  { %v729_v38 = vadd.f32 %v728_v37, %v727_v19  ;;  %v740_v37 = vsel %vm624_vm0, %v2312_v51, 0.0 }
 0x162   :  { %v731_v3 = vadd.f32 %v730_v35, %v729_v38  ;;  %v742_v38 = vsel %vm624_vm0, %v2322_v5, 0.0  ;;  %v744_v35 = vsel %vm624_vm0, %v2340_v9, 0.0 }
 0x164   :  { %v733_v34 = vadd.f32 %v732_v49, %v731_v3 }
 0x166   :  { %v735_v36 = vadd.f32 %v734_v27, %v733_v34  ;;  %v746_v34 = vsel %vm624_vm0, %v2350_v4, 0.0 }
 0x168   :  { %v737_v1 = vadd.f32 %v736_v17, %v735_v36  ;;  %v748_v17 = vsel %vm624_vm0, %v2336_v20, 0.0 }
 0x16a   :  { %v739_v14 = vadd.f32 %v738_v52, %v737_v1  ;;  %v750_v1 = vsel %vm624_vm0, %v2346_v33, 0.0 }
 0x16c   :  { %v741_v19 = vadd.f32 %v740_v37, %v739_v14 }
 0x16e   :  { %v743_v3 = vadd.f32 %v742_v38, %v741_v19 }
 0x170   :  { %v745_v49 = vadd.f32 %v744_v35, %v743_v3 }
 0x172   :  { %v747_v27 = vadd.f32 %v746_v34, %v745_v49  ;;  %v4293_v34 = vld [vmem:[#allocation7_spill] sm:$0xff] }
 0x174   :  { %v749_v36 = vadd.f32 %v748_v17, %v747_v27  ;;  %v4294_v27 = vld [vmem:[#allocation4_spill] sm:$0xff]  ;;  %v4296_v17 = vld [vmem:[#allocation6_spill] sm:$0xff] }
 0x176   :  { %v751_v52 = vadd.f32 %v750_v1, %v749_v36  ;;  %v4298_v1 = vld [vmem:[#allocation10_spill] sm:$0xff] }
 0x178   :  { %v752_v14 = vrot.slane %v751_v52, 4 }
 0x17a   :  { %v753_v37 = vadd.f32 %v752_v14, %v751_v52  ;;  %v4299_v14 = vld [vmem:[#allocation13_spill] sm:$0xff] }
 0x17c   :  { %v754_v5 = vrot.slane %v753_v37, 2 }
 0x17e   :  { %v755_v51 = vadd.f32 %v754_v5, %v753_v37  ;;  %v4290_v5 = vld [vmem:[#allocation3_spill] sm:$0xff] }
 0x180   :  { %v756_v25 = vrot.slane %v755_v51, 1 }
 0x182   :  { %v757_v9 = vadd.f32 %v756_v25, %v755_v51  ;;  %v4289_v51 = vld [vmem:[#allocation2_spill] sm:$0xff]  ;;  %v4291_v25 = vld [vmem:[#allocation5_spill] sm:$0xff] }
 0x184   :  { %v2422_v19 = vmul.f32 0.001953125, %v757_v9 }
 0x186   :  { %v2426_v38 = vsub.f32 %v2170_v42, %v2422_v19  ;;  %v2430_v35 = vsub.f32 %v2178_v46, %v2422_v19  ;;  %v2434_v3 = vsub.f32 %v2166_v40, %v2422_v19  ;;  %v2438_v49 = vsub.f32 %v2174_v44, %v2422_v19 }
 0x187   :  { %v2442_v9 = vsub.f32 %v2194_v56, %v2422_v19  ;;  %v2446_v42 = vsub.f32 %v2204_v63, %v2422_v19  ;;  %v2450_v46 = vsub.f32 %v2190_v54, %v2422_v19  ;;  %v2454_v40 = vsub.f32 %v2200_v60, %v2422_v19 }
 0x188   :  { %4285 = vst [vmem:[#allocation19_spill] sm:$0xff] %v2426_v38  ;;  %4286 = vst [vmem:[#allocation20_spill] sm:$0xff] %v2430_v35  ;;  %v2458_v44 = vsub.f32 %v2218_v8, %v2422_v19  ;;  %v2462_v56 = vsub.f32 %v2228_v15, %v2422_v19  ;;  %v2466_v63 = vsub.f32 %v2214_v6, %v2422_v19 }
 0x189   :  { %4287 = vst [vmem:[#allocation21_spill] sm:$0xff] %v2434_v3  ;;  %4288 = vst [vmem:[#allocation22_spill] sm:$0xff] %v2438_v49  ;;  %v2470_v54 = vsub.f32 %v2224_v12, %v2422_v19  ;;  %v2474_v60 = vsub.f32 %v2242_v24, %v2422_v19  ;;  %v2478_v8 = vsub.f32 %v2252_v31, %v2422_v19 }
 0x18a   :  { %v2482_v15 = vsub.f32 %v2238_v22, %v2422_v19  ;;  %v2486_v6 = vsub.f32 %v2248_v28, %v2422_v19  ;;  %v2490_v12 = vsub.f32 %v2266_v48, %v2422_v19  ;;  %v2494_v24 = vsub.f32 %v2276_v59, %v2422_v19 }
 0x18b   :  { %v2498_v31 = vsub.f32 %v4289_v51, %v2422_v19  ;;  %v2502_v22 = vsub.f32 %v4290_v5, %v2422_v19  ;;  %v2506_v28 = vsub.f32 %v4291_v25, %v2422_v19  ;;  %v2510_v48 = vsub.f32 %v4293_v34, %v2422_v19  ;;  %v4301_v51 = vld [vmem:[#allocation8_spill] sm:$0xff]  ;;  %v4302_v25 = vld [vmem:[#allocation11_spill] sm:$0xff] }
 0x18c   :  { %v2514_v59 = vsub.f32 %v4294_v27, %v2422_v19  ;;  %v2518_v36 = vsub.f32 %v4296_v17, %v2422_v19  ;;  %v2522_v52 = vsub.f32 %v4298_v1, %v2422_v19  ;;  %v2526_v37 = vsub.f32 %v4299_v14, %v2422_v19  ;;  %v4303_v27 = vld [vmem:[#allocation15_spill] sm:$0xff] }
 0x18d   :  { %4292 = vst [vmem:[#allocation2_spill] sm:$0xff] %v2506_v28  ;;  %v2530_v5 = vsub.f32 %v4301_v51, %v2422_v19  ;;  %v2534_v34 = vsub.f32 %v4302_v25, %v2422_v19  ;;  %v2538_v17 = vsub.f32 %v4303_v27, %v2422_v19  ;;  %v2546_v14 = vsub.f32 %v2334_v57, %v2422_v19 }
 0x18e   :  { %4295 = vst [vmem:[#allocation3_spill] sm:$0xff] %v2514_v59  ;;  %4297 = vst [vmem:[#allocation5_spill] sm:$0xff] %v2518_v36  ;;  %v4304_v36 = vld [vmem:[#allocation18_spill] sm:$0xff]  ;;  %v2554_v25 = vsub.f32 %v2172_v43, %v2422_v19  ;;  %v2558_v27 = vsub.f32 %v2180_v47, %v2422_v19  ;;  %v2566_v57 = vsub.f32 %v2176_v45, %v2422_v19 }
 0x18f   :  { %4300 = vst [vmem:[#allocation7_spill] sm:$0xff] %v2526_v37  ;;  %v2542_v1 = vsub.f32 %v4304_v36, %v2422_v19  ;;  %v4305_v37 = vld [vmem:[#allocation17_spill] sm:$0xff]  ;;  %v2562_v36 = vsub.f32 %v2168_v41, %v2422_v19  ;;  %v2574_v43 = vsub.f32 %v2206_v0, %v2422_v19  ;;  %v2578_v47 = vsub.f32 %v2192_v55, %v2422_v19 }
 0x190   :  { %v2550_v51 = vsub.f32 %v4305_v37, %v2422_v19  ;;  %v2570_v37 = vsub.f32 %v2196_v58, %v2422_v19  ;;  %v2582_v41 = vsub.f32 %v2202_v61, %v2422_v19  ;;  %v2586_v45 = vsub.f32 %v2220_v10, %v2422_v19 }
 0x191   :  { %v2590_v58 = vsub.f32 %v2230_v16, %v2422_v19  ;;  %v2594_v0 = vsub.f32 %v2216_v7, %v2422_v19  ;;  %v2598_v55 = vsub.f32 %v2226_v13, %v2422_v19  ;;  %v2602_v61 = vsub.f32 %v2244_v26, %v2422_v19 }
 0x192   :  { %v2606_v10 = vsub.f32 %v2254_v32, %v2422_v19  ;;  %v2610_v16 = vsub.f32 %v2240_v23, %v2422_v19  ;;  %v2614_v7 = vsub.f32 %v2250_v29, %v2422_v19  ;;  %v2618_v13 = vsub.f32 %v2268_v50, %v2422_v19 }
 0x193   :  { %4306 = vst [vmem:[#allocation4_spill] sm:$0xff] %v2590_v58  ;;  %4307 = vst [vmem:[#allocation6_spill] sm:$0xff] %v2594_v0  ;;  %v2622_v26 = vsub.f32 %v2278_v62, %v2422_v19  ;;  %v2626_v32 = vsub.f32 %v2264_v39, %v2422_v19  ;;  %v2630_v23 = vsub.f32 %v2274_v53, %v2422_v19 }
 0x194   :  { %4308 = vst [vmem:[#allocation10_spill] sm:$0xff] %v2598_v55  ;;  %4309 = vst [vmem:[#allocation13_spill] sm:$0xff] %v2602_v61  ;;  %v2634_v29 = vsub.f32 %v2292_v18, %v2422_v19  ;;  %v2638_v50 = vsub.f32 %v2302_v30, %v2422_v19  ;;  %v2642_v62 = vsub.f32 %v2288_v11, %v2422_v19 }
 0x195   :  { %4310 = vst [vmem:[#allocation8_spill] sm:$0xff] %v2606_v10  ;;  %4311 = vst [vmem:[#allocation11_spill] sm:$0xff] %v2610_v16  ;;  %v2646_v39 = vsub.f32 %v2298_v21, %v2422_v19  ;;  %v2650_v53 = vsub.f32 %v2316_v2, %v2422_v19  ;;  %v2670_v2 = vsub.f32 %v2350_v4, %v2422_v19 }
 0x196   :  { %4312 = vst [vmem:[#allocation15_spill] sm:$0xff] %v2614_v7  ;;  %4313 = vst [vmem:[#allocation18_spill] sm:$0xff] %v2618_v13  ;;  %v826_v4 = vmul.f32 %v2438_v49, %v2438_v49  ;;  %v829_v49 = vmul.f32 %v2450_v46, %v2450_v46 }
 0x197   :  { %4314 = vst [vmem:[#allocation17_spill] sm:$0xff] %v2622_v26  ;;  %4315 = vst [vmem:[#allocation23_spill] sm:$0xff] %v2626_v32 }
 0x198   :  { %4316 = vst [vmem:[#allocation24_spill] sm:$0xff] %v2630_v23  ;;  %4317 = vst [vmem:[#allocation25_spill] sm:$0xff] %v2634_v29  ;;  %v4321_v23 = vld [vmem:[#allocation14_spill] sm:$0xff]  ;;  %v4322_v29 = vld [vmem:[#allocation9_spill] sm:$0xff] }
 0x199   :  { %4318 = vst [vmem:[#allocation26_spill] sm:$0xff] %v2638_v50  ;;  %4319 = vst [vmem:[#allocation27_spill] sm:$0xff] %v2642_v62  ;;  %v2654_v18 = vsub.f32 %v4321_v23, %v2422_v19  ;;  %v2658_v30 = vsub.f32 %v4322_v29, %v2422_v19  ;;  %v4323_v50 = vld [vmem:[#allocation12_spill] sm:$0xff]  ;;  %v2674_v23 = vsub.f32 %v2336_v20, %v2422_v19 }
 0x19a   :  { %4320 = vst [vmem:[#allocation28_spill] sm:$0xff] %v2646_v39  ;;  %v2662_v11 = vsub.f32 %v4323_v50, %v2422_v19  ;;  %v4325_v62 = vld [vmem:[#allocation16_spill] sm:$0xff]  ;;  %4327 = vst [vmem:[#allocation12_spill] sm:$0xff] %v2670_v2  ;;  %v2678_v29 = vsub.f32 %v2346_v33, %v2422_v19  ;;  %v823_v50 = vmul.f32 %v2426_v38, %v2426_v38 }
 0x19b   :  { %v2666_v21 = vsub.f32 %v4325_v62, %v2422_v19  ;;  %4328 = vst [vmem:[#allocation16_spill] sm:$0xff] %v2674_v23  ;;  %v825_v62 = vmul.f32 %v2434_v3, %v2434_v3  ;;  %v827_v33 = vmul.f32 %v2442_v9, %v2442_v9 }
 0x19c   :  { %4324 = vst [vmem:[#allocation14_spill] sm:$0xff] %v2662_v11  ;;  %4329 = vst [vmem:[#allocation29_spill] sm:$0xff] %v2678_v29  ;;  %v824_v11 = vmul.f32 %v2430_v35, %v2430_v35  ;;  %v887_v2 = vsel %vm624_vm0, %v823_v50, 0.0  ;;  %v828_v35 = vmul.f32 %v2446_v42, %v2446_v42  ;;  %v892_v29 = vsel %vm624_vm0, %v826_v4, 0.0 }
 0x19d   :  { %4326 = vst [vmem:[#allocation9_spill] sm:$0xff] %v2666_v21  ;;  %v890_v19 = vsel %vm624_vm0, %v825_v62, 0.0  ;;  %v894_v50 = vsel %vm624_vm0, %v827_v33, 0.0  ;;  %v898_v62 = vsel %vm624_vm0, %v829_v49, 0.0  ;;  %v835_v49 = vmul.f32 %v2474_v60, %v2474_v60 }
 0x19e   :  { %v888_v20 = vsel %vm624_vm0, %v824_v11, 0.0  ;;  %v830_v11 = vmul.f32 %v2454_v40, %v2454_v40 }
 0x19f   :  { %v889_v23 = vadd.f32 %v888_v20, %v887_v2  ;;  %v896_v2 = vsel %vm624_vm0, %v828_v35, 0.0  ;;  %v834_v35 = vmul.f32 %v2470_v54, %v2470_v54 }
 0x1a1   :  { %v891_v38 = vadd.f32 %v890_v19, %v889_v23  ;;  %v831_v23 = vmul.f32 %v2458_v44, %v2458_v44 }
 0x1a3   :  { %v893_v3 = vadd.f32 %v892_v29, %v891_v38  ;;  %v832_v38 = vmul.f32 %v2462_v56, %v2462_v56  ;;  %v900_v29 = vsel %vm624_vm0, %v830_v11, 0.0  ;;  %v902_v33 = vsel %vm624_vm0, %v831_v23, 0.0 }
 0x1a4   :  { %v836_v11 = vmul.f32 %v2478_v8, %v2478_v8  ;;  %v837_v23 = vmul.f32 %v2482_v15, %v2482_v15 }
 0x1a5   :  { %v895_v21 = vadd.f32 %v894_v50, %v893_v3  ;;  %v833_v3 = vmul.f32 %v2466_v63, %v2466_v63 }
 0x1a7   :  { %v897_v20 = vadd.f32 %v896_v2, %v895_v21  ;;  %v904_v21 = vsel %vm624_vm0, %v832_v38, 0.0  ;;  %v838_v38 = vmul.f32 %v2486_v6, %v2486_v6 }
 0x1a9   :  { %v899_v19 = vadd.f32 %v898_v62, %v897_v20  ;;  %v906_v20 = vsel %vm624_vm0, %v833_v3, 0.0  ;;  %v839_v3 = vmul.f32 %v2490_v12, %v2490_v12 }
 0x1ab   :  { %v901_v4 = vadd.f32 %v900_v29, %v899_v19  ;;  %v908_v19 = vsel %vm624_vm0, %v834_v35, 0.0  ;;  %v840_v35 = vmul.f32 %v2494_v24, %v2494_v24 }
 0x1ad   :  { %v903_v50 = vadd.f32 %v902_v33, %v901_v4  ;;  %v910_v4 = vsel %vm624_vm0, %v835_v49, 0.0  ;;  %v841_v49 = vmul.f32 %v2498_v31, %v2498_v31 }
 0x1af   :  { %v905_v2 = vadd.f32 %v904_v21, %v903_v50  ;;  %v912_v50 = vsel %vm624_vm0, %v836_v11, 0.0  ;;  %v842_v11 = vmul.f32 %v2502_v22, %v2502_v22 }
 0x1b1   :  { %v907_v62 = vadd.f32 %v906_v20, %v905_v2  ;;  %v914_v2 = vsel %vm624_vm0, %v837_v23, 0.0  ;;  %v843_v23 = vmul.f32 %v2506_v28, %v2506_v28 }
 0x1b3   :  { %v909_v29 = vadd.f32 %v908_v19, %v907_v62  ;;  %v916_v62 = vsel %vm624_vm0, %v838_v38, 0.0  ;;  %v844_v38 = vmul.f32 %v2510_v48, %v2510_v48 }
 0x1b5   :  { %v911_v33 = vadd.f32 %v910_v4, %v909_v29  ;;  %v918_v29 = vsel %vm624_vm0, %v839_v3, 0.0  ;;  %v845_v3 = vmul.f32 %v2514_v59, %v2514_v59 }
 0x1b7   :  { %v913_v21 = vadd.f32 %v912_v50, %v911_v33  ;;  %v920_v33 = vsel %vm624_vm0, %v840_v35, 0.0  ;;  %v4330_v35 = vld [vmem:[#allocation5_spill] sm:$0xff] }
 0x1b9   :  { %v915_v20 = vadd.f32 %v914_v2, %v913_v21  ;;  %v922_v21 = vsel %vm624_vm0, %v841_v49, 0.0  ;;  %v847_v49 = vmul.f32 %v2522_v52, %v2522_v52 }
 0x1bb   :  { %v917_v19 = vadd.f32 %v916_v62, %v915_v20  ;;  %v924_v20 = vsel %vm624_vm0, %v842_v11, 0.0  ;;  %v4331_v11 = vld [vmem:[#allocation7_spill] sm:$0xff] }
 0x1bd   :  { %v919_v4 = vadd.f32 %v918_v29, %v917_v19  ;;  %v926_v19 = vsel %vm624_vm0, %v843_v23, 0.0  ;;  %v849_v23 = vmul.f32 %v2530_v5, %v2530_v5 }
 0x1bf   :  { %v921_v50 = vadd.f32 %v920_v33, %v919_v4  ;;  %v846_v4 = vmul.f32 %v4330_v35, %v4330_v35  ;;  %v928_v33 = vsel %vm624_vm0, %v844_v38, 0.0  ;;  %v850_v38 = vmul.f32 %v2534_v34, %v2534_v34 }
 0x1c1   :  { %v923_v2 = vadd.f32 %v922_v21, %v921_v50  ;;  %v930_v50 = vsel %vm624_vm0, %v845_v3, 0.0  ;;  %v938_v3 = vsel %vm624_vm0, %v849_v23, 0.0  ;;  %v855_v23 = vmul.f32 %v2554_v25, %v2554_v25 }
 0x1c3   :  { %v925_v62 = vadd.f32 %v924_v20, %v923_v2  ;;  %v848_v2 = vmul.f32 %v4331_v11, %v4331_v11  ;;  %v932_v20 = vsel %vm624_vm0, %v846_v4, 0.0  ;;  %v852_v4 = vmul.f32 %v2542_v1, %v2542_v1 }
 0x1c5   :  { %v927_v29 = vadd.f32 %v926_v19, %v925_v62  ;;  %v934_v62 = vsel %vm624_vm0, %v847_v49, 0.0 }
 0x1c7   :  { %v929_v28 = vadd.f32 %v928_v33, %v927_v29  ;;  %v936_v29 = vsel %vm624_vm0, %v848_v2, 0.0  ;;  %v854_v2 = vmul.f32 %v2550_v51, %v2550_v51 }
 0x1c9   :  { %v931_v21 = vadd.f32 %v930_v50, %v929_v28  ;;  %v851_v28 = vmul.f32 %v2538_v17, %v2538_v17 }
 0x1cb   :  { %v933_v59 = vadd.f32 %v932_v20, %v931_v21  ;;  %v940_v21 = vsel %vm624_vm0, %v850_v38, 0.0  ;;  %v942_v49 = vsel %vm624_vm0, %v851_v28, 0.0  ;;  %v856_v38 = vmul.f32 %v2558_v27, %v2558_v27 }
 0x1cc   :  { %v857_v28 = vmul.f32 %v2562_v36, %v2562_v36 }
 0x1cd   :  { %v935_v19 = vadd.f32 %v934_v62, %v933_v59  ;;  %v853_v59 = vmul.f32 %v2546_v14, %v2546_v14 }
 0x1cf   :  { %v937_v33 = vadd.f32 %v936_v29, %v935_v19  ;;  %v944_v19 = vsel %vm624_vm0, %v852_v4, 0.0  ;;  %v858_v4 = vmul.f32 %v2566_v57, %v2566_v57 }
 0x1d1   :  { %v939_v50 = vadd.f32 %v938_v3, %v937_v33  ;;  %v946_v33 = vsel %vm624_vm0, %v853_v59, 0.0  ;;  %v859_v59 = vmul.f32 %v2570_v37, %v2570_v37 }
 0x1d3   :  { %v941_v20 = vadd.f32 %v940_v21, %v939_v50  ;;  %v948_v50 = vsel %vm624_vm0, %v854_v2, 0.0  ;;  %v860_v2 = vmul.f32 %v2574_v43, %v2574_v43 }
 0x1d5   :  { %v943_v62 = vadd.f32 %v942_v49, %v941_v20  ;;  %v950_v20 = vsel %vm624_vm0, %v855_v23, 0.0  ;;  %v861_v23 = vmul.f32 %v2578_v47, %v2578_v47 }
 0x1d7   :  { %v945_v29 = vadd.f32 %v944_v19, %v943_v62  ;;  %v952_v62 = vsel %vm624_vm0, %v856_v38, 0.0  ;;  %v862_v38 = vmul.f32 %v2582_v41, %v2582_v41 }
 0x1d9   :  { %v947_v3 = vadd.f32 %v946_v33, %v945_v29  ;;  %v954_v29 = vsel %vm624_vm0, %v857_v28, 0.0  ;;  %v863_v28 = vmul.f32 %v2586_v45, %v2586_v45 }
 0x1db   :  { %v949_v21 = vadd.f32 %v948_v50, %v947_v3  ;;  %v956_v3 = vsel %vm624_vm0, %v858_v4, 0.0  ;;  %v864_v4 = vmul.f32 %v2590_v58, %v2590_v58 }
 0x1dd   :  { %v951_v49 = vadd.f32 %v950_v20, %v949_v21  ;;  %v958_v21 = vsel %vm624_vm0, %v859_v59, 0.0  ;;  %v865_v59 = vmul.f32 %v2594_v0, %v2594_v0 }
 0x1df   :  { %v953_v19 = vadd.f32 %v952_v62, %v951_v49  ;;  %v960_v49 = vsel %vm624_vm0, %v860_v2, 0.0  ;;  %v866_v2 = vmul.f32 %v2598_v55, %v2598_v55 }
 0x1e1   :  { %v955_v33 = vadd.f32 %v954_v29, %v953_v19  ;;  %v962_v19 = vsel %vm624_vm0, %v861_v23, 0.0  ;;  %v867_v23 = vmul.f32 %v2602_v61, %v2602_v61 }
 0x1e3   :  { %v957_v50 = vadd.f32 %v956_v3, %v955_v33  ;;  %v964_v33 = vsel %vm624_vm0, %v862_v38, 0.0  ;;  %v868_v38 = vmul.f32 %v2606_v10, %v2606_v10 }
 0x1e5   :  { %v959_v20 = vadd.f32 %v958_v21, %v957_v50  ;;  %v966_v50 = vsel %vm624_vm0, %v863_v28, 0.0  ;;  %v869_v28 = vmul.f32 %v2610_v16, %v2610_v16 }
 0x1e7   :  { %v961_v62 = vadd.f32 %v960_v49, %v959_v20  ;;  %v968_v20 = vsel %vm624_vm0, %v864_v4, 0.0  ;;  %v870_v4 = vmul.f32 %v2614_v7, %v2614_v7 }
 0x1e9   :  { %v963_v29 = vadd.f32 %v962_v19, %v961_v62  ;;  %v970_v62 = vsel %vm624_vm0, %v865_v59, 0.0  ;;  %v871_v59 = vmul.f32 %v2618_v13, %v2618_v13 }
 0x1eb   :  { %v965_v3 = vadd.f32 %v964_v33, %v963_v29  ;;  %v972_v29 = vsel %vm624_vm0, %v866_v2, 0.0  ;;  %v872_v2 = vmul.f32 %v2622_v26, %v2622_v26 }
 0x1ed   :  { %v967_v21 = vadd.f32 %v966_v50, %v965_v3  ;;  %v974_v3 = vsel %vm624_vm0, %v867_v23, 0.0  ;;  %v873_v23 = vmul.f32 %v2626_v32, %v2626_v32 }
 0x1ef   :  { %v969_v49 = vadd.f32 %v968_v20, %v967_v21  ;;  %v976_v21 = vsel %vm624_vm0, %v868_v38, 0.0  ;;  %v4332_v38 = vld [vmem:[#allocation24_spill] sm:$0xff] }
 0x1f1   :  { %v971_v19 = vadd.f32 %v970_v62, %v969_v49  ;;  %v978_v49 = vsel %vm624_vm0, %v869_v28, 0.0  ;;  %v4333_v28 = vld [vmem:[#allocation25_spill] sm:$0xff] }
 0x1f3   :  { %v973_v33 = vadd.f32 %v972_v29, %v971_v19  ;;  %v980_v19 = vsel %vm624_vm0, %v870_v4, 0.0  ;;  %v4334_v4 = vld [vmem:[#allocation26_spill] sm:$0xff] }
 0x1f5   :  { %v975_v50 = vadd.f32 %v974_v3, %v973_v33  ;;  %v982_v33 = vsel %vm624_vm0, %v871_v59, 0.0  ;;  %v4335_v59 = vld [vmem:[#allocation27_spill] sm:$0xff] }
 0x1f7   :  { %v977_v20 = vadd.f32 %v976_v21, %v975_v50  ;;  %v874_v50 = vmul.f32 %v4332_v38, %v4332_v38  ;;  %v984_v21 = vsel %vm624_vm0, %v872_v2, 0.0  ;;  %v878_v2 = vmul.f32 %v2646_v39, %v2646_v39 }
 0x1f9   :  { %v979_v62 = vadd.f32 %v978_v49, %v977_v20  ;;  %v875_v20 = vmul.f32 %v4333_v28, %v4333_v28  ;;  %v986_v49 = vsel %vm624_vm0, %v873_v23, 0.0 }
 0x1fb   :  { %v981_v29 = vadd.f32 %v980_v19, %v979_v62  ;;  %v876_v62 = vmul.f32 %v4334_v4, %v4334_v4  ;;  %v988_v19 = vsel %vm624_vm0, %v874_v50, 0.0  ;;  %v996_v50 = vsel %vm624_vm0, %v878_v2, 0.0  ;;  %v4338_v2 = vld [vmem:[#allocation12_spill] sm:$0xff] }
 0x1fd   :  { %v983_v3 = vadd.f32 %v982_v33, %v981_v29  ;;  %v877_v29 = vmul.f32 %v4335_v59, %v4335_v59  ;;  %v990_v33 = vsel %vm624_vm0, %v875_v20, 0.0 }
 0x1ff   :  { %v985_v13 = vadd.f32 %v984_v21, %v983_v3  ;;  %v992_v3 = vsel %vm624_vm0, %v876_v62, 0.0  ;;  %v994_v23 = vsel %vm624_vm0, %v877_v29, 0.0  ;;  %v4336_v62 = vld [vmem:[#allocation14_spill] sm:$0xff]  ;;  %v4337_v29 = vld [vmem:[#allocation9_spill] sm:$0xff] }
 0x201   :  { %v987_v26 = vadd.f32 %v986_v49, %v985_v13  ;;  %v879_v13 = vmul.f32 %v2650_v53, %v2650_v53 }
 0x203   :  { %v989_v32 = vadd.f32 %v988_v19, %v987_v26  ;;  %v880_v26 = vmul.f32 %v2654_v18, %v2654_v18  ;;  %v998_v20 = vsel %vm624_vm0, %v879_v13, 0.0  ;;  %v4339_v13 = vld [vmem:[#allocation16_spill] sm:$0xff] }
 0x205   :  { %v991_v38 = vadd.f32 %v990_v33, %v989_v32  ;;  %v881_v32 = vmul.f32 %v2658_v30, %v2658_v30 }
 0x207   :  { %v993_v21 = vadd.f32 %v992_v3, %v991_v38  ;;  %v882_v38 = vmul.f32 %v4336_v62, %v4336_v62  ;;  %v1000_v3 = vsel %vm624_vm0, %v880_v26, 0.0  ;;  %v4340_v26 = vld [vmem:[#allocation29_spill] sm:$0xff] }
 0x209   :  { %v995_v49 = vadd.f32 %v994_v23, %v993_v21  ;;  %v883_v21 = vmul.f32 %v4337_v29, %v4337_v29  ;;  %v1002_v23 = vsel %vm624_vm0, %v881_v32, 0.0 }
 0x20b   :  { %v997_v19 = vadd.f32 %v996_v50, %v995_v49  ;;  %v884_v49 = vmul.f32 %v4338_v2, %v4338_v2  ;;  %v1004_v50 = vsel %vm624_vm0, %v882_v38, 0.0 }
 0x20d   :  { %v999_v33 = vadd.f32 %v998_v20, %v997_v19  ;;  %v885_v19 = vmul.f32 %v4339_v13, %v4339_v13  ;;  %v1006_v20 = vsel %vm624_vm0, %v883_v21, 0.0 }
 0x20f   :  { %v1001_v39 = vadd.f32 %v1000_v3, %v999_v33  ;;  %v886_v33 = vmul.f32 %v4340_v26, %v4340_v26  ;;  %v1008_v3 = vsel %vm624_vm0, %v884_v49, 0.0 }
 0x211   :  { %v1003_v59 = vadd.f32 %v1002_v23, %v1001_v39  ;;  %v1010_v39 = vsel %vm624_vm0, %v885_v19, 0.0  ;;  %v1012_v23 = vsel %vm624_vm0, %v886_v33, 0.0  ;;  %v4350_v33 = vld [vmem:[#allocation20_spill] sm:$0xff] }
 0x213   :  { %v1005_v4 = vadd.f32 %v1004_v50, %v1003_v59 }
 0x215   :  { %v1007_v28 = vadd.f32 %v1006_v20, %v1005_v4  ;;  %v1025_v20 = vlaneseq }
 0x217   :  { %v1009_v7 = vadd.f32 %v1008_v3, %v1007_v28  ;;  %v1026_v0 = vshrl.u32 %v1025_v20, 7  ;;  %v1021_v28 = vld [vmem:[%s4189_s2] sm:$0x1]  ;;  %v4354_v20 = vld [vmem:[#allocation3_spill] sm:$0xff] }
 0x219   :  { %v1011_v32 = vadd.f32 %v1010_v39, %v1009_v7  ;;  %v1027_v49 = vsub.s32 0, %v1026_v0 }
 0x21b   :  { %v1013_v16 = vadd.f32 %v1012_v23, %v1011_v32  ;;  %v4352_v32 = vld [vmem:[#allocation22_spill] sm:$0xff] }
 0x21d   :  { %v1014_v38 = vrot.slane %v1013_v16, 4 }
 0x21f   :  { %v1015_v59 = vadd.f32 %v1014_v38, %v1013_v16 }
 0x221   :  { %v1016_v50 = vrot.slane %v1015_v59, 2 }
 0x223   :  { %v1017_v10 = vadd.f32 %v1016_v50, %v1015_v59 }
 0x225   :  { %v1018_v61 = vrot.slane %v1017_v10, 1 }
 0x227   :  { %v1019_v55 = vadd.f32 %v1018_v61, %v1017_v10 }
 0x229   :  { %v1020_v21 = vmul.f32 0.001953125, %v1019_v55 }
 0x22b   :  { %v1022_v4 = vadd.f32 1e-05, %v1020_v21 }
 0x22d   :  { %2024 = vrsqrt.f32 %v1022_v4  ;;  %v4353_v4 = vld [vmem:[#allocation2_spill] sm:$0xff] }
 0x237   :  { %v2025_v58 = vpop.eup %2024 }
 0x238   :  { %v1024_v7 = vmul.f32 %v2025_v58, %v1021_v28 }
 0x23a   :  { %v2875_v19 = vrot.slane %v1024_v7, %v1027_v49  ;;  %v4355_v49 = vld [vmem:[#allocation4_spill] sm:$0xff] }
 0x23c   :  { %v2879_v16 = vmul.f32 %v2875_v19, %v2650_v53  ;;  %v2883_v55 = vmul.f32 %v2875_v19, %v2654_v18  ;;  %v2887_v61 = vmul.f32 %v2875_v19, %v2658_v30  ;;  %v2891_v10 = vmul.f32 %v2875_v19, %v4336_v62  ;;  %v4349_v30 = vld [vmem:[#allocation19_spill] sm:$0xff] }
 0x23d   :  { %v2895_v58 = vmul.f32 %v2875_v19, %v4337_v29  ;;  %v2899_v0 = vmul.f32 %v2875_v19, %v4338_v2  ;;  %v2903_v53 = vmul.f32 %v2875_v19, %v4339_v13  ;;  %v2907_v18 = vmul.f32 %v2875_v19, %v4340_v26  ;;  %v4351_v29 = vld [vmem:[#allocation21_spill] sm:$0xff] }
 0x23e   :  { %4341 = vst [vmem:[#allocation5_spill] sm:$0xff] %v2879_v16  ;;  %4342 = vst [vmem:[#allocation7_spill] sm:$0xff] %v2883_v55  ;;  %v1029_v62 = vmul.f32 %v2875_v19, %v4349_v30  ;;  %v1030_v3 = vmul.f32 %v2875_v19, %v4350_v33  ;;  %v1031_v39 = vmul.f32 %v2875_v19, %v4351_v29  ;;  %v4356_v30 = vld [vmem:[#allocation6_spill] sm:$0xff]  ;;  %v4358_v29 = vld [vmem:[#allocation13_spill] sm:$0xff] }
 0x23f   :  { %4343 = vst [vmem:[#allocation14_spill] sm:$0xff] %v2887_v61  ;;  %4344 = vst [vmem:[#allocation9_spill] sm:$0xff] %v2891_v10  ;;  %v1032_v2 = vmul.f32 %v2875_v19, %v4352_v32  ;;  %v1033_v13 = vmul.f32 %v2875_v19, %v2442_v9  ;;  %v1034_v23 = vmul.f32 %v2875_v19, %v2446_v42  ;;  %v4357_v33 = vld [vmem:[#allocation10_spill] sm:$0xff]  ;;  %v4359_v32 = vld [vmem:[#allocation8_spill] sm:$0xff] }
 0x240   :  { %4345 = vst [vmem:[#allocation12_spill] sm:$0xff] %v2895_v58  ;;  %4346 = vst [vmem:[#allocation16_spill] sm:$0xff] %v2899_v0  ;;  %v1035_v26 = vmul.f32 %v2875_v19, %v2450_v46  ;;  %v1036_v38 = vmul.f32 %v2875_v19, %v2454_v40  ;;  %v1037_v59 = vmul.f32 %v2875_v19, %v2458_v44  ;;  %v4366_v0 = vld [vmem:[#allocation24_spill] sm:$0xff]  ;;  %v4367_v58 = vld [vmem:[#allocation25_spill] sm:$0xff] }
 0x241   :  { %4347 = vst [vmem:[#allocation29_spill] sm:$0xff] %v2903_v53  ;;  %4348 = vst [vmem:[#allocation30_spill] sm:$0xff] %v2907_v18  ;;  %v1038_v50 = vmul.f32 %v2875_v19, %v2462_v56  ;;  %v1039_v21 = vmul.f32 %v2875_v19, %v2466_v63  ;;  %v1040_v9 = vmul.f32 %v2875_v19, %v2470_v54  ;;  %v4364_v18 = vld [vmem:[#allocation17_spill] sm:$0xff]  ;;  %v4365_v53 = vld [vmem:[#allocation23_spill] sm:$0xff] }
 0x242   :  { %v1041_v42 = vmul.f32 %v2875_v19, %v2474_v60  ;;  %v1042_v46 = vmul.f32 %v2875_v19, %v2478_v8  ;;  %v1043_v40 = vmul.f32 %v2875_v19, %v2482_v15  ;;  %v1044_v44 = vmul.f32 %v2875_v19, %v2486_v6  ;;  %v4368_v61 = vld [vmem:[#allocation26_spill] sm:$0xff]  ;;  %v4369_v16 = vld [vmem:[#allocation27_spill] sm:$0xff] }
 0x243   :  { %v1045_v56 = vmul.f32 %v2875_v19, %v2490_v12  ;;  %v1046_v63 = vmul.f32 %v2875_v19, %v2494_v24  ;;  %v1047_v54 = vmul.f32 %v2875_v19, %v2498_v31  ;;  %v1048_v60 = vmul.f32 %v2875_v19, %v2502_v22 }
 0x244   :  { %v1049_v8 = vmul.f32 %v2875_v19, %v4353_v4  ;;  %v1050_v15 = vmul.f32 %v2875_v19, %v2510_v48  ;;  %v1051_v6 = vmul.f32 %v2875_v19, %v4354_v20  ;;  %v1052_v12 = vmul.f32 %v2875_v19, %v4330_v35  ;;  %v4360_v4 = vld [vmem:[#allocation11_spill] sm:$0xff] }
 0x245   :  { %v1053_v24 = vmul.f32 %v2875_v19, %v2522_v52  ;;  %v1054_v31 = vmul.f32 %v2875_v19, %v4331_v11  ;;  %v1055_v22 = vmul.f32 %v2875_v19, %v2530_v5  ;;  %v1056_v28 = vmul.f32 %v2875_v19, %v2534_v34  ;;  %v4362_v20 = vld [vmem:[#allocation15_spill] sm:$0xff] }
 0x246   :  { %v1057_v48 = vmul.f32 %v2875_v19, %v2538_v17  ;;  %v1058_v7 = vmul.f32 %v2875_v19, %v2542_v1  ;;  %v1059_v35 = vmul.f32 %v2875_v19, %v2546_v14  ;;  %v1060_v52 = vmul.f32 %v2875_v19, %v2550_v51 }
 0x247   :  { %v1061_v11 = vmul.f32 %v2875_v19, %v2554_v25  ;;  %v1062_v5 = vmul.f32 %v2875_v19, %v2558_v27  ;;  %v1063_v34 = vmul.f32 %v2875_v19, %v2562_v36  ;;  %v1064_v17 = vmul.f32 %v2875_v19, %v2566_v57 }
 0x248   :  { %v1065_v1 = vmul.f32 %v2875_v19, %v2570_v37  ;;  %v1066_v14 = vmul.f32 %v2875_v19, %v2574_v43  ;;  %v1067_v51 = vmul.f32 %v2875_v19, %v2578_v47  ;;  %v1068_v25 = vmul.f32 %v2875_v19, %v2582_v41 }
 0x249   :  { %v1069_v27 = vmul.f32 %v2875_v19, %v2586_v45  ;;  %v1070_v36 = vmul.f32 %v2875_v19, %v4355_v49  ;;  %v1071_v57 = vmul.f32 %v2875_v19, %v4356_v30  ;;  %v1072_v37 = vmul.f32 %v2875_v19, %v4357_v33  ;;  %v3006_v45 = vld [vmem:[%s4189_s2 + $0x1] ss:$0 sm:$0xff] }
 0x24a   :  { %v1073_v43 = vmul.f32 %v2875_v19, %v4358_v29  ;;  %v1074_v47 = vmul.f32 %v2875_v19, %v4359_v32  ;;  %v1075_v41 = vmul.f32 %v2875_v19, %v4360_v4  ;;  %4361 = vst [vmem:[#allocation19_spill] sm:$0xff] %v3006_v45  ;;  %v1076_v49 = vmul.f32 %v2875_v19, %v4362_v20  ;;  %v4363_v30 = vld [vmem:[#allocation18_spill] sm:$0xff]  ;;  %v4370_v45 = vld [vmem:[#allocation28_spill] sm:$0xff] }
 0x24b   :  { %v1077_v33 = vmul.f32 %v2875_v19, %v4363_v30  ;;  %v1078_v29 = vmul.f32 %v2875_v19, %v4364_v18  ;;  %v1079_v32 = vmul.f32 %v2875_v19, %v4365_v53  ;;  %v1080_v4 = vmul.f32 %v2875_v19, %v4366_v0 }
 0x24c   :  { %v1081_v10 = vmul.f32 %v2875_v19, %v4367_v58  ;;  %v1082_v55 = vmul.f32 %v2875_v19, %v4368_v61  ;;  %v1083_v20 = vmul.f32 %v2875_v19, %v4369_v16  ;;  %v1084_v30 = vmul.f32 %v2875_v19, %v4370_v45 }
 0x251   :  { %v4371_v18 = vld [vmem:[#allocation19_spill] sm:$0xff] }
 0x252   :  { %v3027_v53 = vadd.f32 %v4371_v18, %v1029_v62  ;;  %v3030_v0 = vadd.f32 %v4371_v18, %v1030_v3  ;;  %v3033_v58 = vadd.f32 %v4371_v18, %v1031_v39  ;;  %v3036_v61 = vadd.f32 %v4371_v18, %v1032_v2 }
 0x253   :  { %v3039_v16 = vadd.f32 %v4371_v18, %v1033_v13  ;;  %v3042_v19 = vadd.f32 %v4371_v18, %v1034_v23  ;;  %v3045_v45 = vadd.f32 %v4371_v18, %v1035_v26  ;;  %v3048_v62 = vadd.f32 %v4371_v18, %v1036_v38 }
 0x254   :  { %v3051_v3 = vadd.f32 %v4371_v18, %v1037_v59  ;;  %v3054_v39 = vadd.f32 %v4371_v18, %v1038_v50  ;;  %v3057_v2 = vadd.f32 %v4371_v18, %v1039_v21  ;;  %v3060_v13 = vadd.f32 %v4371_v18, %v1040_v9 }
 0x255   :  { %v3063_v23 = vadd.f32 %v4371_v18, %v1041_v42  ;;  %v3066_v26 = vadd.f32 %v4371_v18, %v1042_v46  ;;  %v3069_v38 = vadd.f32 %v4371_v18, %v1043_v40  ;;  %v3072_v59 = vadd.f32 %v4371_v18, %v1044_v44 }
 0x256   :  { %v3075_v50 = vadd.f32 %v4371_v18, %v1045_v56  ;;  %v3078_v21 = vadd.f32 %v4371_v18, %v1046_v63  ;;  %v3081_v9 = vadd.f32 %v4371_v18, %v1047_v54  ;;  %v3084_v42 = vadd.f32 %v4371_v18, %v1048_v60 }
 0x257   :  { %v3087_v46 = vadd.f32 %v4371_v18, %v1049_v8  ;;  %v3090_v40 = vadd.f32 %v4371_v18, %v1050_v15  ;;  %v3093_v44 = vadd.f32 %v4371_v18, %v1051_v6  ;;  %v3096_v56 = vadd.f32 %v4371_v18, %v1052_v12 }
 0x258   :  { %v3099_v63 = vadd.f32 %v4371_v18, %v1053_v24  ;;  %v3102_v54 = vadd.f32 %v4371_v18, %v1054_v31  ;;  %v3105_v60 = vadd.f32 %v4371_v18, %v1055_v22  ;;  %v3108_v8 = vadd.f32 %v4371_v18, %v1056_v28 }
 0x259   :  { %v3111_v15 = vadd.f32 %v4371_v18, %v1057_v48  ;;  %v3114_v6 = vadd.f32 %v4371_v18, %v1058_v7  ;;  %v3117_v12 = vadd.f32 %v4371_v18, %v1059_v35  ;;  %v3120_v24 = vadd.f32 %v4371_v18, %v1060_v52 }
 0x25a   :  { %v3123_v31 = vadd.f32 %v4371_v18, %v1061_v11  ;;  %v3126_v22 = vadd.f32 %v4371_v18, %v1062_v5  ;;  %v3129_v28 = vadd.f32 %v4371_v18, %v1063_v34  ;;  %v3132_v48 = vadd.f32 %v4371_v18, %v1064_v17 }
 0x25b   :  { %v3135_v7 = vadd.f32 %v4371_v18, %v1065_v1  ;;  %v3138_v35 = vadd.f32 %v4371_v18, %v1066_v14  ;;  %v3141_v52 = vadd.f32 %v4371_v18, %v1067_v51  ;;  %v3144_v11 = vadd.f32 %v4371_v18, %v1068_v25 }
 0x25c   :  { %v3147_v5 = vadd.f32 %v4371_v18, %v1069_v27  ;;  %v3150_v34 = vadd.f32 %v4371_v18, %v1070_v36  ;;  %v3153_v17 = vadd.f32 %v4371_v18, %v1071_v57  ;;  %v3156_v1 = vadd.f32 %v4371_v18, %v1072_v37 }
 0x25d   :  { %v3159_v14 = vadd.f32 %v4371_v18, %v1073_v43  ;;  %v3162_v51 = vadd.f32 %v4371_v18, %v1074_v47  ;;  %v3165_v25 = vadd.f32 %v4371_v18, %v1075_v41  ;;  %v3168_v27 = vadd.f32 %v4371_v18, %v1076_v49 }
 0x25e   :  { %v3171_v36 = vadd.f32 %v4371_v18, %v1077_v33  ;;  %v3174_v57 = vadd.f32 %v4371_v18, %v1078_v29  ;;  %v3177_v37 = vadd.f32 %v4371_v18, %v1079_v32  ;;  %v3180_v43 = vadd.f32 %v4371_v18, %v1080_v4  ;;  %v4381_v29 = vld [vmem:[#allocation5_spill] sm:$0xff]  ;;  %v4383_v32 = vld [vmem:[#allocation7_spill] sm:$0xff] }
 0x25f   :  { %4372 = vst [vmem:[#allocation20_spill] sm:$0xff] %v3162_v51  ;;  %v3183_v47 = vadd.f32 %v4371_v18, %v1081_v10  ;;  %v3186_v41 = vadd.f32 %v4371_v18, %v1082_v55  ;;  %v3189_v49 = vadd.f32 %v4371_v18, %v1083_v20  ;;  %v3192_v33 = vadd.f32 %v4371_v18, %v1084_v30  ;;  %v4387_v55 = vld [vmem:[#allocation9_spill] sm:$0xff]  ;;  %v4389_v20 = vld [vmem:[#allocation12_spill] sm:$0xff] }
 0x260   :  { %4373 = vst [vmem:[#allocation21_spill] sm:$0xff] %v3171_v36  ;;  %4374 = vst [vmem:[#allocation22_spill] sm:$0xff] %v3174_v57  ;;  %v3196_v57 = vadd.f32 %v4371_v18, %v4381_v29  ;;  %v3200_v4 = vadd.f32 %v4371_v18, %v4383_v32  ;;  %v3212_v30 = vadd.f32 %v4371_v18, %v4389_v20  ;;  %vm1162_vm1 = vcmp.ge.f32.partialorder %v3027_v53, 0.0 }
 0x261   :  { %4375 = vst [vmem:[#allocation2_spill] sm:$0xff] %v3177_v37  ;;  %4376 = vst [vmem:[#allocation3_spill] sm:$0xff] %v3180_v43  ;;  %v4385_v43 = vld [vmem:[#allocation14_spill] sm:$0xff]  ;;  %vm1163_vm2 = vcmp.ge.f32.partialorder %v3030_v0, 0.0  ;;  %vm1164_vm3 = vcmp.ge.f32.partialorder %v3033_v58, 0.0  ;;  %vm1165_vm4 = vcmp.ge.f32.partialorder %v3036_v61, 0.0 }
 0x262   :  { %4377 = vst [vmem:[#allocation4_spill] sm:$0xff] %v3183_v47  ;;  %4378 = vst [vmem:[#allocation6_spill] sm:$0xff] %v3186_v41  ;;  %v3204_v10 = vadd.f32 %v4371_v18, %v4385_v43  ;;  %v3208_v41 = vadd.f32 %v4371_v18, %v4387_v55  ;;  %vm1166_vm5 = vcmp.ge.f32.partialorder %v3039_v16, 0.0  ;;  %vm1167_vm6 = vcmp.ge.f32.partialorder %v3042_v19, 0.0  ;;  %v4393_v43 = vld [vmem:[#allocation29_spill] sm:$0xff] }
 0x263   :  { %4379 = vst [vmem:[#allocation10_spill] sm:$0xff] %v3189_v49  ;;  %4380 = vst [vmem:[#allocation13_spill] sm:$0xff] %v3192_v33  ;;  %v4391_v33 = vld [vmem:[#allocation16_spill] sm:$0xff]  ;;  %vm1168_vm7 = vcmp.ge.f32.partialorder %v3045_v45, 0.0  ;;  %vm1169_vm8 = vcmp.ge.f32.partialorder %v3048_v62, 0.0  ;;  %vm1170_vm9 = vcmp.ge.f32.partialorder %v3051_v3, 0.0 }
 0x264   :  { %4382 = vst [vmem:[#allocation8_spill] sm:$0xff] %v3196_v57  ;;  %4384 = vst [vmem:[#allocation11_spill] sm:$0xff] %v3200_v4  ;;  %v3216_v29 = vadd.f32 %v4371_v18, %v4391_v33  ;;  %v3229_v33 = vadd.f32 %v4371_v18, %v4393_v43  ;;  %vm1171_vm10 = vcmp.ge.f32.partialorder %v3054_v39, 0.0  ;;  %v1226_v32 = vmul.f32 0.2, %v3027_v53 }
 0x265   :  { %4386 = vst [vmem:[#allocation15_spill] sm:$0xff] %v3204_v10  ;;  %4388 = vst [vmem:[#allocation18_spill] sm:$0xff] %v3208_v41  ;;  %v1227_v55 = vmul.f32 0.2, %v3030_v0  ;;  %v1228_v20 = vmul.f32 0.2, %v3033_v58 }
 0x266   :  { %4390 = vst [vmem:[#allocation17_spill] sm:$0xff] %v3212_v30  ;;  %4392 = vst [vmem:[#allocation23_spill] sm:$0xff] %v3216_v29  ;;  %v4395_v29 = vld [vmem:[#allocation30_spill] sm:$0xff]  ;;  %vm1172_vm11 = vcmp.ge.f32.partialorder %v3057_v2, 0.0  ;;  %v1229_v41 = vmul.f32 0.2, %v3036_v61 }
 0x267   :  { %4394 = vst [vmem:[#allocation24_spill] sm:$0xff] %v3229_v33  ;;  %v3237_v30 = vadd.f32 %v4371_v18, %v4395_v29  ;;  %v1230_v10 = vmul.f32 0.2, %v3039_v16  ;;  %v1231_v43 = vmul.f32 0.2, %v3042_v19  ;;  %vm1173_vm12 = vcmp.ge.f32.partialorder %v3060_v13, 0.0 }
 0x268   :  { %v1232_v33 = vmul.f32 0.2, %v3045_v45  ;;  %v1233_v4 = vmul.f32 0.2, %v3048_v62  ;;  %v1234_v57 = vmul.f32 0.2, %v3051_v3  ;;  %v3250_v18 = vsel %vm1162_vm1, %v3027_v53, %v1226_v32 }
 0x269   :  { %4396 = vst [vmem:[#allocation25_spill] sm:$0xff] %v3237_v30  ;;  %4397 = vst [vmem:[#allocation26_spill] sm:$0xff] %v3250_v18  ;;  %vm1174_vm13 = vcmp.ge.f32.partialorder %v3063_v23, 0.0  ;;  %v1235_v29 = vmul.f32 0.2, %v3054_v39  ;;  %v3261_v47 = vsel %vm1163_vm2, %v3030_v0, %v1227_v55  ;;  %vm1175_vm14 = vcmp.ge.f32.partialorder %v3066_v26, 0.0 }
 0x26a   :  { %v1236_v30 = vmul.f32 0.2, %v3057_v2  ;;  %v3256_v49 = vmul.f32 0.2, %v3060_v13  ;;  %4398 = vst [vmem:[#allocation27_spill] sm:$0xff] %v3261_v47  ;;  %v3276_v18 = vsel %vm1164_vm3, %v3033_v58, %v1228_v20  ;;  %vm1176_vm15 = vcmp.ge.f32.partialorder %v3069_v38, 0.0 }
 0x26b   :  { %v3265_v37 = vmul.f32 0.2, %v3063_v23  ;;  %v3268_v53 = vmul.f32 0.2, %v3066_v26  ;;  %v3271_v32 = vmul.f32 0.2, %v3069_v38 }
 0x26c   :  { %4400 = vst [vmem:[#allocation19_spill] sm:$0xff] %v3276_v18  ;;  %v3280_v0 = vmul.f32 0.2, %v3072_v59  ;;  %v3283_v55 = vmul.f32 0.2, %v3075_v50  ;;  %vm1177_vm0 = vcmp.ge.f32.partialorder %v3072_v59, 0.0 }
 0x26d   :  { %4399 = vst [vmem:[#allocation28_spill] sm:$0xff] %v3271_v32  ;;  %v3286_v47 = vmul.f32 0.2, %v3078_v21  ;;  %v3291_v32 = vsel %vm1165_vm4, %v3036_v61, %v1229_v41  ;;  %v3295_v58 = vmul.f32 0.2, %v3081_v9  ;;  %vm1178_vm1 = vcmp.ge.f32.partialorder %v3075_v50, 0.0 }
 0x26e   :  { %4402 = vst [vmem:[#allocation7_spill] sm:$0xff] %v3291_v32  ;;  %v3298_v20 = vmul.f32 0.2, %v3084_v42  ;;  %v3301_v18 = vmul.f32 0.2, %v3087_v46  ;;  %vm1179_vm2 = vcmp.ge.f32.partialorder %v3078_v21, 0.0 }
 0x26f   :  { %4401 = vst [vmem:[#allocation5_spill] sm:$0xff] %v3286_v47  ;;  %v3306_v47 = vsel %vm1166_vm5, %v3039_v16, %v1230_v10  ;;  %v3310_v61 = vmul.f32 0.2, %v3090_v40  ;;  %v3313_v41 = vmul.f32 0.2, %v3093_v44  ;;  %vm1180_vm3 = vcmp.ge.f32.partialorder %v3081_v9, 0.0 }
 0x270   :  { %4403 = vst [vmem:[#allocation14_spill] sm:$0xff] %v3301_v18  ;;  %4404 = vst [vmem:[#allocation9_spill] sm:$0xff] %v3306_v47  ;;  %v3316_v32 = vmul.f32 0.2, %v3096_v56  ;;  %v3321_v18 = vsel %vm1167_vm6, %v3042_v19, %v1231_v43  ;;  %v3325_v16 = vmul.f32 0.2, %v3099_v63 }
 0x271   :  { %4406 = vst [vmem:[#allocation16_spill] sm:$0xff] %v3321_v18  ;;  %v3328_v10 = vmul.f32 0.2, %v3102_v54  ;;  %v3331_v47 = vmul.f32 0.2, %v3105_v60  ;;  %vm1181_vm4 = vcmp.ge.f32.partialorder %v3084_v42, 0.0 }
 0x272   :  { %4405 = vst [vmem:[#allocation12_spill] sm:$0xff] %v3316_v32  ;;  %v3336_v32 = vsel %vm1168_vm7, %v3045_v45, %v1232_v33  ;;  %v3340_v19 = vmul.f32 0.2, %v3108_v8  ;;  %v3343_v43 = vmul.f32 0.2, %v3111_v15  ;;  %vm1184_vm7 = vcmp.ge.f32.partialorder %v3093_v44, 0.0 }
 0x273   :  { %4407 = vst [vmem:[#allocation29_spill] sm:$0xff] %v3331_v47  ;;  %4408 = vst [vmem:[#allocation30_spill] sm:$0xff] %v3336_v32  ;;  %v3346_v18 = vmul.f32 0.2, %v3114_v6  ;;  %v3351_v47 = vsel %vm1169_vm8, %v3048_v62, %v1233_v4  ;;  %v3357_v45 = vmul.f32 0.2, %v3117_v12  ;;  %v3368_v62 = vsel %vm1170_vm9, %v3051_v3, %v1234_v57 }
 0x274   :  { %4409 = vst [vmem:[#allocation31_spill] sm:$0xff] %v3351_v47  ;;  %v3360_v33 = vmul.f32 0.2, %v3120_v24  ;;  %v3363_v32 = vmul.f32 0.2, %v3123_v31  ;;  %4411 = vst [vmem:[#allocation33_spill] sm:$0xff] %v3368_v62  ;;  %v3386_v3 = vsel %vm1171_vm10, %v3054_v39, %v1235_v29  ;;  %v3404_v39 = vsel %vm1172_vm11, %v3057_v2, %v1236_v30 }
 0x275   :  { %v3375_v4 = vmul.f32 0.2, %v3126_v22  ;;  %v3378_v47 = vmul.f32 0.2, %v3129_v28  ;;  %4413 = vst [vmem:[#allocation35_spill] sm:$0xff] %v3386_v3  ;;  %vm1188_vm9 = vcmp.ge.f32.partialorder %v3105_v60, 0.0  ;;  %v3423_v2 = vsel %vm1173_vm12, %v3060_v13, %v3256_v49 }
 0x276   :  { %4410 = vst [vmem:[#allocation32_spill] sm:$0xff] %v3363_v32  ;;  %v3381_v32 = vmul.f32 0.2, %v3132_v48  ;;  %v3393_v57 = vmul.f32 0.2, %v3135_v7  ;;  %4415 = vst [vmem:[#allocation37_spill] sm:$0xff] %v3404_v39  ;;  %v3442_v13 = vsel %vm1174_vm13, %v3063_v23, %v3265_v37  ;;  %v3461_v23 = vsel %vm1175_vm14, %v3066_v26, %v3268_v53 }
 0x277   :  { %v3396_v62 = vmul.f32 0.2, %v3138_v35  ;;  %vm1192_vm10 = vcmp.ge.f32.partialorder %v3117_v12, 0.0  ;;  %v3411_v29 = vmul.f32 0.2, %v3144_v11  ;;  %4417 = vst [vmem:[#allocation39_spill] sm:$0xff] %v3423_v2 }
 0x278   :  { %4412 = vst [vmem:[#allocation34_spill] sm:$0xff] %v3381_v32  ;;  %v3399_v32 = vmul.f32 0.2, %v3141_v52  ;;  %v3414_v3 = vmul.f32 0.2, %v3147_v5  ;;  %vm1196_vm11 = vcmp.ge.f32.partialorder %v3129_v28, 0.0 }
 0x279   :  { %v3430_v30 = vmul.f32 0.2, %v3153_v17  ;;  %v3433_v39 = vmul.f32 0.2, %v3156_v1  ;;  %4420 = vst [vmem:[#allocation42_spill] sm:$0xff] %v3442_v13  ;;  %vm1200_vm12 = vcmp.ge.f32.partialorder %v3141_v52, 0.0 }
 0x27a   :  { %4414 = vst [vmem:[#allocation36_spill] sm:$0xff] %v3399_v32  ;;  %v3417_v32 = vmul.f32 0.2, %v3150_v34  ;;  %v3449_v49 = vmul.f32 0.2, %v3162_v51  ;;  %4424 = vst [vmem:[#allocation46_spill] sm:$0xff] %v3461_v23 }
 0x27b   :  { %4418 = vst [vmem:[#allocation40_spill] sm:$0xff] %v3433_v39  ;;  %v3452_v2 = vmul.f32 0.2, %v3165_v25  ;;  %vm1204_vm13 = vcmp.ge.f32.partialorder %v3153_v17, 0.0  ;;  %v3468_v37 = vmul.f32 0.2, %v3171_v36 }
 0x27c   :  { %4416 = vst [vmem:[#allocation38_spill] sm:$0xff] %v3417_v32  ;;  %v3436_v32 = vmul.f32 0.2, %v3159_v14  ;;  %4421 = vst [vmem:[#allocation43_spill] sm:$0xff] %v3449_v49  ;;  %v4426_v13 = vld [vmem:[#allocation22_spill] sm:$0xff]  ;;  %v4430_v39 = vld [vmem:[#allocation28_spill] sm:$0xff] }
 0x27d   :  { %4422 = vst [vmem:[#allocation44_spill] sm:$0xff] %v3452_v2  ;;  %4425 = vst [vmem:[#allocation47_spill] sm:$0xff] %v3468_v37  ;;  %v3471_v2 = vmul.f32 0.2, %v4426_v13  ;;  %v3480_v26 = vsel %vm1176_vm15, %v3069_v38, %v4430_v39  ;;  %vm1208_vm14 = vcmp.ge.f32.partialorder %v3165_v25, 0.0  ;;  %v4432_v53 = vld [vmem:[#allocation3_spill] sm:$0xff]  ;;  %v3499_v38 = vsel %vm1177_vm0, %v3072_v59, %v3280_v0 }
 0x27e   :  { %4419 = vst [vmem:[#allocation41_spill] sm:$0xff] %v3436_v32  ;;  %v3455_v32 = vmul.f32 0.2, %v3168_v27  ;;  %4431 = vst [vmem:[#allocation28_spill] sm:$0xff] %v3480_v26  ;;  %v3487_v23 = vmul.f32 0.2, %v4432_v53  ;;  %v3512_v59 = vsel %vm1178_vm1, %v3075_v50, %v3283_v55 }
 0x27f   :  { %4427 = vst [vmem:[#allocation48_spill] sm:$0xff] %v3471_v2  ;;  %v4434_v2 = vld [vmem:[#allocation4_spill] sm:$0xff]  ;;  %4438 = vst [vmem:[#allocation53_spill] sm:$0xff] %v3499_v38  ;;  %v4439_v39 = vld [vmem:[#allocation10_spill] sm:$0xff]  ;;  %vm4453_vm8 = vcmp.ge.f32.partialorder %v3087_v46, 0.0 }
 0x280   :  { %4423 = vst [vmem:[#allocation45_spill] sm:$0xff] %v3455_v32  ;;  %v4428_v32 = vld [vmem:[#allocation2_spill] sm:$0xff]  ;;  %4433 = vst [vmem:[#allocation50_spill] sm:$0xff] %v3487_v23  ;;  %v3490_v37 = vmul.f32 0.2, %v4434_v2  ;;  %v4441_v13 = vld [vmem:[#allocation8_spill] sm:$0xff] }
 0x281   :  { %v3474_v49 = vmul.f32 0.2, %v4428_v32  ;;  %vm1212_vm15 = vcmp.ge.f32.partialorder %v4428_v32, 0.0  ;;  %v1280_v26 = vmul.f32 0.2, %v4439_v39  ;;  %4442 = vst [vmem:[#allocation54_spill] sm:$0xff] %v3512_v59 }
 0x282   :  { %4435 = vst [vmem:[#allocation51_spill] sm:$0xff] %v3490_v37  ;;  %v4440_v37 = vld [vmem:[#allocation13_spill] sm:$0xff]  ;;  %vm1216_vm0 = vcmp.ge.f32.partialorder %v4439_v39, 0.0  ;;  %v4443_v0 = vld [vmem:[#allocation11_spill] sm:$0xff]  ;;  %v4445_v53 = vld [vmem:[#allocation18_spill] sm:$0xff] }
 0x283   :  { %4429 = vst [vmem:[#allocation49_spill] sm:$0xff] %v3474_v49  ;;  %v4436_v49 = vld [vmem:[#allocation6_spill] sm:$0xff]  ;;  %v1281_v23 = vmul.f32 0.2, %v4440_v37  ;;  %v1283_v38 = vmul.f32 0.2, %v4443_v0 }
 0x284   :  { %v3493_v51 = vmul.f32 0.2, %v4436_v49  ;;  %v4444_v49 = vld [vmem:[#allocation15_spill] sm:$0xff]  ;;  %v1285_v32 = vmul.f32 0.2, %v4445_v53  ;;  %v4446_v36 = vld [vmem:[#allocation5_spill] sm:$0xff] }
 0x285   :  { %v1284_v2 = vmul.f32 0.2, %v4444_v49  ;;  %v3525_v50 = vsel %vm1179_vm2, %v3078_v21, %v4446_v36  ;;  %vm1220_vm1 = vcmp.ge.f32.partialorder %v4444_v49, 0.0  ;;  %v4448_v55 = vld [vmem:[#allocation17_spill] sm:$0xff]  ;;  %v4449_v59 = vld [vmem:[#allocation23_spill] sm:$0xff]  ;;  %v4450_v37 = vld [vmem:[#allocation24_spill] sm:$0xff]  ;;  %v3538_v21 = vsel %vm1180_vm3, %v3081_v9, %v3295_v58 }
 0x286   :  { %4437 = vst [vmem:[#allocation52_spill] sm:$0xff] %v3493_v51  ;;  %v1282_v51 = vmul.f32 0.2, %v4441_v13  ;;  %4447 = vst [vmem:[#allocation15_spill] sm:$0xff] %v3525_v50  ;;  %vm1222_vm5 = vcmp.ge.f32.partialorder %v4448_v55, 0.0  ;;  %vm1224_vm2 = vcmp.ge.f32.partialorder %v4450_v37, 0.0  ;;  %v3565_v58 = vsel %vm1184_vm7, %v3093_v44, %v3313_v41 }
 0x287   :  { %v1286_v0 = vmul.f32 0.2, %v4448_v55  ;;  %v1287_v13 = vmul.f32 0.2, %v4449_v59  ;;  %v1288_v39 = vmul.f32 0.2, %v4450_v37  ;;  %v3547_v55 = vsel %vm1181_vm4, %v3084_v42, %v3298_v20 }
 0x288   :  { %v4451_v36 = vld [vmem:[#allocation25_spill] sm:$0xff]  ;;  %v4452_v59 = vld [vmem:[#allocation14_spill] sm:$0xff]  ;;  %vm4454_vm3 = vcmp.ge.f32.partialorder %v3090_v40, 0.0  ;;  %v4455_v42 = vld [vmem:[#allocation12_spill] sm:$0xff]  ;;  %vm4456_vm4 = vcmp.ge.f32.partialorder %v3096_v56, 0.0  ;;  %vm4460_vm7 = vcmp.ge.f32.partialorder %v3108_v8, 0.0 }
 0x289   :  { %vm1225_vm6 = vcmp.ge.f32.partialorder %v4451_v36, 0.0  ;;  %v1289_v50 = vmul.f32 0.2, %v4451_v36  ;;  %v3553_v53 = vsel %vm4453_vm8, %v3087_v46, %v4452_v59  ;;  %v3559_v9 = vsel %vm4454_vm3, %v3090_v40, %v3310_v61  ;;  %v4459_v44 = vld [vmem:[#allocation29_spill] sm:$0xff]  ;;  %v4493_v59 = vld [vmem:[#allocation2_spill] sm:$0xff] }
 0x28a   :  { %v3571_v20 = vsel %vm4456_vm4, %v3096_v56, %v4455_v42  ;;  %vm4457_vm8 = vcmp.ge.f32.partialorder %v3099_v63, 0.0  ;;  %vm4458_vm3 = vcmp.ge.f32.partialorder %v3102_v54, 0.0  ;;  %v3589_v61 = vsel %vm1188_vm9, %v3105_v60, %v4459_v44  ;;  %v4495_v44 = vld [vmem:[#allocation3_spill] sm:$0xff] }
 0x28b   :  { %v3577_v46 = vsel %vm4457_vm8, %v3099_v63, %v3325_v16  ;;  %v3583_v40 = vsel %vm4458_vm3, %v3102_v54, %v3328_v10  ;;  %v3595_v56 = vsel %vm4460_vm7, %v3108_v8, %v3340_v19  ;;  %vm4461_vm4 = vcmp.ge.f32.partialorder %v3111_v15, 0.0 }
 0x28c   :  { %v3601_v63 = vsel %vm4461_vm4, %v3111_v15, %v3343_v43  ;;  %vm4462_vm8 = vcmp.ge.f32.partialorder %v3114_v6, 0.0  ;;  %vm1610_vm9 = vcmask 125952   ;;  %v3613_v60 = vsel %vm1192_vm10, %v3117_v12, %v3357_v45  ;;  %v4464_v15 = vld [vmem:[#allocation32_spill] sm:$0xff] }
 0x28d   :  { %v3607_v54 = vsel %vm4462_vm8, %v3114_v6, %v3346_v18  ;;  %vm4463_vm3 = vcmp.ge.f32.partialorder %v3120_v24, 0.0  ;;  %vm4465_vm7 = vcmp.ge.f32.partialorder %v3123_v31, 0.0  ;;  %vm4466_vm4 = vcmp.ge.f32.partialorder %v3126_v22, 0.0  ;;  %v4481_v43 = vld [vmem:[#allocation20_spill] sm:$0xff] }
 0x28e   :  { %v3619_v8 = vsel %vm4463_vm3, %v3120_v24, %v3360_v33  ;;  %v3625_v41 = vsel %vm4465_vm7, %v3123_v31, %v4464_v15  ;;  %v3631_v6 = vsel %vm4466_vm4, %v3126_v22, %v3375_v4  ;;  %v3637_v12 = vsel %vm1196_vm11, %v3129_v28, %v3378_v47  ;;  %v4467_v24 = vld [vmem:[#allocation34_spill] sm:$0xff]  ;;  %v4471_v28 = vld [vmem:[#allocation36_spill] sm:$0xff]  ;;  %v4487_v4 = vld [vmem:[#allocation21_spill] sm:$0xff] }
 0x28f   :  { %vm4468_vm10 = vcmp.ge.f32.partialorder %v3132_v48, 0.0  ;;  %vm4469_vm8 = vcmp.ge.f32.partialorder %v3135_v7, 0.0  ;;  %vm4470_vm3 = vcmp.ge.f32.partialorder %v3138_v35, 0.0  ;;  %v3661_v47 = vsel %vm1200_vm12, %v3141_v52, %v4471_v28  ;;  %v4498_v28 = vld [vmem:[#allocation4_spill] sm:$0xff] }
 0x290   :  { %v3643_v18 = vsel %vm4468_vm10, %v3132_v48, %v4467_v24  ;;  %v3649_v31 = vsel %vm4469_vm8, %v3135_v7, %v3393_v57  ;;  %v3655_v22 = vsel %vm4470_vm3, %v3138_v35, %v3396_v62  ;;  %vm4472_vm11 = vcmp.ge.f32.partialorder %v3144_v11, 0.0  ;;  %v4474_v35 = vld [vmem:[#allocation38_spill] sm:$0xff]  ;;  %v4489_v57 = vld [vmem:[#allocation48_spill] sm:$0xff]  ;;  %v4497_v24 = vld [vmem:[#allocation51_spill] sm:$0xff] }
 0x291   :  { %v3667_v48 = vsel %vm4472_vm11, %v3144_v11, %v3411_v29  ;;  %vm4473_vm7 = vcmp.ge.f32.partialorder %v3147_v5, 0.0  ;;  %vm4475_vm4 = vcmp.ge.f32.partialorder %v3150_v34, 0.0  ;;  %v3685_v52 = vsel %vm1204_vm13, %v3153_v17, %v3430_v30  ;;  %v4476_v11 = vld [vmem:[#allocation40_spill] sm:$0xff]  ;;  %v4490_v29 = vld [vmem:[#allocation22_spill] sm:$0xff] }
 0x292   :  { %v3673_v7 = vsel %vm4473_vm7, %v3147_v5, %v3414_v3  ;;  %v3679_v16 = vsel %vm4475_vm4, %v3150_v34, %v4474_v35  ;;  %vm4477_vm12 = vcmp.ge.f32.partialorder %v3156_v1, 0.0  ;;  %v4478_v5 = vld [vmem:[#allocation41_spill] sm:$0xff]  ;;  %vm4479_vm10 = vcmp.ge.f32.partialorder %v3159_v14, 0.0  ;;  %v4480_v34 = vld [vmem:[#allocation43_spill] sm:$0xff]  ;;  %v4483_v17 = vld [vmem:[#allocation44_spill] sm:$0xff] }
 0x293   :  { %v3691_v10 = vsel %vm4477_vm12, %v3156_v1, %v4476_v11  ;;  %v3697_v19 = vsel %vm4479_vm10, %v3159_v14, %v4478_v5  ;;  %vm4482_vm8 = vcmp.ge.f32.partialorder %v4481_v43, 0.0  ;;  %v3709_v33 = vsel %vm1208_vm14, %v3165_v25, %v4483_v17  ;;  %v4484_v1 = vld [vmem:[#allocation45_spill] sm:$0xff]  ;;  %v4486_v14 = vld [vmem:[#allocation47_spill] sm:$0xff]  ;;  %v4500_v11 = vld [vmem:[#allocation52_spill] sm:$0xff] }
 0x294   :  { %v3703_v45 = vsel %vm4482_vm8, %v4481_v43, %v4480_v34  ;;  %vm4485_vm13 = vcmp.ge.f32.partialorder %v3168_v27, 0.0  ;;  %vm4488_vm3 = vcmp.ge.f32.partialorder %v4487_v4, 0.0  ;;  %vm4491_vm11 = vcmp.ge.f32.partialorder %v4490_v29, 0.0  ;;  %v4492_v25 = vld [vmem:[#allocation49_spill] sm:$0xff]  ;;  %v4501_v5 = vld [vmem:[#allocation6_spill] sm:$0xff] }
 0x295   :  { %v3715_v62 = vsel %vm4485_vm13, %v3168_v27, %v4484_v1  ;;  %v3721_v3 = vsel %vm4488_vm3, %v4487_v4, %v4486_v14  ;;  %v3727_v30 = vsel %vm4491_vm11, %v4490_v29, %v4489_v57  ;;  %v3733_v42 = vsel %vm1212_vm15, %v4493_v59, %v4492_v25  ;;  %v4494_v27 = vld [vmem:[#allocation50_spill] sm:$0xff]  ;;  %v4504_v1 = vld [vmem:[#allocation13_spill] sm:$0xff]  ;;  %v4506_v4 = vld [vmem:[#allocation8_spill] sm:$0xff] }
 0x296   :  { %vm4496_vm14 = vcmp.ge.f32.partialorder %v4495_v44, 0.0  ;;  %vm4499_vm7 = vcmp.ge.f32.partialorder %v4498_v28, 0.0  ;;  %vm4502_vm4 = vcmp.ge.f32.partialorder %v4501_v5, 0.0  ;;  %v4503_v43 = vld [vmem:[#allocation10_spill] sm:$0xff]  ;;  %vm4505_vm15 = vcmp.ge.f32.partialorder %v4504_v1, 0.0  ;;  %v4508_v29 = vld [vmem:[#allocation11_spill] sm:$0xff] }
 0x297   :  { %v3739_v15 = vsel %vm4496_vm14, %v4495_v44, %v4494_v27  ;;  %v3745_v35 = vsel %vm4499_vm7, %v4498_v28, %v4497_v24  ;;  %v3751_v34 = vsel %vm4502_vm4, %v4501_v5, %v4500_v11  ;;  %v3756_v17 = vsel %vm1216_vm0, %v4503_v43, %v1280_v26  ;;  %v4510_v59 = vld [vmem:[#allocation18_spill] sm:$0xff]  ;;  %v4512_v27 = vld [vmem:[#allocation17_spill] sm:$0xff]  ;;  %v4513_v44 = vld [vmem:[#allocation23_spill] sm:$0xff] }
 0x298   :  { %v3761_v14 = vsel %vm4505_vm15, %v4504_v1, %v1281_v23  ;;  %vm4507_vm12 = vcmp.ge.f32.partialorder %v4506_v4, 0.0  ;;  %vm4509_vm10 = vcmp.ge.f32.partialorder %v4508_v29, 0.0  ;;  %v3776_v26 = vsel %vm1220_vm1, %v4444_v49, %v1284_v2  ;;  %v4515_v49 = vld [vmem:[#allocation26_spill] sm:$0xff]  ;;  %v4517_v11 = vld [vmem:[#allocation19_spill] sm:$0xff]  ;;  %v4519_v1 = vld [vmem:[#allocation9_spill] sm:$0xff] }
 0x299   :  { %v3766_v57 = vsel %vm4507_vm12, %v4506_v4, %v1282_v51  ;;  %v3771_v25 = vsel %vm4509_vm10, %v4508_v29, %v1283_v38  ;;  %vm4511_vm0 = vcmp.ge.f32.partialorder %v4510_v59, 0.0  ;;  %v3786_v51 = vsel %vm1222_vm5, %v4512_v27, %v1286_v0  ;;  %v4516_v0 = vld [vmem:[#allocation27_spill] sm:$0xff]  ;;  %v4523_v27 = vld [vmem:[#allocation33_spill] sm:$0xff] }
 0x29a   :  { %v3781_v23 = vsel %vm4511_vm0, %v4510_v59, %v1285_v32  ;;  %vm4514_vm8 = vcmp.ge.f32.partialorder %v4513_v44, 0.0  ;;  %v3796_v2 = vsel %vm1224_vm2, %v4450_v37, %v1288_v39  ;;  %v3801_v32 = vsel %vm1225_vm6, %v4451_v36, %v1289_v50  ;;  %v4518_v5 = vld [vmem:[#allocation7_spill] sm:$0xff]  ;;  %v4520_v39 = vld [vmem:[#allocation16_spill] sm:$0xff]  ;;  %v4521_v50 = vld [vmem:[#allocation30_spill] sm:$0xff] }
 0x29b   :  { %v3791_v38 = vsel %vm4514_vm8, %v4513_v44, %v1287_v13  ;;  %v1784_v24 = vpack.c.bf16 %v4515_v49, %v4515_v49  ;;  %v1785_v28 = vpack.c.bf16 %v4516_v0, %v4516_v0  ;;  %v1786_v13 = vpack.c.bf16 %v4517_v11, %v4517_v11  ;;  %v4522_v29 = vld [vmem:[#allocation31_spill] sm:$0xff]  ;;  %v4525_v11 = vld [vmem:[#allocation37_spill] sm:$0xff] }
 0x29c   :  { %v1787_v43 = vpack.c.bf16 %v4518_v5, %v4518_v5  ;;  %v1788_v37 = vpack.c.bf16 %v4519_v1, %v4519_v1  ;;  %v1789_v4 = vpack.c.bf16 %v4520_v39, %v4520_v39  ;;  %v1790_v36 = vpack.c.bf16 %v4521_v50, %v4521_v50  ;;  %v4524_v49 = vld [vmem:[#allocation35_spill] sm:$0xff]  ;;  %v4527_v50 = vld [vmem:[#allocation42_spill] sm:$0xff] }
 0x29d   :  { %v1791_v59 = vpack.c.bf16 %v4522_v29, %v4522_v29  ;;  %v1792_v44 = vpack.c.bf16 %v4523_v27, %v4523_v27  ;;  %v1793_v0 = vpack.c.bf16 %v4524_v49, %v4524_v49  ;;  %1611 = vst.msk [vmem:[%s4190_s3] sm:$0xf] %vm1610_vm9, %v1784_v24  ;;  %1612 = vst.msk [vmem:[%s4190_s3 + $0x4] sm:$0xf] %vm1610_vm9, %v1785_v28  ;;  %v4526_v1 = vld [vmem:[#allocation39_spill] sm:$0xff]  ;;  %v4528_v27 = vld [vmem:[#allocation46_spill] sm:$0xff] }
 0x29e   :  { %v1794_v5 = vpack.c.bf16 %v4525_v11, %v4525_v11  ;;  %v1795_v39 = vpack.c.bf16 %v4526_v1, %v4526_v1  ;;  %v1796_v29 = vpack.c.bf16 %v4527_v50, %v4527_v50  ;;  %v1797_v49 = vpack.c.bf16 %v4528_v27, %v4528_v27  ;;  %1613 = vst.msk [vmem:[%s4190_s3 + $0x8] sm:$0xf] %vm1610_vm9, %v1786_v13  ;;  %v4529_v24 = vld [vmem:[#allocation28_spill] sm:$0xff]  ;;  %v4530_v11 = vld [vmem:[#allocation53_spill] sm:$0xff]  ;;  %v4531_v1 = vld [vmem:[#allocation54_spill] sm:$0xff] }
 0x29f   :  { %1614 = vst.msk [vmem:[%s4190_s3 + $0xc] sm:$0xf] %vm1610_vm9, %v1787_v43  ;;  %1615 = vst.msk [vmem:[%s4190_s3 + $0x10] sm:$0xf] %vm1610_vm9, %v1788_v37  ;;  %v1798_v28 = vpack.c.bf16 %v4529_v24, %v4529_v24  ;;  %v1799_v13 = vpack.c.bf16 %v4530_v11, %v4530_v11  ;;  %v1800_v50 = vpack.c.bf16 %v4531_v1, %v4531_v1  ;;  %v4532_v43 = vld [vmem:[#allocation15_spill] sm:$0xff] }
 0x2a0   :  { %1616 = vst.msk [vmem:[%s4190_s3 + $0x14] sm:$0xf] %vm1610_vm9, %v1789_v4  ;;  %v1801_v27 = vpack.c.bf16 %v4532_v43, %v4532_v43  ;;  %1617 = vst.msk [vmem:[%s4190_s3 + $0x18] sm:$0xf] %vm1610_vm9, %v1790_v36  ;;  %v1802_v37 = vpack.c.bf16 %v3538_v21, %v3538_v21  ;;  %v1803_v4 = vpack.c.bf16 %v3547_v55, %v3547_v55 }
 0x2a1   :  { %1618 = vst.msk [vmem:[%s4190_s3 + $0x1c] sm:$0xf] %vm1610_vm9, %v1791_v59  ;;  %1619 = vst.msk [vmem:[%s4190_s3 + $0x20] sm:$0xf] %vm1610_vm9, %v1792_v44  ;;  %v1804_v36 = vpack.c.bf16 %v3553_v53, %v3553_v53  ;;  %v1805_v59 = vpack.c.bf16 %v3559_v9, %v3559_v9  ;;  %v1806_v53 = vpack.c.bf16 %v3565_v58, %v3565_v58 }
 0x2a2   :  { %1620 = vst.msk [vmem:[%s4190_s3 + $0x24] sm:$0xf] %vm1610_vm9, %v1793_v0  ;;  %1621 = vst.msk [vmem:[%s4190_s3 + $0x28] sm:$0xf] %vm1610_vm9, %v1794_v5  ;;  %v1807_v55 = vpack.c.bf16 %v3571_v20, %v3571_v20  ;;  %v1808_v21 = vpack.c.bf16 %v3577_v46, %v3577_v46  ;;  %v1809_v9 = vpack.c.bf16 %v3583_v40, %v3583_v40 }
 0x2a3   :  { %1622 = vst.msk [vmem:[%s4190_s3 + $0x2c] sm:$0xf] %vm1610_vm9, %v1795_v39  ;;  %1623 = vst.msk [vmem:[%s4190_s3 + $0x30] sm:$0xf] %vm1610_vm9, %v1796_v29  ;;  %v1810_v58 = vpack.c.bf16 %v3589_v61, %v3589_v61  ;;  %v1811_v20 = vpack.c.bf16 %v3595_v56, %v3595_v56  ;;  %v1812_v46 = vpack.c.bf16 %v3601_v63, %v3601_v63 }
 0x2a4   :  { %1624 = vst.msk [vmem:[%s4190_s3 + $0x34] sm:$0xf] %vm1610_vm9, %v1797_v49  ;;  %1625 = vst.msk [vmem:[%s4190_s3 + $0x38] sm:$0xf] %vm1610_vm9, %v1798_v28  ;;  %v1813_v40 = vpack.c.bf16 %v3607_v54, %v3607_v54  ;;  %v1814_v61 = vpack.c.bf16 %v3613_v60, %v3613_v60  ;;  %v1815_v56 = vpack.c.bf16 %v3619_v8, %v3619_v8 }
 0x2a5   :  { %1626 = vst.msk [vmem:[%s4190_s3 + $0x3c] sm:$0xf] %vm1610_vm9, %v1799_v13  ;;  %1627 = vst.msk [vmem:[%s4190_s3 + $0x40] sm:$0xf] %vm1610_vm9, %v1800_v50  ;;  %v1816_v63 = vpack.c.bf16 %v3625_v41, %v3625_v41  ;;  %v1817_v54 = vpack.c.bf16 %v3631_v6, %v3631_v6  ;;  %v1818_v60 = vpack.c.bf16 %v3637_v12, %v3637_v12 }
 0x2a6   :  { %1628 = vst.msk [vmem:[%s4190_s3 + $0x44] sm:$0xf] %vm1610_vm9, %v1801_v27  ;;  %1629 = vst.msk [vmem:[%s4190_s3 + $0x48] sm:$0xf] %vm1610_vm9, %v1802_v37  ;;  %v1819_v8 = vpack.c.bf16 %v3643_v18, %v3643_v18  ;;  %v1820_v41 = vpack.c.bf16 %v3649_v31, %v3649_v31  ;;  %v1821_v6 = vpack.c.bf16 %v3655_v22, %v3655_v22 }
 0x2a7   :  { %1630 = vst.msk [vmem:[%s4190_s3 + $0x4c] sm:$0xf] %vm1610_vm9, %v1803_v4  ;;  %1631 = vst.msk [vmem:[%s4190_s3 + $0x50] sm:$0xf] %vm1610_vm9, %v1804_v36  ;;  %v1822_v12 = vpack.c.bf16 %v3661_v47, %v3661_v47  ;;  %v1823_v18 = vpack.c.bf16 %v3667_v48, %v3667_v48  ;;  %v1824_v31 = vpack.c.bf16 %v3673_v7, %v3673_v7 }
 0x2a8   :  { %1632 = vst.msk [vmem:[%s4190_s3 + $0x54] sm:$0xf] %vm1610_vm9, %v1805_v59  ;;  %1633 = vst.msk [vmem:[%s4190_s3 + $0x58] sm:$0xf] %vm1610_vm9, %v1806_v53  ;;  %v1825_v22 = vpack.c.bf16 %v3679_v16, %v3679_v16  ;;  %v1826_v47 = vpack.c.bf16 %v3685_v52, %v3685_v52  ;;  %v1827_v48 = vpack.c.bf16 %v3691_v10, %v3691_v10 }
 0x2a9   :  { %1634 = vst.msk [vmem:[%s4190_s3 + $0x5c] sm:$0xf] %vm1610_vm9, %v1807_v55  ;;  %1635 = vst.msk [vmem:[%s4190_s3 + $0x60] sm:$0xf] %vm1610_vm9, %v1808_v21  ;;  %v1828_v7 = vpack.c.bf16 %v3697_v19, %v3697_v19  ;;  %v1829_v16 = vpack.c.bf16 %v3703_v45, %v3703_v45  ;;  %v1830_v52 = vpack.c.bf16 %v3709_v33, %v3709_v33 }
 0x2aa   :  { %1636 = vst.msk [vmem:[%s4190_s3 + $0x64] sm:$0xf] %vm1610_vm9, %v1809_v9  ;;  %1637 = vst.msk [vmem:[%s4190_s3 + $0x68] sm:$0xf] %vm1610_vm9, %v1810_v58  ;;  %v1831_v10 = vpack.c.bf16 %v3715_v62, %v3715_v62  ;;  %v1832_v19 = vpack.c.bf16 %v3721_v3, %v3721_v3  ;;  %v1833_v45 = vpack.c.bf16 %v3727_v30, %v3727_v30 }
 0x2ab   :  { %1638 = vst.msk [vmem:[%s4190_s3 + $0x6c] sm:$0xf] %vm1610_vm9, %v1811_v20  ;;  %1639 = vst.msk [vmem:[%s4190_s3 + $0x70] sm:$0xf] %vm1610_vm9, %v1812_v46  ;;  %v1834_v33 = vpack.c.bf16 %v3733_v42, %v3733_v42  ;;  %v1835_v62 = vpack.c.bf16 %v3739_v15, %v3739_v15  ;;  %v1836_v3 = vpack.c.bf16 %v3745_v35, %v3745_v35 }
 0x2ac   :  { %1640 = vst.msk [vmem:[%s4190_s3 + $0x74] sm:$0xf] %vm1610_vm9, %v1813_v40  ;;  %1641 = vst.msk [vmem:[%s4190_s3 + $0x78] sm:$0xf] %vm1610_vm9, %v1814_v61  ;;  %v1837_v30 = vpack.c.bf16 %v3751_v34, %v3751_v34  ;;  %v1838_v42 = vpack.c.bf16 %v3756_v17, %v3756_v17  ;;  %v1839_v15 = vpack.c.bf16 %v3761_v14, %v3761_v14 }
 0x2ad   :  { %1642 = vst.msk [vmem:[%s4190_s3 + $0x7c] sm:$0xf] %vm1610_vm9, %v1815_v56  ;;  %1643 = vst.msk [vmem:[%s4190_s3 + $0x80] sm:$0xf] %vm1610_vm9, %v1816_v63  ;;  %v1840_v35 = vpack.c.bf16 %v3766_v57, %v3766_v57  ;;  %v1841_v34 = vpack.c.bf16 %v3771_v25, %v3771_v25  ;;  %v1842_v17 = vpack.c.bf16 %v3776_v26, %v3776_v26 }
 0x2ae   :  { %1644 = vst.msk [vmem:[%s4190_s3 + $0x84] sm:$0xf] %vm1610_vm9, %v1817_v54  ;;  %1645 = vst.msk [vmem:[%s4190_s3 + $0x88] sm:$0xf] %vm1610_vm9, %v1818_v60  ;;  %v1843_v14 = vpack.c.bf16 %v3781_v23, %v3781_v23  ;;  %v1844_v57 = vpack.c.bf16 %v3786_v51, %v3786_v51  ;;  %v1845_v25 = vpack.c.bf16 %v3791_v38, %v3791_v38 }
 0x2af   :  { %1646 = vst.msk [vmem:[%s4190_s3 + $0x8c] sm:$0xf] %vm1610_vm9, %v1819_v8  ;;  %1647 = vst.msk [vmem:[%s4190_s3 + $0x90] sm:$0xf] %vm1610_vm9, %v1820_v41  ;;  %v1846_v26 = vpack.c.bf16 %v3796_v2, %v3796_v2  ;;  %v1847_v23 = vpack.c.bf16 %v3801_v32, %v3801_v32 }
 0x2b0   :  { %1648 = vst.msk [vmem:[%s4190_s3 + $0x94] sm:$0xf] %vm1610_vm9, %v1821_v6  ;;  %1649 = vst.msk [vmem:[%s4190_s3 + $0x98] sm:$0xf] %vm1610_vm9, %v1822_v12 }
 0x2b1   :  { %1650 = vst.msk [vmem:[%s4190_s3 + $0x9c] sm:$0xf] %vm1610_vm9, %v1823_v18  ;;  %1651 = vst.msk [vmem:[%s4190_s3 + $0xa0] sm:$0xf] %vm1610_vm9, %v1824_v31 }
 0x2b2   :  { %1652 = vst.msk [vmem:[%s4190_s3 + $0xa4] sm:$0xf] %vm1610_vm9, %v1825_v22  ;;  %1653 = vst.msk [vmem:[%s4190_s3 + $0xa8] sm:$0xf] %vm1610_vm9, %v1826_v47 }
 0x2b3   :  { %1654 = vst.msk [vmem:[%s4190_s3 + $0xac] sm:$0xf] %vm1610_vm9, %v1827_v48  ;;  %1655 = vst.msk [vmem:[%s4190_s3 + $0xb0] sm:$0xf] %vm1610_vm9, %v1828_v7 }
 0x2b4   :  { %1656 = vst.msk [vmem:[%s4190_s3 + $0xb4] sm:$0xf] %vm1610_vm9, %v1829_v16  ;;  %1657 = vst.msk [vmem:[%s4190_s3 + $0xb8] sm:$0xf] %vm1610_vm9, %v1830_v52 }
 0x2b5   :  { %1658 = vst.msk [vmem:[%s4190_s3 + $0xbc] sm:$0xf] %vm1610_vm9, %v1831_v10  ;;  %1659 = vst.msk [vmem:[%s4190_s3 + $0xc0] sm:$0xf] %vm1610_vm9, %v1832_v19 }
 0x2b6   :  { %1660 = vst.msk [vmem:[%s4190_s3 + $0xc4] sm:$0xf] %vm1610_vm9, %v1833_v45  ;;  %1661 = vst.msk [vmem:[%s4190_s3 + $0xc8] sm:$0xf] %vm1610_vm9, %v1834_v33 }
 0x2b7   :  { %1662 = vst.msk [vmem:[%s4190_s3 + $0xcc] sm:$0xf] %vm1610_vm9, %v1835_v62  ;;  %1663 = vst.msk [vmem:[%s4190_s3 + $0xd0] sm:$0xf] %vm1610_vm9, %v1836_v3 }
 0x2b8   :  { %1664 = vst.msk [vmem:[%s4190_s3 + $0xd4] sm:$0xf] %vm1610_vm9, %v1837_v30  ;;  %1665 = vst.msk [vmem:[%s4190_s3 + $0xd8] sm:$0xf] %vm1610_vm9, %v1838_v42 }
 0x2b9   :  { %1666 = vst.msk [vmem:[%s4190_s3 + $0xdc] sm:$0xf] %vm1610_vm9, %v1839_v15  ;;  %1667 = vst.msk [vmem:[%s4190_s3 + $0xe0] sm:$0xf] %vm1610_vm9, %v1840_v35 }
 0x2ba   :  { %1668 = vst.msk [vmem:[%s4190_s3 + $0xe4] sm:$0xf] %vm1610_vm9, %v1841_v34  ;;  %1669 = vst.msk [vmem:[%s4190_s3 + $0xe8] sm:$0xf] %vm1610_vm9, %v1842_v17 }
 0x2bb   :  { %1670 = vst.msk [vmem:[%s4190_s3 + $0xec] sm:$0xf] %vm1610_vm9, %v1843_v14  ;;  %1671 = vst.msk [vmem:[%s4190_s3 + $0xf0] sm:$0xf] %vm1610_vm9, %v1844_v57 }
 0x2bc   :  { %1672 = vst.msk [vmem:[%s4190_s3 + $0xf4] sm:$0xf] %vm1610_vm9, %v1845_v25  ;;  %1673 = vst.msk [vmem:[%s4190_s3 + $0xf8] sm:$0xf] %vm1610_vm9, %v1846_v26 }
 0x2bd   :  { %1674 = vst.msk [vmem:[%s4190_s3 + $0xfc] sm:$0xf] %vm1610_vm9, %v1847_v23 }

// kernel: discriminator_forward.6
= control target key start
LH: loop header
LB: loop body
LE: loop exit
PB: predicated region body
PF: predicated region fallthrough
CT: control target
= control target key end

     0   :  { %vm336_vm0 = vcmask 261120   ;;  %s1156_s1 = inlined_call_operand.vmem [shape: bf16[256,32], index: 1, kind: input, shape index: {}]   ;;  %s1157_s0 = inlined_call_operand.vmem [shape: bf16[128,256], index: 0, kind: input, shape index: {}]   ;;  %s1158_s2 = inlined_call_operand.vmem [shape: f32[2,32], index: 2, kind: input, shape index: {}]   ;;  %s1159_s3 = inlined_call_operand.vmem [shape: bf16[128,32], index: 3, kind: output, shape index: {}]  }
   0x1   :  { %v768_v0 = vld [vmem:[%s1156_s1 + $0x40] sm:$0xff]   ;;  %v770_v2 = vld [vmem:[%s1156_s1 + $0x48] sm:$0xff]   ;;  %v772_v4 = vld [vmem:[%s1156_s1 + $0x50] sm:$0xff]  }
   0x2   :  { %v769_v1 = vld [vmem:[%s1156_s1] sm:$0xff]   ;;  %688 = vmatprep.subr.bf16.mxu0 %v768_v0  ;;  %752 = vmatprep.subr.bf16.mxu1 %v768_v0  ;;  %v771_v3 = vld [vmem:[%s1156_s1 + $0x8] sm:$0xff]   ;;  %v773_v5 = vld [vmem:[%s1156_s1 + $0x10] sm:$0xff]  }
   0x3   :  { %689 = vmatpush3.bf16.msra.mxu0 %v769_v1  ;;  %760 = vmatpush3.bf16.msra.mxu1 %v769_v1  ;;  %v774_v6 = vld [vmem:[%s1156_s1 + $0x58] sm:$0xff]   ;;  %v776_v8 = vld [vmem:[%s1156_s1 + $0x60] sm:$0xff]   ;;  %v778_v10 = vld [vmem:[%s1156_s1 + $0x68] sm:$0xff]  }
   0x4   :  { %690 = vmatprep.subr.bf16.mxu0 %v770_v2  ;;  %753 = vmatprep.subr.bf16.mxu1 %v770_v2  ;;  %v775_v7 = vld [vmem:[%s1156_s1 + $0x18] sm:$0xff]   ;;  %v777_v9 = vld [vmem:[%s1156_s1 + $0x20] sm:$0xff]   ;;  %v779_v12 = vld [vmem:[%s1156_s1 + $0x28] sm:$0xff]  }
   0x5   :  { %v786_v11 = vld [vmem:[%s1157_s0 + $0x4] ss:$8 sps:$4 sm:$0xff]   ;;  %v780_v14 = vld [vmem:[%s1156_s1 + $0x70] sm:$0xff]   ;;  %v782_v16 = vld [vmem:[%s1156_s1 + $0x78] sm:$0xff]  }
   0x6   :  { %v792_v13 = vld [vmem:[%s1157_s0 + $0x44] ss:$8 sps:$4 sm:$0xff]   ;;  %271 = vmatprep.mubr.bf16.mxu0 %v786_v11  ;;  %v781_v15 = vld [vmem:[%s1156_s1 + $0x30] sm:$0xff]   ;;  %v783_v17 = vld [vmem:[%s1156_s1 + $0x38] sm:$0xff]  }
   0x7   :  { %691 = vmatpush3.bf16.msra.mxu0 %v771_v3  ;;  %761 = vmatpush3.bf16.msra.mxu1 %v771_v3  ;;  %v784_v18 = vld [vmem:[%s1157_s0] ss:$8 sps:$4 sm:$0xff]   ;;  %v787_v20 = vld [vmem:[%s1157_s0 + $0x14] ss:$8 sps:$4 sm:$0xff]   ;;  %v789_v22 = vld [vmem:[%s1157_s0 + $0x10] ss:$8 sps:$4 sm:$0xff]  }
   0x8   :  { %692 = vmatprep.subr.bf16.mxu0 %v772_v4  ;;  %754 = vmatprep.subr.bf16.mxu1 %v772_v4  ;;  %v790_v19 = vld [vmem:[%s1157_s0 + $0x40] ss:$8 sps:$4 sm:$0xff]   ;;  %v796_v21 = vld [vmem:[%s1157_s0 + $0x54] ss:$8 sps:$4 sm:$0xff]   ;;  %v798_v23 = vld [vmem:[%s1157_s0 + $0x50] ss:$8 sps:$4 sm:$0xff]  }
   0x9   :  { %303 = vmatprep.mubr.bf16.mxu1 %v792_v13  ;;  %v793_v24 = vld [vmem:[%s1157_s0 + $0x24] ss:$8 sps:$4 sm:$0xff]   ;;  %v795_v26 = vld [vmem:[%s1157_s0 + $0x20] ss:$8 sps:$4 sm:$0xff]   ;;  %v799_v28 = vld [vmem:[%s1157_s0 + $0x34] ss:$8 sps:$4 sm:$0xff]  }
   0xa   :  { %v802_v25 = vld [vmem:[%s1157_s0 + $0x64] ss:$8 sps:$4 sm:$0xff]   ;;  %v804_v27 = vld [vmem:[%s1157_s0 + $0x60] ss:$8 sps:$4 sm:$0xff]   ;;  %v805_v29 = vld [vmem:[%s1157_s0 + $0x74] ss:$8 sps:$4 sm:$0xff]  }
   0xb   :  { %693 = vmatpush3.bf16.msra.mxu0 %v773_v5  ;;  %762 = vmatpush3.bf16.msra.mxu1 %v773_v5  ;;  %v801_v30 = vld [vmem:[%s1157_s0 + $0x30] ss:$8 sps:$4 sm:$0xff]  }
   0xc   :  { %694 = vmatprep.subr.bf16.mxu0 %v774_v6  ;;  %755 = vmatprep.subr.bf16.mxu1 %v774_v6  ;;  %v807_v31 = vld [vmem:[%s1157_s0 + $0x70] ss:$8 sps:$4 sm:$0xff]  }
   0xf   :  { %695 = vmatpush3.bf16.msra.mxu0 %v775_v7  ;;  %763 = vmatpush3.bf16.msra.mxu1 %v775_v7 }
  0x10   :  { %696 = vmatprep.subr.bf16.mxu0 %v776_v8  ;;  %756 = vmatprep.subr.bf16.mxu1 %v776_v8 }
  0x13   :  { %697 = vmatpush3.bf16.msra.mxu0 %v777_v9  ;;  %764 = vmatpush3.bf16.msra.mxu1 %v777_v9 }
  0x14   :  { %698 = vmatprep.subr.bf16.mxu0 %v778_v10  ;;  %757 = vmatprep.subr.bf16.mxu1 %v778_v10 }
  0x17   :  { %699 = vmatpush3.bf16.msra.mxu0 %v779_v12  ;;  %765 = vmatpush3.bf16.msra.mxu1 %v779_v12 }
  0x18   :  { %700 = vmatprep.subr.bf16.mxu0 %v780_v14  ;;  %758 = vmatprep.subr.bf16.mxu1 %v780_v14 }
  0x1b   :  { %701 = vmatpush3.bf16.msra.mxu0 %v781_v15  ;;  %766 = vmatpush3.bf16.msra.mxu1 %v781_v15 }
  0x1c   :  { %702 = vmatprep.subr.bf16.mxu0 %v782_v16  ;;  %759 = vmatprep.subr.bf16.mxu1 %v782_v16 }
  0x1f   :  { %703 = vmatpush3.bf16.msra.mxu0 %v783_v17  ;;  %767 = vmatpush3.bf16.msra.mxu1 %v783_v17 }
  0x22   :  { %272 = vmatmul.mubr.bf16.vlgmr.msra.gmra.mrb[0].mxu0 %v784_v18  ;;  %304 = vmatmul.mubr.bf16.vlgmr.msra.gmra.mrb[0].mxu1 %v790_v19 }
  0x23   :  { %279 = vmatprep.mubr.bf16.mxu0 %v787_v20  ;;  %311 = vmatprep.mubr.bf16.mxu1 %v796_v21 }
  0x2a   :  { %280 = vmatmul.mubr.bf16.gmra.mrb[4].mxu0 %v789_v22  ;;  %312 = vmatmul.mubr.bf16.gmra.mrb[4].mxu1 %v798_v23 }
  0x2b   :  { %287 = vmatprep.mubr.bf16.mxu0 %v793_v24  ;;  %319 = vmatprep.mubr.bf16.mxu1 %v802_v25 }
  0x32   :  { %288 = vmatmul.mubr.bf16.gmra.mrb[8].mxu0 %v795_v26  ;;  %320 = vmatmul.mubr.bf16.gmra.mrb[8].mxu1 %v804_v27 }
  0x33   :  { %295 = vmatprep.mubr.bf16.mxu0 %v799_v28  ;;  %327 = vmatprep.mubr.bf16.mxu1 %v805_v29 }
  0x3a   :  { %296 = vmatmul.mubr.bf16.gmra.mrb[12].mxu0 %v801_v30  ;;  %328 = vmatmul.mubr.bf16.gmra.mrb[12].mxu1 %v807_v31 }
  0xf5   :  { %v704_v32 = vpop.f32.mrb[0].mxu0  ;;  %v728_v33 = vpop.f32.mrb[0].mxu1 }
  0xf6   :  { %v705_v34 = vpop.f32.mrb[1].mxu0  ;;  %v729_v35 = vpop.f32.mrb[1].mxu1 }
  0xf7   :  { %v926_v36 = vadd.f32 %v705_v34, %v704_v32  ;;  %v707_v37 = vpop.f32.mrb[2].mxu0  ;;  %v928_v38 = vadd.f32 %v729_v35, %v728_v33  ;;  %v731_v39 = vpop.f32.mrb[2].mxu1 }
  0xf8   :  { %v708_v40 = vpop.f32.mrb[3].mxu0  ;;  %v732_v41 = vpop.f32.mrb[3].mxu1 }
  0xf9   :  { %v930_v42 = vadd.f32 %v708_v40, %v707_v37  ;;  %v932_v43 = vadd.f32 %v732_v41, %v731_v39  ;;  %v337_v44 = vsel %vm336_vm0, %v926_v36, 0.0  ;;  %v352_v31 = vsel %vm336_vm0, %v928_v38, 0.0 }
  0xfb   :  { %v338_v45 = vsel %vm336_vm0, %v930_v42, 0.0  ;;  %v354_v33 = vsel %vm336_vm0, %v932_v43, 0.0 }
  0xfc   :  { %v339_v46 = vadd.f32 %v338_v45, %v337_v44 }
  0xfd   :  { %v710_v47 = vpop.f32.mrb[4].mxu0  ;;  %v734_v48 = vpop.f32.mrb[4].mxu1 }
  0xfe   :  { %v711_v49 = vpop.f32.mrb[5].mxu0  ;;  %v735_v50 = vpop.f32.mrb[5].mxu1 }
  0xff   :  { %v938_v51 = vadd.f32 %v711_v49, %v710_v47  ;;  %v713_v52 = vpop.f32.mrb[6].mxu0  ;;  %v940_v53 = vadd.f32 %v735_v50, %v734_v48  ;;  %v737_v54 = vpop.f32.mrb[6].mxu1 }
 0x100   :  { %v714_v55 = vpop.f32.mrb[7].mxu0  ;;  %v738_v56 = vpop.f32.mrb[7].mxu1 }
 0x101   :  { %v340_v57 = vsel %vm336_vm0, %v938_v51, 0.0  ;;  %v944_v58 = vadd.f32 %v714_v55, %v713_v52  ;;  %v946_v59 = vadd.f32 %v738_v56, %v737_v54  ;;  %v356_v35 = vsel %vm336_vm0, %v940_v53, 0.0 }
 0x102   :  { %v341_v60 = vadd.f32 %v340_v57, %v339_v46 }
 0x103   :  { %v342_v61 = vsel %vm336_vm0, %v944_v58, 0.0  ;;  %v358_v39 = vsel %vm336_vm0, %v946_v59, 0.0 }
 0x104   :  { %v343_v62 = vadd.f32 %v342_v61, %v341_v60 }
 0x105   :  { %v716_v63 = vpop.f32.mrb[8].mxu0  ;;  %v740_v0 = vpop.f32.mrb[8].mxu1 }
 0x106   :  { %v717_v1 = vpop.f32.mrb[9].mxu0  ;;  %v741_v2 = vpop.f32.mrb[9].mxu1 }
 0x107   :  { %v718_v3 = vadd.f32 %v717_v1, %v716_v63  ;;  %v719_v4 = vpop.f32.mrb[10].mxu0  ;;  %v742_v5 = vadd.f32 %v741_v2, %v740_v0  ;;  %v743_v6 = vpop.f32.mrb[10].mxu1 }
 0x108   :  { %v720_v7 = vpop.f32.mrb[11].mxu0  ;;  %v744_v8 = vpop.f32.mrb[11].mxu1 }
 0x109   :  { %v344_v9 = vsel %vm336_vm0, %v718_v3, 0.0  ;;  %v721_v10 = vadd.f32 %v720_v7, %v719_v4  ;;  %v745_v11 = vadd.f32 %v744_v8, %v743_v6  ;;  %v360_v41 = vsel %vm336_vm0, %v742_v5, 0.0 }
 0x10a   :  { %v345_v12 = vadd.f32 %v344_v9, %v343_v62 }
 0x10b   :  { %v346_v13 = vsel %vm336_vm0, %v721_v10, 0.0  ;;  %v362_v45 = vsel %vm336_vm0, %v745_v11, 0.0 }
 0x10c   :  { %v347_v14 = vadd.f32 %v346_v13, %v345_v12 }
 0x10d   :  { %v722_v15 = vpop.f32.mrb[12].mxu0  ;;  %v746_v16 = vpop.f32.mrb[12].mxu1 }
 0x10e   :  { %v723_v17 = vpop.f32.mrb[13].mxu0  ;;  %v747_v18 = vpop.f32.mrb[13].mxu1 }
 0x10f   :  { %v724_v19 = vadd.f32 %v723_v17, %v722_v15  ;;  %v725_v20 = vpop.f32.mrb[14].mxu0  ;;  %v748_v21 = vadd.f32 %v747_v18, %v746_v16  ;;  %v749_v22 = vpop.f32.mrb[14].mxu1 }
 0x110   :  { %v726_v23 = vpop.f32.mrb[15].mxu0  ;;  %v750_v24 = vpop.f32.mrb[15].mxu1 }
 0x111   :  { %v348_v25 = vsel %vm336_vm0, %v724_v19, 0.0  ;;  %v727_v26 = vadd.f32 %v726_v23, %v725_v20  ;;  %v751_v27 = vadd.f32 %v750_v24, %v749_v22  ;;  %v364_v46 = vsel %vm336_vm0, %v748_v21, 0.0 }
 0x112   :  { %v349_v28 = vadd.f32 %v348_v25, %v347_v14 }
 0x113   :  { %v350_v29 = vsel %vm336_vm0, %v727_v26, 0.0  ;;  %v366_v49 = vsel %vm336_vm0, %v751_v27, 0.0 }
 0x114   :  { %v351_v30 = vadd.f32 %v350_v29, %v349_v28 }
 0x116   :  { %v353_v32 = vadd.f32 %v352_v31, %v351_v30 }
 0x118   :  { %v355_v34 = vadd.f32 %v354_v33, %v353_v32 }
 0x11a   :  { %v357_v37 = vadd.f32 %v356_v35, %v355_v34 }
 0x11c   :  { %v359_v40 = vadd.f32 %v358_v39, %v357_v37 }
 0x11e   :  { %v361_v44 = vadd.f32 %v360_v41, %v359_v40 }
 0x120   :  { %v363_v47 = vadd.f32 %v362_v45, %v361_v44 }
 0x122   :  { %v365_v48 = vadd.f32 %v364_v46, %v363_v47 }
 0x124   :  { %v367_v50 = vadd.f32 %v366_v49, %v365_v48 }
 0x126   :  { %v368_v52 = vrot.slane %v367_v50, 4 }
 0x128   :  { %v369_v54 = vadd.f32 %v368_v52, %v367_v50 }
 0x12a   :  { %v370_v55 = vrot.slane %v369_v54, 2 }
 0x12c   :  { %v371_v56 = vadd.f32 %v370_v55, %v369_v54 }
 0x12e   :  { %v372_v57 = vrot.slane %v371_v56, 1 }
 0x130   :  { %v373_v60 = vadd.f32 %v372_v57, %v371_v56 }
 0x132   :  { %v374_v61 = vmul.f32 0.0078125, %v373_v60 }
 0x134   :  { %v967_v62 = vsub.f32 %v926_v36, %v374_v61  ;;  %v970_v63 = vsub.f32 %v930_v42, %v374_v61  ;;  %v973_v0 = vsub.f32 %v938_v51, %v374_v61  ;;  %v976_v1 = vsub.f32 %v944_v58, %v374_v61 }
 0x135   :  { %v978_v2 = vsub.f32 %v718_v3, %v374_v61  ;;  %v980_v4 = vsub.f32 %v721_v10, %v374_v61  ;;  %v982_v6 = vsub.f32 %v724_v19, %v374_v61  ;;  %v984_v7 = vsub.f32 %v727_v26, %v374_v61 }
 0x136   :  { %v987_v36 = vsub.f32 %v928_v38, %v374_v61  ;;  %v990_v42 = vsub.f32 %v932_v43, %v374_v61  ;;  %v993_v51 = vsub.f32 %v940_v53, %v374_v61  ;;  %v996_v58 = vsub.f32 %v946_v59, %v374_v61 }
 0x137   :  { %v998_v3 = vsub.f32 %v742_v5, %v374_v61  ;;  %v1000_v8 = vsub.f32 %v745_v11, %v374_v61  ;;  %v1002_v9 = vsub.f32 %v748_v21, %v374_v61  ;;  %v1004_v10 = vsub.f32 %v751_v27, %v374_v61 }
 0x138   :  { %v391_v38 = vmul.f32 %v967_v62, %v967_v62  ;;  %v392_v43 = vmul.f32 %v970_v63, %v970_v63  ;;  %v393_v53 = vmul.f32 %v973_v0, %v973_v0  ;;  %v394_v59 = vmul.f32 %v976_v1, %v976_v1 }
 0x139   :  { %v395_v13 = vmul.f32 %v978_v2, %v978_v2  ;;  %v396_v16 = vmul.f32 %v980_v4, %v980_v4  ;;  %v397_v19 = vmul.f32 %v982_v6, %v982_v6  ;;  %v398_v22 = vmul.f32 %v984_v7, %v984_v7 }
 0x13a   :  { %v407_v5 = vsel %vm336_vm0, %v391_v38, 0.0  ;;  %v408_v11 = vsel %vm336_vm0, %v392_v43, 0.0  ;;  %v410_v14 = vsel %vm336_vm0, %v393_v53, 0.0  ;;  %v412_v17 = vsel %vm336_vm0, %v394_v59, 0.0 }
 0x13b   :  { %v409_v12 = vadd.f32 %v408_v11, %v407_v5  ;;  %v414_v20 = vsel %vm336_vm0, %v395_v13, 0.0  ;;  %v416_v23 = vsel %vm336_vm0, %v396_v16, 0.0  ;;  %v399_v25 = vmul.f32 %v987_v36, %v987_v36 }
 0x13c   :  { %v418_v26 = vsel %vm336_vm0, %v397_v19, 0.0  ;;  %v400_v28 = vmul.f32 %v990_v42, %v990_v42  ;;  %v420_v29 = vsel %vm336_vm0, %v398_v22, 0.0  ;;  %v401_v31 = vmul.f32 %v993_v51, %v993_v51 }
 0x13d   :  { %v411_v15 = vadd.f32 %v410_v14, %v409_v12  ;;  %v422_v32 = vsel %vm336_vm0, %v399_v25, 0.0  ;;  %v402_v34 = vmul.f32 %v996_v58, %v996_v58  ;;  %v403_v39 = vmul.f32 %v998_v3, %v998_v3 }
 0x13e   :  { %v424_v35 = vsel %vm336_vm0, %v400_v28, 0.0  ;;  %v426_v40 = vsel %vm336_vm0, %v401_v31, 0.0  ;;  %v404_v44 = vmul.f32 %v1000_v8, %v1000_v8  ;;  %v405_v47 = vmul.f32 %v1002_v9, %v1002_v9  ;;  %v655_v28 = vld [vmem:[%s1158_s2 + $0x1] ss:$0 sm:$0xff] }
 0x13f   :  { %v413_v18 = vadd.f32 %v412_v17, %v411_v15  ;;  %v428_v45 = vsel %vm336_vm0, %v402_v34, 0.0  ;;  %v430_v48 = vsel %vm336_vm0, %v403_v39, 0.0  ;;  %v406_v50 = vmul.f32 %v1004_v10, %v1004_v10  ;;  %v445_v15 = vld [vmem:[%s1158_s2] sm:$0x1] }
 0x140   :  { %v432_v52 = vsel %vm336_vm0, %v404_v44, 0.0  ;;  %v434_v55 = vsel %vm336_vm0, %v405_v47, 0.0  ;;  %v449_v13 = vlaneseq }
 0x141   :  { %v415_v21 = vadd.f32 %v414_v20, %v413_v18  ;;  %v436_v57 = vsel %vm336_vm0, %v406_v50, 0.0 }
 0x142   :  { %v450_v14 = vshrl.u32 %v449_v13, 7 }
 0x143   :  { %v417_v24 = vadd.f32 %v416_v23, %v415_v21 }
 0x144   :  { %v451_v16 = vsub.s32 0, %v450_v14 }
 0x145   :  { %v419_v27 = vadd.f32 %v418_v26, %v417_v24 }
 0x147   :  { %v421_v30 = vadd.f32 %v420_v29, %v419_v27 }
 0x149   :  { %v423_v33 = vadd.f32 %v422_v32, %v421_v30 }
 0x14b   :  { %v425_v37 = vadd.f32 %v424_v35, %v423_v33 }
 0x14d   :  { %v427_v41 = vadd.f32 %v426_v40, %v425_v37 }
 0x14f   :  { %v429_v46 = vadd.f32 %v428_v45, %v427_v41 }
 0x151   :  { %v431_v49 = vadd.f32 %v430_v48, %v429_v46 }
 0x153   :  { %v433_v54 = vadd.f32 %v432_v52, %v431_v49 }
 0x155   :  { %v435_v56 = vadd.f32 %v434_v55, %v433_v54 }
 0x157   :  { %v437_v60 = vadd.f32 %v436_v57, %v435_v56 }
 0x159   :  { %v438_v61 = vrot.slane %v437_v60, 4 }
 0x15b   :  { %v439_v38 = vadd.f32 %v438_v61, %v437_v60 }
 0x15d   :  { %v440_v43 = vrot.slane %v439_v38, 2 }
 0x15f   :  { %v441_v53 = vadd.f32 %v440_v43, %v439_v38 }
 0x161   :  { %v442_v59 = vrot.slane %v441_v53, 1 }
 0x163   :  { %v443_v5 = vadd.f32 %v442_v59, %v441_v53 }
 0x165   :  { %v444_v11 = vmul.f32 0.0078125, %v443_v5 }
 0x167   :  { %v446_v12 = vadd.f32 1e-05, %v444_v11 }
 0x169   :  { %808 = vrsqrt.f32 %v446_v12 }
 0x173   :  { %v809_v17 = vpop.eup %808 }
 0x174   :  { %v448_v18 = vmul.f32 %v809_v17, %v445_v15 }
 0x176   :  { %v452_v19 = vrot.slane %v448_v18, %v451_v16 }
 0x178   :  { %v453_v20 = vmul.f32 %v452_v19, %v967_v62  ;;  %v454_v21 = vmul.f32 %v452_v19, %v970_v63  ;;  %v455_v22 = vmul.f32 %v452_v19, %v973_v0  ;;  %v456_v23 = vmul.f32 %v452_v19, %v976_v1 }
 0x179   :  { %v457_v24 = vmul.f32 %v452_v19, %v978_v2  ;;  %v458_v25 = vmul.f32 %v452_v19, %v980_v4  ;;  %v459_v26 = vmul.f32 %v452_v19, %v982_v6  ;;  %v460_v27 = vmul.f32 %v452_v19, %v984_v7 }
 0x17a   :  { %v461_v62 = vmul.f32 %v452_v19, %v987_v36  ;;  %v462_v63 = vmul.f32 %v452_v19, %v990_v42  ;;  %v463_v0 = vmul.f32 %v452_v19, %v993_v51  ;;  %v464_v1 = vmul.f32 %v452_v19, %v996_v58 }
 0x17b   :  { %v465_v2 = vmul.f32 %v452_v19, %v998_v3  ;;  %v466_v4 = vmul.f32 %v452_v19, %v1000_v8  ;;  %v467_v6 = vmul.f32 %v452_v19, %v1002_v9  ;;  %v468_v7 = vmul.f32 %v452_v19, %v1004_v10 }
 0x17c   :  { %v474_v29 = vadd.f32 %v655_v28, %v453_v20  ;;  %v475_v30 = vadd.f32 %v655_v28, %v454_v21  ;;  %v476_v31 = vadd.f32 %v655_v28, %v455_v22  ;;  %v477_v32 = vadd.f32 %v655_v28, %v456_v23 }
 0x17d   :  { %v478_v33 = vadd.f32 %v655_v28, %v457_v24  ;;  %v479_v36 = vadd.f32 %v655_v28, %v458_v25  ;;  %v480_v34 = vadd.f32 %v655_v28, %v459_v26  ;;  %v481_v42 = vadd.f32 %v655_v28, %v460_v27 }
 0x17e   :  { %v482_v35 = vadd.f32 %v655_v28, %v461_v62  ;;  %v483_v51 = vadd.f32 %v655_v28, %v462_v63  ;;  %v484_v37 = vadd.f32 %v655_v28, %v463_v0  ;;  %v485_v58 = vadd.f32 %v655_v28, %v464_v1 }
 0x17f   :  { %v486_v39 = vadd.f32 %v655_v28, %v465_v2  ;;  %v487_v3 = vadd.f32 %v655_v28, %v466_v4  ;;  %v488_v40 = vadd.f32 %v655_v28, %v467_v6  ;;  %v489_v8 = vadd.f32 %v655_v28, %v468_v7 }
 0x180   :  { %vm491_vm2 = vcmp.ge.f32.partialorder %v475_v30, 0.0  ;;  %vm492_vm3 = vcmp.ge.f32.partialorder %v476_v31, 0.0  ;;  %vm493_vm4 = vcmp.ge.f32.partialorder %v477_v32, 0.0  ;;  %vm494_vm5 = vcmp.ge.f32.partialorder %v478_v33, 0.0 }
 0x181   :  { %vm495_vm6 = vcmp.ge.f32.partialorder %v479_v36, 0.0  ;;  %vm497_vm8 = vcmp.ge.f32.partialorder %v481_v42, 0.0  ;;  %vm498_vm9 = vcmp.ge.f32.partialorder %v482_v35, 0.0  ;;  %vm499_vm10 = vcmp.ge.f32.partialorder %v483_v51, 0.0 }
 0x182   :  { %vm500_vm11 = vcmp.ge.f32.partialorder %v484_v37, 0.0  ;;  %vm501_vm12 = vcmp.ge.f32.partialorder %v485_v58, 0.0  ;;  %vm502_vm13 = vcmp.ge.f32.partialorder %v486_v39, 0.0  ;;  %vm503_vm14 = vcmp.ge.f32.partialorder %v487_v3, 0.0 }
 0x183   :  { %vm504_vm15 = vcmp.ge.f32.partialorder %v488_v40, 0.0  ;;  %vm505_vm0 = vcmp.ge.f32.partialorder %v489_v8, 0.0  ;;  %v506_v9 = vmul.f32 0.2, %v474_v29  ;;  %v507_v10 = vmul.f32 0.2, %v475_v30 }
 0x184   :  { %v508_v41 = vmul.f32 0.2, %v476_v31  ;;  %v509_v44 = vmul.f32 0.2, %v477_v32  ;;  %v510_v45 = vmul.f32 0.2, %v478_v33 }
 0x185   :  { %v511_v46 = vmul.f32 0.2, %v479_v36  ;;  %v512_v47 = vmul.f32 0.2, %v480_v34  ;;  %v513_v48 = vmul.f32 0.2, %v481_v42  ;;  %v523_v56 = vsel %vm491_vm2, %v475_v30, %v507_v10 }
 0x186   :  { %v514_v49 = vmul.f32 0.2, %v482_v35  ;;  %vm1160_vm7 = vcmp.ge.f32.partialorder %v474_v29, 0.0  ;;  %v515_v52 = vmul.f32 0.2, %v483_v51  ;;  %v524_v38 = vsel %vm492_vm3, %v476_v31, %v508_v41 }
 0x187   :  { %v522_v50 = vsel %vm1160_vm7, %v474_v29, %v506_v9  ;;  %v516_v54 = vmul.f32 0.2, %v484_v37  ;;  %v517_v55 = vmul.f32 0.2, %v485_v58  ;;  %v518_v57 = vmul.f32 0.2, %v486_v39 }
 0x188   :  { %v519_v60 = vmul.f32 0.2, %v487_v3  ;;  %v520_v61 = vmul.f32 0.2, %v488_v40  ;;  %v521_v43 = vmul.f32 0.2, %v489_v8  ;;  %v525_v53 = vsel %vm493_vm4, %v477_v32, %v509_v44 }
 0x189   :  { %v526_v59 = vsel %vm494_vm5, %v478_v33, %v510_v45  ;;  %v527_v5 = vsel %vm495_vm6, %v479_v36, %v511_v46  ;;  %vm1161_vm1 = vcmp.ge.f32.partialorder %v480_v34, 0.0  ;;  %v529_v12 = vsel %vm497_vm8, %v481_v42, %v513_v48 }
 0x18a   :  { %v528_v11 = vsel %vm1161_vm1, %v480_v34, %v512_v47  ;;  %v530_v13 = vsel %vm498_vm9, %v482_v35, %v514_v49  ;;  %v531_v14 = vsel %vm499_vm10, %v483_v51, %v515_v52  ;;  %v532_v15 = vsel %vm500_vm11, %v484_v37, %v516_v54 }
 0x18b   :  { %v533_v16 = vsel %vm501_vm12, %v485_v58, %v517_v55  ;;  %v534_v17 = vsel %vm502_vm13, %v486_v39, %v518_v57  ;;  %v535_v18 = vsel %vm503_vm14, %v487_v3, %v519_v60  ;;  %v536_v19 = vsel %vm504_vm15, %v488_v40, %v520_v61 }
 0x18c   :  { %v537_v20 = vsel %vm505_vm0, %v489_v8, %v521_v43  ;;  %v672_v21 = vpack.c.bf16 %v522_v50, %v522_v50  ;;  %v673_v22 = vpack.c.bf16 %v523_v56, %v523_v56  ;;  %v674_v23 = vpack.c.bf16 %v524_v38, %v524_v38 }
 0x18d   :  { %v675_v24 = vpack.c.bf16 %v525_v53, %v525_v53  ;;  %v676_v25 = vpack.c.bf16 %v526_v59, %v526_v59  ;;  %v677_v26 = vpack.c.bf16 %v527_v5, %v527_v5  ;;  %v678_v27 = vpack.c.bf16 %v528_v11, %v528_v11 }
 0x18e   :  { %v679_v28 = vpack.c.bf16 %v529_v12, %v529_v12  ;;  %v680_v62 = vpack.c.bf16 %v530_v13, %v530_v13  ;;  %v681_v63 = vpack.c.bf16 %v531_v14, %v531_v14  ;;  %vm1162_vm1 = vcmask 257024  }
 0x18f   :  { %603 = vst.msk [vmem:[%s1159_s3] sm:$0xf] %vm1162_vm1, %v672_v21  ;;  %vm1163_vm2 = vmmov %vm1162_vm1  ;;  %v682_v0 = vpack.c.bf16 %v532_v15, %v532_v15  ;;  %v683_v1 = vpack.c.bf16 %v533_v16, %v533_v16  ;;  %v684_v2 = vpack.c.bf16 %v534_v17, %v534_v17  ;;  %v685_v4 = vpack.c.bf16 %v535_v18, %v535_v18 }
 0x190   :  { %604 = vst.msk [vmem:[%s1159_s3 + $0x4] sm:$0xf] %vm1163_vm2, %v673_v22  ;;  %vm1164_vm3 = vmmov %vm1162_vm1  ;;  %v686_v6 = vpack.c.bf16 %v536_v19, %v536_v19  ;;  %v687_v7 = vpack.c.bf16 %v537_v20, %v537_v20 }
 0x191   :  { %605 = vst.msk [vmem:[%s1159_s3 + $0x8] sm:$0xf] %vm1164_vm3, %v674_v23  ;;  %vm1165_vm4 = vmmov %vm1162_vm1 }
 0x192   :  { %606 = vst.msk [vmem:[%s1159_s3 + $0xc] sm:$0xf] %vm1165_vm4, %v675_v24  ;;  %vm1166_vm5 = vmmov %vm1162_vm1 }
 0x193   :  { %607 = vst.msk [vmem:[%s1159_s3 + $0x10] sm:$0xf] %vm1166_vm5, %v676_v25  ;;  %vm1167_vm6 = vmmov %vm1162_vm1 }
 0x194   :  { %608 = vst.msk [vmem:[%s1159_s3 + $0x14] sm:$0xf] %vm1167_vm6, %v677_v26  ;;  %vm1168_vm7 = vmmov %vm1162_vm1 }
 0x195   :  { %609 = vst.msk [vmem:[%s1159_s3 + $0x18] sm:$0xf] %vm1168_vm7, %v678_v27  ;;  %vm1169_vm8 = vmmov %vm1162_vm1 }
 0x196   :  { %610 = vst.msk [vmem:[%s1159_s3 + $0x1c] sm:$0xf] %vm1169_vm8, %v679_v28  ;;  %vm1170_vm9 = vmmov %vm1162_vm1 }
 0x197   :  { %611 = vst.msk [vmem:[%s1159_s3 + $0x20] sm:$0xf] %vm1170_vm9, %v680_v62  ;;  %vm1171_vm10 = vmmov %vm1162_vm1 }
 0x198   :  { %612 = vst.msk [vmem:[%s1159_s3 + $0x24] sm:$0xf] %vm1171_vm10, %v681_v63  ;;  %vm1172_vm11 = vmmov %vm1162_vm1 }
 0x199   :  { %613 = vst.msk [vmem:[%s1159_s3 + $0x28] sm:$0xf] %vm1172_vm11, %v682_v0  ;;  %vm1173_vm12 = vmmov %vm1162_vm1 }
 0x19a   :  { %614 = vst.msk [vmem:[%s1159_s3 + $0x2c] sm:$0xf] %vm1173_vm12, %v683_v1  ;;  %vm1174_vm13 = vmmov %vm1162_vm1 }
 0x19b   :  { %615 = vst.msk [vmem:[%s1159_s3 + $0x30] sm:$0xf] %vm1174_vm13, %v684_v2  ;;  %vm1175_vm14 = vmmov %vm1162_vm1 }
 0x19c   :  { %616 = vst.msk [vmem:[%s1159_s3 + $0x34] sm:$0xf] %vm1175_vm14, %v685_v4  ;;  %vm1176_vm15 = vmmov %vm1162_vm1 }
 0x19d   :  { %617 = vst.msk [vmem:[%s1159_s3 + $0x38] sm:$0xf] %vm1176_vm15, %v686_v6  ;;  %vm1177_vm0 = vmmov %vm1162_vm1 }
 0x19e   :  { %618 = vst.msk [vmem:[%s1159_s3 + $0x3c] sm:$0xf] %vm1177_vm0, %v687_v7 }

// kernel: discriminator_forward.7
= control target key start
LH: loop header
LB: loop body
LE: loop exit
PB: predicated region body
PF: predicated region fallthrough
CT: control target
= control target key end

     0   :  { %v765_v40 = vmov 0.0|0.0   ;;  %vm766_vm0 = vmmov 0   ;;  %v767_v41 = vmov 0.0   ;;  %vm423_vm1 = vcmask 523264   ;;  %s952_s1 = inlined_call_operand.vmem [shape: bf16[512,64], index: 1, kind: input, shape index: {}]   ;;  %s953_s0 = inlined_call_operand.vmem [shape: bf16[32,512], index: 0, kind: input, shape index: {}]   ;;  %s954_s2 = inlined_call_operand.vmem [shape: f32[2,64], index: 2, kind: input, shape index: {}]   ;;  %s955_s3 = inlined_call_operand.vmem [shape: f32[32,64], index: 3, kind: input, shape index: {}]   ;;  %s956_s4 = inlined_call_operand.vmem [shape: f32[2,32], index: 4, kind: input, shape index: {}]   ;;  %s957_s5 = inlined_call_operand.vmem [shape: f32[2,1], index: 5, kind: output, shape index: {}]  }
   0x1   :  { %v715_v0 = vld [vmem:[%s952_s1 + $0x40] sm:$0xff]   ;;  %v719_v4 = vld [vmem:[%s952_s1 + $0x48] sm:$0xff]   ;;  %v723_v8 = vld [vmem:[%s952_s1 + $0x50] sm:$0xff]   ;;  %vm502_vm6 = vcmask 261120   ;;  %vm576_vm7 = vcmask 517120   ;;  %vm586_vm8 = vcmask 1024  }
   0x2   :  { %v716_v1 = vld [vmem:[%s952_s1 + $0xc0] sm:$0xff]   ;;  %634 = vmatprep.subr.bf16.mxu0 %v715_v0  ;;  %v720_v5 = vld [vmem:[%s952_s1 + $0xc8] sm:$0xff]   ;;  %v724_v9 = vld [vmem:[%s952_s1 + $0xd0] sm:$0xff]  }
   0x3   :  { %v717_v2 = vld [vmem:[%s952_s1] sm:$0xff]   ;;  %662 = vmatprep.subr.bf16.mxu1 %v716_v1  ;;  %v721_v6 = vld [vmem:[%s952_s1 + $0x8] sm:$0xff]   ;;  %v725_v10 = vld [vmem:[%s952_s1 + $0x10] sm:$0xff]  }
   0x4   :  { %v718_v3 = vld [vmem:[%s952_s1 + $0x80] sm:$0xff]   ;;  %635 = vmatpush3.bf16.msra.mxu0 %v717_v2  ;;  %v722_v7 = vld [vmem:[%s952_s1 + $0x88] sm:$0xff]   ;;  %v726_v11 = vld [vmem:[%s952_s1 + $0x90] sm:$0xff]  }
   0x5   :  { %663 = vmatpush3.bf16.msra.mxu1 %v718_v3  ;;  %636 = vmatprep.subr.bf16.mxu0 %v719_v4  ;;  %v727_v12 = vld [vmem:[%s952_s1 + $0x58] sm:$0xff]   ;;  %v731_v16 = vld [vmem:[%s952_s1 + $0x60] sm:$0xff]   ;;  %v735_v20 = vld [vmem:[%s952_s1 + $0x68] sm:$0xff]  }
   0x6   :  { %664 = vmatprep.subr.bf16.mxu1 %v720_v5  ;;  %v728_v13 = vld [vmem:[%s952_s1 + $0xd8] sm:$0xff]   ;;  %v732_v17 = vld [vmem:[%s952_s1 + $0xe0] sm:$0xff]   ;;  %v736_v21 = vld [vmem:[%s952_s1 + $0xe8] sm:$0xff]  }
   0x7   :  { %v729_v14 = vld [vmem:[%s952_s1 + $0x18] sm:$0xff]   ;;  %v733_v18 = vld [vmem:[%s952_s1 + $0x20] sm:$0xff]   ;;  %v737_v22 = vld [vmem:[%s952_s1 + $0x28] sm:$0xff]  }
   0x8   :  { %637 = vmatpush3.bf16.msra.mxu0 %v721_v6  ;;  %v730_v15 = vld [vmem:[%s952_s1 + $0x98] sm:$0xff]   ;;  %v734_v19 = vld [vmem:[%s952_s1 + $0xa0] sm:$0xff]   ;;  %v738_v23 = vld [vmem:[%s952_s1 + $0xa8] sm:$0xff]  }
   0x9   :  { %665 = vmatpush3.bf16.msra.mxu1 %v722_v7  ;;  %638 = vmatprep.subr.bf16.mxu0 %v723_v8  ;;  %v739_v24 = vld [vmem:[%s952_s1 + $0x70] sm:$0xff]   ;;  %v743_v28 = vld [vmem:[%s952_s1 + $0x78] sm:$0xff]  }
   0xa   :  { %666 = vmatprep.subr.bf16.mxu1 %v724_v9  ;;  %v740_v25 = vld [vmem:[%s952_s1 + $0xf0] sm:$0xff]   ;;  %v744_v29 = vld [vmem:[%s952_s1 + $0xf8] sm:$0xff]  }
   0xb   :  { %v741_v26 = vld [vmem:[%s952_s1 + $0x30] sm:$0xff]   ;;  %v745_v30 = vld [vmem:[%s952_s1 + $0x38] sm:$0xff]  }
   0xc   :  { %639 = vmatpush3.bf16.msra.mxu0 %v725_v10  ;;  %v742_v27 = vld [vmem:[%s952_s1 + $0xb0] sm:$0xff]   ;;  %v746_v31 = vld [vmem:[%s952_s1 + $0xb8] sm:$0xff]  }
   0xd   :  { %667 = vmatpush3.bf16.msra.mxu1 %v726_v11  ;;  %640 = vmatprep.subr.bf16.mxu0 %v727_v12  ;;  %v747_v32 = vld [vmem:[%s953_s0] ss:$16 sps:$4 sm:$0xff]   ;;  %v749_v33 = vld [vmem:[%s953_s0 + $0x4] ss:$16 sps:$4 sm:$0xff]   ;;  %v750_v34 = vld [vmem:[%s953_s0 + $0x8] ss:$16 sps:$4 sm:$0xff]  }
   0xe   :  { %668 = vmatprep.subr.bf16.mxu1 %v728_v13  ;;  %v752_v35 = vld [vmem:[%s953_s0 + $0xc] ss:$16 sps:$4 sm:$0xff]   ;;  %357 = vmatprep.mubr.bf16.mxu0 %v749_v33  ;;  %v753_v36 = vld [vmem:[%s953_s0 + $0x24] ss:$16 sps:$4 sm:$0xff]   ;;  %v757_v38 = vld [vmem:[%s953_s0 + $0x20] ss:$16 sps:$4 sm:$0xff]  }
   0xf   :  { %406 = vmatprep.mubr.bf16.mxu1 %v752_v35  ;;  %v755_v37 = vld [vmem:[%s953_s0 + $0x2c] ss:$16 sps:$4 sm:$0xff]   ;;  %v758_v39 = vld [vmem:[%s953_s0 + $0x28] ss:$16 sps:$4 sm:$0xff]  }
  0x10   :  { %641 = vmatpush3.bf16.msra.mxu0 %v729_v14 }
  0x11   :  { %669 = vmatpush3.bf16.msra.mxu1 %v730_v15  ;;  %642 = vmatprep.subr.bf16.mxu0 %v731_v16 }
  0x12   :  { %670 = vmatprep.subr.bf16.mxu1 %v732_v17 }
  0x14   :  { %643 = vmatpush3.bf16.msra.mxu0 %v733_v18 }
  0x15   :  { %671 = vmatpush3.bf16.msra.mxu1 %v734_v19  ;;  %644 = vmatprep.subr.bf16.mxu0 %v735_v20 }
  0x16   :  { %672 = vmatprep.subr.bf16.mxu1 %v736_v21 }
  0x18   :  { %645 = vmatpush3.bf16.msra.mxu0 %v737_v22 }
  0x19   :  { %673 = vmatpush3.bf16.msra.mxu1 %v738_v23  ;;  %646 = vmatprep.subr.bf16.mxu0 %v739_v24 }
  0x1a   :  { %674 = vmatprep.subr.bf16.mxu1 %v740_v25 }
  0x1c   :  { %647 = vmatpush3.bf16.msra.mxu0 %v741_v26 }
  0x1d   :  { %675 = vmatpush3.bf16.msra.mxu1 %v742_v27  ;;  %648 = vmatprep.subr.bf16.mxu0 %v743_v28 }
  0x1e   :  { %676 = vmatprep.subr.bf16.mxu1 %v744_v29 }
  0x20   :  { %649 = vmatpush3.bf16.msra.mxu0 %v745_v30 }
  0x21   :  { %677 = vmatpush3.bf16.msra.mxu1 %v746_v31  ;;  %706 = vmatprep.subr.bf16.mxu0 %v765_v40 }
  0x23   :  { %358 = vmatmul.mubr.bf16.vlgmr.msra.gmra.mrb[0].mxu0 %v747_v32 }
  0x24   :  { %407 = vmatmul.mubr.bf16.vlgmr.msra.gmra.mrb[0].mxu1 %v750_v34  ;;  %365 = vmatprep.mubr.bf16.mxu0 %v753_v36 }
  0x25   :  { %414 = vmatprep.mubr.bf16.mxu1 %v755_v37 }
  0x2b   :  { %366 = vmatmul.mubr.bf16.gmra.mrb[4].mxu0 %v757_v38 }
  0x2c   :  { %415 = vmatmul.mubr.bf16.gmra.mrb[4].mxu1 %v758_v39  ;;  %703 = vmatprep.mubr.msk.f32.mxu0 %vm766_vm0, %v767_v41 }
  0xf6   :  { %v650_v42 = vpop.f32.mrb[0].mxu0 }
  0xf7   :  { %v678_v43 = vpop.f32.mrb[0].mxu1  ;;  %v651_v44 = vpop.f32.mrb[1].mxu0 }
  0xf8   :  { %v652_v45 = vadd.f32 %v651_v44, %v650_v42  ;;  %v679_v46 = vpop.f32.mrb[1].mxu1  ;;  %v653_v47 = vpop.f32.mrb[2].mxu0  ;;  %v464_v44 = vlaneseq }
  0xf9   :  { %v680_v48 = vadd.f32 %v679_v46, %v678_v43  ;;  %v681_v49 = vpop.f32.mrb[2].mxu1  ;;  %v654_v50 = vpop.f32.mrb[3].mxu0  ;;  %v460_v46 = vld [vmem:[%s954_s2] sm:$0x1] }
  0xfa   :  { %v655_v51 = vadd.f32 %v654_v50, %v653_v47  ;;  %v682_v52 = vpop.f32.mrb[3].mxu1 }
  0xfb   :  { %v409_v53 = vadd.f32 %v680_v48, %v652_v45  ;;  %v683_v54 = vadd.f32 %v682_v52, %v681_v49  ;;  %v465_v45 = vshrl.u32 %v464_v44, 7 }
  0xfd   :  { %v412_v55 = vadd.f32 %v683_v54, %v655_v51  ;;  %v424_v57 = vsel %vm423_vm1, %v409_v53, 0.0  ;;  %v466_v47 = vsub.s32 0, %v465_v45  ;;  %v632_v51 = vld [vmem:[%s954_s2 + $0x1] ss:$0 sm:$0xff] }
  0xfe   :  { %v656_v56 = vpop.f32.mrb[4].mxu0 }
  0xff   :  { %v425_v58 = vsel %vm423_vm1, %v412_v55, 0.0  ;;  %v684_v59 = vpop.f32.mrb[4].mxu1  ;;  %v657_v60 = vpop.f32.mrb[5].mxu0 }
 0x100   :  { %v426_v61 = vadd.f32 %v425_v58, %v424_v57  ;;  %v658_v62 = vadd.f32 %v657_v60, %v656_v56  ;;  %v685_v63 = vpop.f32.mrb[5].mxu1  ;;  %v659_v0 = vpop.f32.mrb[6].mxu0 }
 0x101   :  { %v686_v1 = vadd.f32 %v685_v63, %v684_v59  ;;  %v687_v2 = vpop.f32.mrb[6].mxu1  ;;  %v660_v3 = vpop.f32.mrb[7].mxu0  ;;  %v494_v59 = vld [vmem:[%s955_s3] sm:$0xff]  ;;  %v497_v63 = vld [vmem:[%s955_s3 + $0x18] sm:$0xff] }
 0x102   :  { %v661_v4 = vadd.f32 %v660_v3, %v659_v0  ;;  %v688_v5 = vpop.f32.mrb[7].mxu1 }
 0x103   :  { %v417_v6 = vadd.f32 %v686_v1, %v658_v62  ;;  %v689_v7 = vadd.f32 %v688_v5, %v687_v2  ;;  %v496_v62 = vld [vmem:[%s955_s3 + $0x10] sm:$0xff] }
 0x105   :  { %v427_v8 = vsel %vm423_vm1, %v417_v6, 0.0  ;;  %v420_v9 = vadd.f32 %v689_v7, %v661_v4 }
 0x106   :  { %v428_v10 = vadd.f32 %v427_v8, %v426_v61  ;;  %v495_v61 = vld [vmem:[%s955_s3 + $0x8] sm:$0xff] }
 0x107   :  { %v429_v11 = vsel %vm423_vm1, %v420_v9, 0.0 }
 0x108   :  { %v430_v12 = vadd.f32 %v429_v11, %v428_v10 }
 0x10a   :  { %v431_v13 = vrot.slane %v430_v12, 4 }
 0x10c   :  { %v432_v14 = vadd.f32 %v431_v13, %v430_v12 }
 0x10e   :  { %v433_v15 = vrot.slane %v432_v14, 2 }
 0x110   :  { %v434_v16 = vadd.f32 %v433_v15, %v432_v14  ;;  %v493_v14 = vld [vmem:[%s956_s4] sm:$0x3] }
 0x112   :  { %v435_v17 = vrot.slane %v434_v16, 1 }
 0x114   :  { %v436_v18 = vadd.f32 %v435_v17, %v434_v16 }
 0x116   :  { %v437_v19 = vmul.f32 0.03125, %v436_v18 }
 0x118   :  { %v438_v20 = vsub.f32 %v409_v53, %v437_v19  ;;  %v439_v21 = vsub.f32 %v412_v55, %v437_v19  ;;  %v440_v22 = vsub.f32 %v417_v6, %v437_v19  ;;  %v441_v23 = vsub.f32 %v420_v9, %v437_v19 }
 0x11a   :  { %v442_v24 = vmul.f32 %v438_v20, %v438_v20  ;;  %v443_v25 = vmul.f32 %v439_v21, %v439_v21  ;;  %v444_v26 = vmul.f32 %v440_v22, %v440_v22  ;;  %v445_v27 = vmul.f32 %v441_v23, %v441_v23 }
 0x11c   :  { %v446_v28 = vsel %vm423_vm1, %v442_v24, 0.0  ;;  %v447_v29 = vsel %vm423_vm1, %v443_v25, 0.0  ;;  %v449_v31 = vsel %vm423_vm1, %v444_v26, 0.0  ;;  %v451_v33 = vsel %vm423_vm1, %v445_v27, 0.0 }
 0x11d   :  { %v448_v30 = vadd.f32 %v447_v29, %v446_v28 }
 0x11f   :  { %v450_v32 = vadd.f32 %v449_v31, %v448_v30 }
 0x121   :  { %v452_v34 = vadd.f32 %v451_v33, %v450_v32 }
 0x123   :  { %v453_v35 = vrot.slane %v452_v34, 4 }
 0x125   :  { %v454_v36 = vadd.f32 %v453_v35, %v452_v34 }
 0x127   :  { %v455_v37 = vrot.slane %v454_v36, 2 }
 0x129   :  { %v456_v38 = vadd.f32 %v455_v37, %v454_v36 }
 0x12b   :  { %v457_v39 = vrot.slane %v456_v38, 1 }
 0x12d   :  { %v458_v41 = vadd.f32 %v457_v39, %v456_v38 }
 0x12f   :  { %v459_v42 = vmul.f32 0.03125, %v458_v41 }
 0x131   :  { %v461_v43 = vadd.f32 1e-05, %v459_v42 }
 0x133   :  { %759 = vrsqrt.f32 %v461_v43 }
 0x13d   :  { %v760_v48 = vpop.eup %759 }
 0x13e   :  { %v463_v49 = vmul.f32 %v760_v48, %v460_v46 }
 0x140   :  { %v467_v50 = vrot.slane %v463_v49, %v466_v47 }
 0x142   :  { %v471_v52 = vmul.f32 %v467_v50, %v441_v23  ;;  %v468_v53 = vmul.f32 %v467_v50, %v438_v20  ;;  %v469_v54 = vmul.f32 %v467_v50, %v439_v21  ;;  %v470_v55 = vmul.f32 %v467_v50, %v440_v22 }
 0x144   :  { %v480_v56 = vadd.f32 %v632_v51, %v471_v52  ;;  %v477_v57 = vadd.f32 %v632_v51, %v468_v53  ;;  %v478_v58 = vadd.f32 %v632_v51, %v469_v54  ;;  %v479_v60 = vadd.f32 %v632_v51, %v470_v55 }
 0x146   :  { %v488_v0 = vmul.f32 0.2, %v480_v56  ;;  %vm481_vm2 = vcmp.ge.f32.partialorder %v477_v57, 0.0  ;;  %vm482_vm3 = vcmp.ge.f32.partialorder %v478_v58, 0.0  ;;  %v485_v1 = vmul.f32 0.2, %v477_v57 }
 0x147   :  { %v486_v2 = vmul.f32 0.2, %v478_v58  ;;  %vm483_vm4 = vcmp.ge.f32.partialorder %v479_v60, 0.0  ;;  %vm484_vm5 = vcmp.ge.f32.partialorder %v480_v56, 0.0  ;;  %v487_v3 = vmul.f32 0.2, %v479_v60 }
 0x148   :  { %v489_v4 = vsel %vm481_vm2, %v477_v57, %v485_v1  ;;  %v492_v5 = vsel %vm484_vm5, %v480_v56, %v488_v0 }
 0x149   :  { %v490_v6 = vsel %vm482_vm3, %v478_v58, %v486_v2  ;;  %v498_v7 = vmul.f32 %v494_v59, %v489_v4  ;;  %v491_v8 = vsel %vm483_vm4, %v479_v60, %v487_v3  ;;  %v501_v9 = vmul.f32 %v497_v63, %v492_v5 }
 0x14a   :  { %v499_v10 = vmul.f32 %v495_v61, %v490_v6  ;;  %v500_v11 = vmul.f32 %v496_v62, %v491_v8 }
 0x14c   :  { %v707_v12 = vpack.c.bf16 %v499_v10, %v498_v7  ;;  %v710_v13 = vpack.c.bf16 %v501_v9, %v500_v11 }
 0x14e   :  { %708 = vmatpush3.bf16.msra.mxu0 %v707_v12 }
 0x14f   :  { %709 = vmatprep.subr.bf16.mxu0 %v765_v40 }
 0x152   :  { %711 = vmatpush3.bf16.msra.mxu0 %v710_v13 }
 0x155   :  { %704 = vmatmul.mubr.msk.f32.vlgmr.msra.gmra.mrb[8].mxu0 %vm502_vm6, %v493_v14 }
 0x228   :  { %v572_v15 = vpop.f32.mrb[8].mxu0 }
 0x229   :  { %v705_v16 = vpop.f32.mrb[9].mxu0  ;;  %v577_v17 = vsel %vm576_vm7, %v572_v15, 0.0 }
 0x22a   :  { %578 = vadd.xlane.f32.xlu0 %v577_v17 }
 0x2b7   :  { %v579_v18 = vpop.xlane.xlu0 %578 }
 0x2b8   :  { %v580_v19 = vsub.f32 0.0, %v579_v18 }
 0x2ba   :  { %v581_v20 = vmul.f32 1.442695, %v580_v19 }
 0x2bc   :  { %761 = vpow2.f32 %v581_v20 }
 0x2c6   :  { %v762_v21 = vpop.eup %761 }
 0x2c7   :  { %v583_v22 = vadd.f32 1.0, %v762_v21 }
 0x2c9   :  { %763 = vrcp.f32 %v583_v22 }
 0x2d3   :  { %v764_v40 = vpop.eup %763 }
 0x2d4   :  { %587 = vst.msk [vmem:[%s957_s5] sm:$0x3] %vm586_vm8, %v764_v40 }

</bundles_post_ra>
